<compile_context>
chip_gen: v5e
topology: v5e:2x2
jax: 0.10.0
libtpu: 0.0.40
codegen_flags: <defaults>
</compile_context>

<pallas_src>
import numpy as np
import jax
import jax.numpy as jnp
from jax import lax
from jax.experimental import pallas as pl
from jax.experimental.pallas import tpu as pltpu


TB = 16  # images per grid step (batch block)


# ---------------------------------------------------------------------------
# Fused kernel: whole network for TB images per grid step.
# ---------------------------------------------------------------------------
def net_kernel(xr_ref, w1_ref, ep1_ref, t2_ref, ep2_ref, t3_ref, ep3_ref,
               wf_ref, bf_ref, out_ref):
    f32 = jnp.float32
    bf16 = jnp.bfloat16
    M1 = 6 * TB            # stage-1 rows: (u = 0..5, b)
    M2 = 4 * TB            # stage-2 rows: (g = 0..3, b)
    M3 = 2 * TB            # stage-3 rows: (r = 0..1, b)

    def bn_relu(pooled, ep_ref):
        bias = ep_ref[0:1, :]
        scale = ep_ref[1:2, :]
        shift = ep_ref[2:3, :]
        return jnp.maximum(pooled + bias, 0.0) * scale + shift

    # ---------------- stage 1: conv1 -> pool -> relu -> bn1 ----------------
    # xr rows are (u, b); lanes are (k, w) with raw image row h = 4u + k.
    x_all = xr_ref[0]                       # [7*TB, 112] bf16
    xs0 = x_all[0:M1]                       # slabs u   = 0..5
    xs1 = x_all[TB:TB + M1]                 # slabs u+1 = 1..6

    def conv1_rows(m):                      # conv rows r1 = 4u + m
        acc = jnp.dot(xs0, w1_ref[m], preferred_element_type=f32)
        acc = acc + jnp.dot(xs1, w1_ref[4 + m], preferred_element_type=f32)
        # column-parity halves -> pooled columns e = 0..11 (192 lanes)
        return jnp.maximum(acc[:, :192], acc[:, 192:])

    a1_e = bn_relu(jnp.maximum(conv1_rows(0), conv1_rows(1)), ep1_ref)
    a1_o = bn_relu(jnp.maximum(conv1_rows(2), conv1_rows(3)), ep1_ref)
    a1_e = a1_e.astype(bf16)                # pooled rows a = 2u
    a1_o = a1_o.astype(bf16)                # pooled rows a = 2u + 1

    # ---------------- stage 2: conv2 -> pool -> relu -> bn2 ----------------
    def sl1(v, s):                          # shift by s pooled rows
        return v[s * TB: s * TB + M2]

    def dots(terms):
        acc = None
        for v, t in terms:
            d = jnp.dot(v, t, preferred_element_type=f32)
            acc = d if acc is None else acc + d
        return acc

    acc2_e = dots([(sl1(a1_e, 0), t2_ref[0]), (sl1(a1_o, 0), t2_ref[1]),
                   (sl1(a1_e, 1), t2_ref[2]), (sl1(a1_o, 1), t2_ref[3]),
                   (sl1(a1_e, 2), t2_ref[4])])          # conv rows r2 = 2g
    acc2_o = dots([(sl1(a1_o, 0), t2_ref[0]), (sl1(a1_e, 1), t2_ref[1]),
                   (sl1(a1_o, 1), t2_ref[2]), (sl1(a1_e, 2), t2_ref[3]),
                   (sl1(a1_o, 2), t2_ref[4])])          # conv rows r2 = 2g+1
    cp_e = jnp.maximum(acc2_e[:, :64], acc2_e[:, 64:])
    cp_o = jnp.maximum(acc2_o[:, :64], acc2_o[:, 64:])
    a2 = bn_relu(jnp.maximum(cp_e, cp_o), ep2_ref).astype(bf16)   # [4*TB, 64]

    # ---------------- stage 3: conv3 -> pool -> relu -> bn3 ----------------
    acc3 = dots([(a2[0:M3], t3_ref[0]),
                 (a2[TB:TB + M3], t3_ref[1]),
                 (a2[2 * TB:2 * TB + M3], t3_ref[2])])            # [2*TB, 512]
    cp3 = jnp.maximum(acc3[:, :256], acc3[:, 256:])               # col pool
    pooled3 = jnp.maximum(cp3[0:TB], cp3[TB:M3])                  # row pool
    a3 = bn_relu(pooled3, ep3_ref).astype(bf16)                   # [TB, 256]

    # ---------------- fc1 + log_softmax ----------------
    logits = jnp.dot(a3, wf_ref[...], preferred_element_type=f32) + bf_ref[...]
    z = logits - jnp.max(logits, axis=-1, keepdims=True)
    lse = jnp.log(jnp.sum(jnp.exp(z), axis=-1, keepdims=True))
    out_ref[...] = z - lse


# ---------------------------------------------------------------------------
# Host-side (numpy) packing of weights into block-Toeplitz matmul form.
# ---------------------------------------------------------------------------
def pack_params(p):
    w1 = np.asarray(p['w1'], np.float32)      # [5, 5, 1, 16]   HWIO
    w2 = np.asarray(p['w2'], np.float32)      # [5, 5, 16, 16]
    w3 = np.asarray(p['w3'], np.float32)      # [3, 3, 16, 256]

    # Stage 1.  Conv row r1 = 4u + m reads raw rows 4u+m+di; LHS lanes hold
    # 4 consecutive raw rows (k = h mod 4, w), so row group m needs two
    # matmuls: against slab u (half A, index m) and slab u+1 (half B, 4+m).
    # Output lanes: (col parity, pooled col e, out ch co) -> 384.
    W1 = np.zeros((8, 112, 384), np.float32)
    for m in range(4):
        for di in range(5):
            g = m + di
            idx, k = (m, g) if g < 4 else (4 + m, g - 4)
            for c1 in range(24):
                e, par = c1 // 2, c1 % 2
                lane0 = par * 192 + e * 16
                for dj in range(5):
                    W1[idx, k * 28 + c1 + dj, lane0:lane0 + 16] = w1[di, dj, 0, :]

    # Stage 2.  LHS lanes (e, ci) = 192; output lanes (parity, f, co) = 128.
    T2 = np.zeros((5, 192, 128), np.float32)
    for di in range(5):
        for c2 in range(8):
            f, par = c2 // 2, c2 % 2
            lane0 = par * 64 + f * 16
            for dj in range(5):
                e = c2 + dj
                T2[di, e * 16:(e + 1) * 16, lane0:lane0 + 16] = w2[di, dj]

    # Stage 3.  LHS lanes (f, ci) = 64; output lanes (col c3, co) = 512.
    T3 = np.zeros((3, 64, 512), np.float32)
    for di in range(3):
        for c3 in range(2):
            lane0 = c3 * 256
            for dj in range(3):
                f = c3 + dj
                T3[di, f * 16:(f + 1) * 16, lane0:lane0 + 256] = w3[di, dj]

    def ep(bias, scale, shift, reps):
        return np.stack([np.tile(np.asarray(bias, np.float32), reps),
                         np.tile(np.asarray(scale, np.float32), reps),
                         np.tile(np.asarray(shift, np.float32), reps)], axis=0)

    return dict(
        W1=jnp.asarray(W1, jnp.bfloat16),
        T2=jnp.asarray(T2, jnp.bfloat16),
        T3=jnp.asarray(T3, jnp.bfloat16),
        ep1=jnp.asarray(ep(p['b1'], p['s1'], p['t1'], 12)),
        ep2=jnp.asarray(ep(p['b2'], p['s2'], p['t2'], 4)),
        ep3=jnp.asarray(ep(p['b3'], p['s3'], p['t3'], 1)),
        wf=jnp.asarray(p['wf'], jnp.bfloat16),
        bf=jnp.asarray(p['bf'], jnp.float32).reshape(1, 10),
    )


# ---------------------------------------------------------------------------
# Wrapper
# ---------------------------------------------------------------------------
def _rep(shape):
    n = len(shape)
    return pl.BlockSpec(shape, lambda i, n=n: (0,) * n)


@jax.jit
def net_forward(x_nchw, packed):
    B = x_nchw.shape[0]
    G = (B + TB - 1) // TB
    Bp = G * TB

    x = x_nchw[:, 0, :, :].astype(jnp.bfloat16)            # [B, 28, 28]
    if Bp != B:
        x = jnp.pad(x, ((0, Bp - B), (0, 0), (0, 0)))
    # Raw image row h = 4u + k  ->  rows (u, b) image-minor, lanes (k, w)=112.
    xr = (x.reshape(G, TB, 7, 112)
            .transpose(0, 2, 1, 3)
            .reshape(G, 7 * TB, 112))

    out = pl.pallas_call(
        net_kernel,
        out_shape=jax.ShapeDtypeStruct((Bp, 10), jnp.float32),
        grid=(G,),
        in_specs=[
            pl.BlockSpec((1, 7 * TB, 112), lambda i: (i, 0, 0)),  # images
            _rep((8, 112, 384)),      # W1  (conv1 Toeplitz, A/B x 4 row groups)
            _rep((3, 192)),           # ep1 (bias / bn scale / bn shift)
            _rep((5, 192, 128)),      # T2  (conv2 Toeplitz per kernel row)
            _rep((3, 64)),            # ep2
            _rep((3, 64, 512)),       # T3  (conv3 Toeplitz per kernel row)
            _rep((3, 256)),           # ep3
            _rep((256, 10)),          # wf
            _rep((1, 10)),            # bf
        ],
        out_specs=pl.BlockSpec((TB, 10), lambda i: (i, 0)),
        compiler_params=pltpu.CompilerParams(
            dimension_semantics=("parallel",),
            vmem_limit_bytes=32 * 1024 * 1024),
    )(xr, packed['W1'], packed['ep1'], packed['T2'], packed['ep2'],
      packed['T3'], packed['ep3'], packed['wf'], packed['bf'])
    return out[:B]


# ---------------------------------------------------------------------------
# Parameters / pure-JAX reference (for the sanity check)
# ---------------------------------------------------------------------------
def init_params(key):
    ks = jax.random.split(key, 11)

    def conv_w(k, kh, kw, cin, cout):
        return (jax.random.normal(k, (kh, kw, cin, cout), jnp.float32)
                / jnp.sqrt(kh * kw * cin))

    def bn_affine(k, c, eps=1e-5):
        k1, k2, k3, k4 = jax.random.split(k, 4)
        gamma = 1.0 + 0.1 * jax.random.normal(k1, (c,), jnp.float32)
        beta = 0.1 * jax.random.normal(k2, (c,), jnp.float32)
        mean = 0.1 * jax.random.normal(k3, (c,), jnp.float32)
        var = 1.0 + 0.5 * jax.random.uniform(k4, (c,), jnp.float32)
        scale = gamma / jnp.sqrt(var + eps)
        return scale, beta - mean * scale

    p = {}
    p['w1'] = conv_w(ks[0], 5, 5, 1, 16)
    p['b1'] = 0.01 * jax.random.normal(ks[1], (16,), jnp.float32)
    p['s1'], p['t1'] = bn_affine(ks[2], 16)
    p['w2'] = conv_w(ks[3], 5, 5, 16, 16)
    p['b2'] = 0.01 * jax.random.normal(ks[4], (16,), jnp.float32)
    p['s2'], p['t2'] = bn_affine(ks[5], 16)
    p['w3'] = conv_w(ks[6], 3, 3, 16, 256)
    p['b3'] = 0.01 * jax.random.normal(ks[7], (256,), jnp.float32)
    p['s3'], p['t3'] = bn_affine(ks[8], 256)
    p['wf'] = jax.random.normal(ks[9], (256, 10), jnp.float32) / jnp.sqrt(256.0)
    p['bf'] = 0.01 * jax.random.normal(ks[10], (10,), jnp.float32)
    return p


def reference_forward(x_nchw, p):
    x = jnp.transpose(x_nchw, (0, 2, 3, 1))

    def stage(y, w, b, s, t):
        y = lax.conv_general_dilated(
            y, w, (1, 1), 'VALID',
            dimension_numbers=('NHWC', 'HWIO', 'NHWC')) + b
        y = lax.reduce_window(y, -jnp.inf, lax.max,
                              (1, 2, 2, 1), (1, 2, 2, 1), 'VALID')
        y = jnp.maximum(y, 0.0)
        return y * s + t

    x = stage(x, p['w1'], p['b1'], p['s1'], p['t1'])
    x = stage(x, p['w2'], p['b2'], p['s2'], p['t2'])
    x = stage(x, p['w3'], p['b3'], p['s3'], p['t3'])
    logits = x.reshape(x.shape[0], -1) @ p['wf'] + p['bf']
    return jax.nn.log_softmax(logits, axis=-1)


if __name__ == "__main__":
    key = jax.random.PRNGKey(0)
    kx, kp = jax.random.split(key)
    # MNIST-style NCHW input; 28x28 is required so the conv/pool chain ends
    # at 1x1.  Batch 32 -> 2 grid blocks of TB=16 images each.
    x = jax.random.normal(kx, (32, 1, 28, 28), jnp.float32)
    params = init_params(kp)
    packed = pack_params(params)

    out = jax.block_until_ready(net_forward(x, packed))

    assert out.shape == (32, 10)
    assert bool(jnp.all(jnp.isfinite(out)))
    ref = reference_forward(x, params)
    max_err = float(jnp.max(jnp.abs(out - ref)))
    assert bool(jnp.allclose(out, ref, atol=5e-2, rtol=5e-2)), max_err

    print("KERNEL_OK")
</pallas_src>

<mosaic_0001>
module attributes {stable_mosaic.version = 11 : i64} {
  func.func @net_kernel(%arg0: i32, %arg1: memref<1x112x112xbf16, #tpu.memory_space<vmem>>, %arg2: memref<8x112x384xbf16, #tpu.memory_space<vmem>>, %arg3: memref<3x192xf32, #tpu.memory_space<vmem>>, %arg4: memref<5x192x128xbf16, #tpu.memory_space<vmem>>, %arg5: memref<3x64xf32, #tpu.memory_space<vmem>>, %arg6: memref<3x64x512xbf16, #tpu.memory_space<vmem>>, %arg7: memref<3x256xf32, #tpu.memory_space<vmem>>, %arg8: memref<256x10xbf16, #tpu.memory_space<vmem>>, %arg9: memref<1x10xf32, #tpu.memory_space<vmem>>, %arg10: memref<16x10xf32, #tpu.memory_space<vmem>>) attributes {dimension_semantics = [#tpu.dimension_semantics<parallel>], iteration_bounds = array<i64: 2>, scalar_prefetch = 0 : i64, scratch_operands = 0 : i64, tpu.core_type = #tpu.core_type<tc>, window_params = [{transform_indices = @transform_0, window_bounds = array<i64: 1, 112, 112>}, {pipeline_mode = #tpu.pipeline_mode<synchronous>, transform_indices = @transform_1, window_bounds = array<i64: 8, 112, 384>}, {pipeline_mode = #tpu.pipeline_mode<synchronous>, transform_indices = @transform_2, window_bounds = array<i64: 3, 192>}, {pipeline_mode = #tpu.pipeline_mode<synchronous>, transform_indices = @transform_3, window_bounds = array<i64: 5, 192, 128>}, {pipeline_mode = #tpu.pipeline_mode<synchronous>, transform_indices = @transform_4, window_bounds = array<i64: 3, 64>}, {pipeline_mode = #tpu.pipeline_mode<synchronous>, transform_indices = @transform_5, window_bounds = array<i64: 3, 64, 512>}, {pipeline_mode = #tpu.pipeline_mode<synchronous>, transform_indices = @transform_6, window_bounds = array<i64: 3, 256>}, {pipeline_mode = #tpu.pipeline_mode<synchronous>, transform_indices = @transform_7, window_bounds = array<i64: 256, 10>}, {pipeline_mode = #tpu.pipeline_mode<synchronous>, transform_indices = @transform_8, window_bounds = array<i64: 1, 10>}, {transform_indices = @transform_9, window_bounds = array<i64: 16, 10>}]} {
    %c0 = arith.constant 0 : index
    %c0_0 = arith.constant 0 : index
    %c0_1 = arith.constant 0 : index
    %0 = vector.load %arg1[%c0, %c0_0, %c0_1] : memref<1x112x112xbf16, #tpu.memory_space<vmem>>, vector<1x112x112xbf16>
    %1 = vector.shape_cast %0 : vector<1x112x112xbf16> to vector<112x112xbf16>
    %2 = vector.extract_strided_slice %1 {offsets = [0, 0], sizes = [96, 112], strides = [1, 1]} : vector<112x112xbf16> to vector<96x112xbf16>
    %3 = vector.extract_strided_slice %1 {offsets = [16, 0], sizes = [96, 112], strides = [1, 1]} : vector<112x112xbf16> to vector<96x112xbf16>
    %c0_2 = arith.constant 0 : index
    %c0_3 = arith.constant 0 : index
    %c0_4 = arith.constant 0 : index
    %4 = vector.load %arg2[%c0_2, %c0_3, %c0_4] : memref<8x112x384xbf16, #tpu.memory_space<vmem>>, vector<1x112x384xbf16>
    %5 = vector.shape_cast %4 : vector<1x112x384xbf16> to vector<112x384xbf16>
    %cst = arith.constant dense<0.000000e+00> : vector<96x384xf32>
    %6 = tpu.matmul %2, %5, %cst {dimension_numbers = #tpu.dot_dimension_numbers<[1], [0], [0], [1], [0, 0, 1, 1], [], []>} : vector<96x112xbf16>, vector<112x384xbf16>, vector<96x384xf32> -> vector<96x384xf32>
    %c4 = arith.constant 4 : index
    %c0_5 = arith.constant 0 : index
    %c0_6 = arith.constant 0 : index
    %7 = vector.load %arg2[%c4, %c0_5, %c0_6] : memref<8x112x384xbf16, #tpu.memory_space<vmem>>, vector<1x112x384xbf16>
    %8 = vector.shape_cast %7 : vector<1x112x384xbf16> to vector<112x384xbf16>
    %cst_7 = arith.constant dense<0.000000e+00> : vector<96x384xf32>
    %9 = tpu.matmul %3, %8, %cst_7 {dimension_numbers = #tpu.dot_dimension_numbers<[1], [0], [0], [1], [0, 0, 1, 1], [], []>} : vector<96x112xbf16>, vector<112x384xbf16>, vector<96x384xf32> -> vector<96x384xf32>
    %10 = arith.addf %6, %9 : vector<96x384xf32>
    %11 = vector.extract_strided_slice %10 {offsets = [0, 0], sizes = [96, 192], strides = [1, 1]} : vector<96x384xf32> to vector<96x192xf32>
    %12 = vector.extract_strided_slice %10 {offsets = [0, 192], sizes = [96, 192], strides = [1, 1]} : vector<96x384xf32> to vector<96x192xf32>
    %13 = arith.maximumf %11, %12 : vector<96x192xf32>
    %c1 = arith.constant 1 : index
    %c0_8 = arith.constant 0 : index
    %c0_9 = arith.constant 0 : index
    %14 = vector.load %arg2[%c1, %c0_8, %c0_9] : memref<8x112x384xbf16, #tpu.memory_space<vmem>>, vector<1x112x384xbf16>
    %15 = vector.shape_cast %14 : vector<1x112x384xbf16> to vector<112x384xbf16>
    %cst_10 = arith.constant dense<0.000000e+00> : vector<96x384xf32>
    %16 = tpu.matmul %2, %15, %cst_10 {dimension_numbers = #tpu.dot_dimension_numbers<[1], [0], [0], [1], [0, 0, 1, 1], [], []>} : vector<96x112xbf16>, vector<112x384xbf16>, vector<96x384xf32> -> vector<96x384xf32>
    %c5 = arith.constant 5 : index
    %c0_11 = arith.constant 0 : index
    %c0_12 = arith.constant 0 : index
    %17 = vector.load %arg2[%c5, %c0_11, %c0_12] : memref<8x112x384xbf16, #tpu.memory_space<vmem>>, vector<1x112x384xbf16>
    %18 = vector.shape_cast %17 : vector<1x112x384xbf16> to vector<112x384xbf16>
    %cst_13 = arith.constant dense<0.000000e+00> : vector<96x384xf32>
    %19 = tpu.matmul %3, %18, %cst_13 {dimension_numbers = #tpu.dot_dimension_numbers<[1], [0], [0], [1], [0, 0, 1, 1], [], []>} : vector<96x112xbf16>, vector<112x384xbf16>, vector<96x384xf32> -> vector<96x384xf32>
    %20 = arith.addf %16, %19 : vector<96x384xf32>
    %21 = vector.extract_strided_slice %20 {offsets = [0, 0], sizes = [96, 192], strides = [1, 1]} : vector<96x384xf32> to vector<96x192xf32>
    %22 = vector.extract_strided_slice %20 {offsets = [0, 192], sizes = [96, 192], strides = [1, 1]} : vector<96x384xf32> to vector<96x192xf32>
    %23 = arith.maximumf %21, %22 : vector<96x192xf32>
    %24 = arith.maximumf %13, %23 : vector<96x192xf32>
    %c0_14 = arith.constant 0 : index
    %c0_15 = arith.constant 0 : index
    %25 = vector.load %arg3[%c0_14, %c0_15] : memref<3x192xf32, #tpu.memory_space<vmem>>, vector<1x192xf32>
    %c1_16 = arith.constant 1 : index
    %c0_17 = arith.constant 0 : index
    %26 = vector.load %arg3[%c1_16, %c0_17] : memref<3x192xf32, #tpu.memory_space<vmem>>, vector<1x192xf32>
    %c2 = arith.constant 2 : index
    %c0_18 = arith.constant 0 : index
    %27 = vector.load %arg3[%c2, %c0_18] : memref<3x192xf32, #tpu.memory_space<vmem>>, vector<1x192xf32>
    %28 = vector.broadcast %25 : vector<1x192xf32> to vector<96x192xf32>
    %29 = arith.addf %24, %28 : vector<96x192xf32>
    %cst_19 = arith.constant 0.000000e+00 : f32
    %30 = vector.broadcast %cst_19 : f32 to vector<96x192xf32>
    %31 = arith.maximumf %29, %30 : vector<96x192xf32>
    %32 = vector.broadcast %26 : vector<1x192xf32> to vector<96x192xf32>
    %33 = arith.mulf %31, %32 : vector<96x192xf32>
    %34 = vector.broadcast %27 : vector<1x192xf32> to vector<96x192xf32>
    %35 = arith.addf %33, %34 : vector<96x192xf32>
    %c2_20 = arith.constant 2 : index
    %c0_21 = arith.constant 0 : index
    %c0_22 = arith.constant 0 : index
    %36 = vector.load %arg2[%c2_20, %c0_21, %c0_22] : memref<8x112x384xbf16, #tpu.memory_space<vmem>>, vector<1x112x384xbf16>
    %37 = vector.shape_cast %36 : vector<1x112x384xbf16> to vector<112x384xbf16>
    %cst_23 = arith.constant dense<0.000000e+00> : vector<96x384xf32>
    %38 = tpu.matmul %2, %37, %cst_23 {dimension_numbers = #tpu.dot_dimension_numbers<[1], [0], [0], [1], [0, 0, 1, 1], [], []>} : vector<96x112xbf16>, vector<112x384xbf16>, vector<96x384xf32> -> vector<96x384xf32>
    %c6 = arith.constant 6 : index
    %c0_24 = arith.constant 0 : index
    %c0_25 = arith.constant 0 : index
    %39 = vector.load %arg2[%c6, %c0_24, %c0_25] : memref<8x112x384xbf16, #tpu.memory_space<vmem>>, vector<1x112x384xbf16>
    %40 = vector.shape_cast %39 : vector<1x112x384xbf16> to vector<112x384xbf16>
    %cst_26 = arith.constant dense<0.000000e+00> : vector<96x384xf32>
    %41 = tpu.matmul %3, %40, %cst_26 {dimension_numbers = #tpu.dot_dimension_numbers<[1], [0], [0], [1], [0, 0, 1, 1], [], []>} : vector<96x112xbf16>, vector<112x384xbf16>, vector<96x384xf32> -> vector<96x384xf32>
    %42 = arith.addf %38, %41 : vector<96x384xf32>
    %43 = vector.extract_strided_slice %42 {offsets = [0, 0], sizes = [96, 192], strides = [1, 1]} : vector<96x384xf32> to vector<96x192xf32>
    %44 = vector.extract_strided_slice %42 {offsets = [0, 192], sizes = [96, 192], strides = [1, 1]} : vector<96x384xf32> to vector<96x192xf32>
    %45 = arith.maximumf %43, %44 : vector<96x192xf32>
    %c3 = arith.constant 3 : index
    %c0_27 = arith.constant 0 : index
    %c0_28 = arith.constant 0 : index
    %46 = vector.load %arg2[%c3, %c0_27, %c0_28] : memref<8x112x384xbf16, #tpu.memory_space<vmem>>, vector<1x112x384xbf16>
    %47 = vector.shape_cast %46 : vector<1x112x384xbf16> to vector<112x384xbf16>
    %cst_29 = arith.constant dense<0.000000e+00> : vector<96x384xf32>
    %48 = tpu.matmul %2, %47, %cst_29 {dimension_numbers = #tpu.dot_dimension_numbers<[1], [0], [0], [1], [0, 0, 1, 1], [], []>} : vector<96x112xbf16>, vector<112x384xbf16>, vector<96x384xf32> -> vector<96x384xf32>
    %c7 = arith.constant 7 : index
    %c0_30 = arith.constant 0 : index
    %c0_31 = arith.constant 0 : index
    %49 = vector.load %arg2[%c7, %c0_30, %c0_31] : memref<8x112x384xbf16, #tpu.memory_space<vmem>>, vector<1x112x384xbf16>
    %50 = vector.shape_cast %49 : vector<1x112x384xbf16> to vector<112x384xbf16>
    %cst_32 = arith.constant dense<0.000000e+00> : vector<96x384xf32>
    %51 = tpu.matmul %3, %50, %cst_32 {dimension_numbers = #tpu.dot_dimension_numbers<[1], [0], [0], [1], [0, 0, 1, 1], [], []>} : vector<96x112xbf16>, vector<112x384xbf16>, vector<96x384xf32> -> vector<96x384xf32>
    %52 = arith.addf %48, %51 : vector<96x384xf32>
    %53 = vector.extract_strided_slice %52 {offsets = [0, 0], sizes = [96, 192], strides = [1, 1]} : vector<96x384xf32> to vector<96x192xf32>
    %54 = vector.extract_strided_slice %52 {offsets = [0, 192], sizes = [96, 192], strides = [1, 1]} : vector<96x384xf32> to vector<96x192xf32>
    %55 = arith.maximumf %53, %54 : vector<96x192xf32>
    %56 = arith.maximumf %45, %55 : vector<96x192xf32>
    %c0_33 = arith.constant 0 : index
    %c0_34 = arith.constant 0 : index
    %57 = vector.load %arg3[%c0_33, %c0_34] : memref<3x192xf32, #tpu.memory_space<vmem>>, vector<1x192xf32>
    %c1_35 = arith.constant 1 : index
    %c0_36 = arith.constant 0 : index
    %58 = vector.load %arg3[%c1_35, %c0_36] : memref<3x192xf32, #tpu.memory_space<vmem>>, vector<1x192xf32>
    %c2_37 = arith.constant 2 : index
    %c0_38 = arith.constant 0 : index
    %59 = vector.load %arg3[%c2_37, %c0_38] : memref<3x192xf32, #tpu.memory_space<vmem>>, vector<1x192xf32>
    %60 = vector.broadcast %57 : vector<1x192xf32> to vector<96x192xf32>
    %61 = arith.addf %56, %60 : vector<96x192xf32>
    %cst_39 = arith.constant 0.000000e+00 : f32
    %62 = vector.broadcast %cst_39 : f32 to vector<96x192xf32>
    %63 = arith.maximumf %61, %62 : vector<96x192xf32>
    %64 = vector.broadcast %58 : vector<1x192xf32> to vector<96x192xf32>
    %65 = arith.mulf %63, %64 : vector<96x192xf32>
    %66 = vector.broadcast %59 : vector<1x192xf32> to vector<96x192xf32>
    %67 = arith.addf %65, %66 : vector<96x192xf32>
    %68 = arith.truncf %35 : vector<96x192xf32> to vector<96x192xbf16>
    %69 = arith.truncf %67 : vector<96x192xf32> to vector<96x192xbf16>
    %70 = vector.extract_strided_slice %68 {offsets = [0, 0], sizes = [64, 192], strides = [1, 1]} : vector<96x192xbf16> to vector<64x192xbf16>
    %c0_40 = arith.constant 0 : index
    %c0_41 = arith.constant 0 : index
    %c0_42 = arith.constant 0 : index
    %71 = vector.load %arg4[%c0_40, %c0_41, %c0_42] : memref<5x192x128xbf16, #tpu.memory_space<vmem>>, vector<1x192x128xbf16>
    %72 = vector.shape_cast %71 : vector<1x192x128xbf16> to vector<192x128xbf16>
    %73 = vector.extract_strided_slice %69 {offsets = [0, 0], sizes = [64, 192], strides = [1, 1]} : vector<96x192xbf16> to vector<64x192xbf16>
    %c1_43 = arith.constant 1 : index
    %c0_44 = arith.constant 0 : index
    %c0_45 = arith.constant 0 : index
    %74 = vector.load %arg4[%c1_43, %c0_44, %c0_45] : memref<5x192x128xbf16, #tpu.memory_space<vmem>>, vector<1x192x128xbf16>
    %75 = vector.shape_cast %74 : vector<1x192x128xbf16> to vector<192x128xbf16>
    %76 = vector.extract_strided_slice %68 {offsets = [16, 0], sizes = [64, 192], strides = [1, 1]} : vector<96x192xbf16> to vector<64x192xbf16>
    %c2_46 = arith.constant 2 : index
    %c0_47 = arith.constant 0 : index
    %c0_48 = arith.constant 0 : index
    %77 = vector.load %arg4[%c2_46, %c0_47, %c0_48] : memref<5x192x128xbf16, #tpu.memory_space<vmem>>, vector<1x192x128xbf16>
    %78 = vector.shape_cast %77 : vector<1x192x128xbf16> to vector<192x128xbf16>
    %79 = vector.extract_strided_slice %69 {offsets = [16, 0], sizes = [64, 192], strides = [1, 1]} : vector<96x192xbf16> to vector<64x192xbf16>
    %c3_49 = arith.constant 3 : index
    %c0_50 = arith.constant 0 : index
    %c0_51 = arith.constant 0 : index
    %80 = vector.load %arg4[%c3_49, %c0_50, %c0_51] : memref<5x192x128xbf16, #tpu.memory_space<vmem>>, vector<1x192x128xbf16>
    %81 = vector.shape_cast %80 : vector<1x192x128xbf16> to vector<192x128xbf16>
    %82 = vector.extract_strided_slice %68 {offsets = [32, 0], sizes = [64, 192], strides = [1, 1]} : vector<96x192xbf16> to vector<64x192xbf16>
    %c4_52 = arith.constant 4 : index
    %c0_53 = arith.constant 0 : index
    %c0_54 = arith.constant 0 : index
    %83 = vector.load %arg4[%c4_52, %c0_53, %c0_54] : memref<5x192x128xbf16, #tpu.memory_space<vmem>>, vector<1x192x128xbf16>
    %84 = vector.shape_cast %83 : vector<1x192x128xbf16> to vector<192x128xbf16>
    %cst_55 = arith.constant dense<0.000000e+00> : vector<64x128xf32>
    %85 = tpu.matmul %70, %72, %cst_55 {dimension_numbers = #tpu.dot_dimension_numbers<[1], [0], [0], [1], [0, 0, 1, 1], [], []>} : vector<64x192xbf16>, vector<192x128xbf16>, vector<64x128xf32> -> vector<64x128xf32>
    %cst_56 = arith.constant dense<0.000000e+00> : vector<64x128xf32>
    %86 = tpu.matmul %73, %75, %cst_56 {dimension_numbers = #tpu.dot_dimension_numbers<[1], [0], [0], [1], [0, 0, 1, 1], [], []>} : vector<64x192xbf16>, vector<192x128xbf16>, vector<64x128xf32> -> vector<64x128xf32>
    %87 = arith.addf %85, %86 : vector<64x128xf32>
    %cst_57 = arith.constant dense<0.000000e+00> : vector<64x128xf32>
    %88 = tpu.matmul %76, %78, %cst_57 {dimension_numbers = #tpu.dot_dimension_numbers<[1], [0], [0], [1], [0, 0, 1, 1], [], []>} : vector<64x192xbf16>, vector<192x128xbf16>, vector<64x128xf32> -> vector<64x128xf32>
    %89 = arith.addf %87, %88 : vector<64x128xf32>
    %cst_58 = arith.constant dense<0.000000e+00> : vector<64x128xf32>
    %90 = tpu.matmul %79, %81, %cst_58 {dimension_numbers = #tpu.dot_dimension_numbers<[1], [0], [0], [1], [0, 0, 1, 1], [], []>} : vector<64x192xbf16>, vector<192x128xbf16>, vector<64x128xf32> -> vector<64x128xf32>
    %91 = arith.addf %89, %90 : vector<64x128xf32>
    %cst_59 = arith.constant dense<0.000000e+00> : vector<64x128xf32>
    %92 = tpu.matmul %82, %84, %cst_59 {dimension_numbers = #tpu.dot_dimension_numbers<[1], [0], [0], [1], [0, 0, 1, 1], [], []>} : vector<64x192xbf16>, vector<192x128xbf16>, vector<64x128xf32> -> vector<64x128xf32>
    %93 = arith.addf %91, %92 : vector<64x128xf32>
    %94 = vector.extract_strided_slice %69 {offsets = [0, 0], sizes = [64, 192], strides = [1, 1]} : vector<96x192xbf16> to vector<64x192xbf16>
    %c0_60 = arith.constant 0 : index
    %c0_61 = arith.constant 0 : index
    %c0_62 = arith.constant 0 : index
    %95 = vector.load %arg4[%c0_60, %c0_61, %c0_62] : memref<5x192x128xbf16, #tpu.memory_space<vmem>>, vector<1x192x128xbf16>
    %96 = vector.shape_cast %95 : vector<1x192x128xbf16> to vector<192x128xbf16>
    %97 = vector.extract_strided_slice %68 {offsets = [16, 0], sizes = [64, 192], strides = [1, 1]} : vector<96x192xbf16> to vector<64x192xbf16>
    %c1_63 = arith.constant 1 : index
    %c0_64 = arith.constant 0 : index
    %c0_65 = arith.constant 0 : index
    %98 = vector.load %arg4[%c1_63, %c0_64, %c0_65] : memref<5x192x128xbf16, #tpu.memory_space<vmem>>, vector<1x192x128xbf16>
    %99 = vector.shape_cast %98 : vector<1x192x128xbf16> to vector<192x128xbf16>
    %100 = vector.extract_strided_slice %69 {offsets = [16, 0], sizes = [64, 192], strides = [1, 1]} : vector<96x192xbf16> to vector<64x192xbf16>
    %c2_66 = arith.constant 2 : index
    %c0_67 = arith.constant 0 : index
    %c0_68 = arith.constant 0 : index
    %101 = vector.load %arg4[%c2_66, %c0_67, %c0_68] : memref<5x192x128xbf16, #tpu.memory_space<vmem>>, vector<1x192x128xbf16>
    %102 = vector.shape_cast %101 : vector<1x192x128xbf16> to vector<192x128xbf16>
    %103 = vector.extract_strided_slice %68 {offsets = [32, 0], sizes = [64, 192], strides = [1, 1]} : vector<96x192xbf16> to vector<64x192xbf16>
    %c3_69 = arith.constant 3 : index
    %c0_70 = arith.constant 0 : index
    %c0_71 = arith.constant 0 : index
    %104 = vector.load %arg4[%c3_69, %c0_70, %c0_71] : memref<5x192x128xbf16, #tpu.memory_space<vmem>>, vector<1x192x128xbf16>
    %105 = vector.shape_cast %104 : vector<1x192x128xbf16> to vector<192x128xbf16>
    %106 = vector.extract_strided_slice %69 {offsets = [32, 0], sizes = [64, 192], strides = [1, 1]} : vector<96x192xbf16> to vector<64x192xbf16>
    %c4_72 = arith.constant 4 : index
    %c0_73 = arith.constant 0 : index
    %c0_74 = arith.constant 0 : index
    %107 = vector.load %arg4[%c4_72, %c0_73, %c0_74] : memref<5x192x128xbf16, #tpu.memory_space<vmem>>, vector<1x192x128xbf16>
    %108 = vector.shape_cast %107 : vector<1x192x128xbf16> to vector<192x128xbf16>
    %cst_75 = arith.constant dense<0.000000e+00> : vector<64x128xf32>
    %109 = tpu.matmul %94, %96, %cst_75 {dimension_numbers = #tpu.dot_dimension_numbers<[1], [0], [0], [1], [0, 0, 1, 1], [], []>} : vector<64x192xbf16>, vector<192x128xbf16>, vector<64x128xf32> -> vector<64x128xf32>
    %cst_76 = arith.constant dense<0.000000e+00> : vector<64x128xf32>
    %110 = tpu.matmul %97, %99, %cst_76 {dimension_numbers = #tpu.dot_dimension_numbers<[1], [0], [0], [1], [0, 0, 1, 1], [], []>} : vector<64x192xbf16>, vector<192x128xbf16>, vector<64x128xf32> -> vector<64x128xf32>
    %111 = arith.addf %109, %110 : vector<64x128xf32>
    %cst_77 = arith.constant dense<0.000000e+00> : vector<64x128xf32>
    %112 = tpu.matmul %100, %102, %cst_77 {dimension_numbers = #tpu.dot_dimension_numbers<[1], [0], [0], [1], [0, 0, 1, 1], [], []>} : vector<64x192xbf16>, vector<192x128xbf16>, vector<64x128xf32> -> vector<64x128xf32>
    %113 = arith.addf %111, %112 : vector<64x128xf32>
    %cst_78 = arith.constant dense<0.000000e+00> : vector<64x128xf32>
    %114 = tpu.matmul %103, %105, %cst_78 {dimension_numbers = #tpu.dot_dimension_numbers<[1], [0], [0], [1], [0, 0, 1, 1], [], []>} : vector<64x192xbf16>, vector<192x128xbf16>, vector<64x128xf32> -> vector<64x128xf32>
    %115 = arith.addf %113, %114 : vector<64x128xf32>
    %cst_79 = arith.constant dense<0.000000e+00> : vector<64x128xf32>
    %116 = tpu.matmul %106, %108, %cst_79 {dimension_numbers = #tpu.dot_dimension_numbers<[1], [0], [0], [1], [0, 0, 1, 1], [], []>} : vector<64x192xbf16>, vector<192x128xbf16>, vector<64x128xf32> -> vector<64x128xf32>
    %117 = arith.addf %115, %116 : vector<64x128xf32>
    %118 = vector.extract_strided_slice %93 {offsets = [0, 0], sizes = [64, 64], strides = [1, 1]} : vector<64x128xf32> to vector<64x64xf32>
    %119 = vector.extract_strided_slice %93 {offsets = [0, 64], sizes = [64, 64], strides = [1, 1]} : vector<64x128xf32> to vector<64x64xf32>
    %120 = arith.maximumf %118, %119 : vector<64x64xf32>
    %121 = vector.extract_strided_slice %117 {offsets = [0, 0], sizes = [64, 64], strides = [1, 1]} : vector<64x128xf32> to vector<64x64xf32>
    %122 = vector.extract_strided_slice %117 {offsets = [0, 64], sizes = [64, 64], strides = [1, 1]} : vector<64x128xf32> to vector<64x64xf32>
    %123 = arith.maximumf %121, %122 : vector<64x64xf32>
    %124 = arith.maximumf %120, %123 : vector<64x64xf32>
    %c0_80 = arith.constant 0 : index
    %c0_81 = arith.constant 0 : index
    %125 = vector.load %arg5[%c0_80, %c0_81] : memref<3x64xf32, #tpu.memory_space<vmem>>, vector<1x64xf32>
    %c1_82 = arith.constant 1 : index
    %c0_83 = arith.constant 0 : index
    %126 = vector.load %arg5[%c1_82, %c0_83] : memref<3x64xf32, #tpu.memory_space<vmem>>, vector<1x64xf32>
    %c2_84 = arith.constant 2 : index
    %c0_85 = arith.constant 0 : index
    %127 = vector.load %arg5[%c2_84, %c0_85] : memref<3x64xf32, #tpu.memory_space<vmem>>, vector<1x64xf32>
    %128 = vector.broadcast %125 : vector<1x64xf32> to vector<64x64xf32>
    %129 = arith.addf %124, %128 : vector<64x64xf32>
    %cst_86 = arith.constant 0.000000e+00 : f32
    %130 = vector.broadcast %cst_86 : f32 to vector<64x64xf32>
    %131 = arith.maximumf %129, %130 : vector<64x64xf32>
    %132 = vector.broadcast %126 : vector<1x64xf32> to vector<64x64xf32>
    %133 = arith.mulf %131, %132 : vector<64x64xf32>
    %134 = vector.broadcast %127 : vector<1x64xf32> to vector<64x64xf32>
    %135 = arith.addf %133, %134 : vector<64x64xf32>
    %136 = arith.truncf %135 : vector<64x64xf32> to vector<64x64xbf16>
    %137 = vector.extract_strided_slice %136 {offsets = [0, 0], sizes = [32, 64], strides = [1, 1]} : vector<64x64xbf16> to vector<32x64xbf16>
    %c0_87 = arith.constant 0 : index
    %c0_88 = arith.constant 0 : index
    %c0_89 = arith.constant 0 : index
    %138 = vector.load %arg6[%c0_87, %c0_88, %c0_89] : memref<3x64x512xbf16, #tpu.memory_space<vmem>>, vector<1x64x512xbf16>
    %139 = vector.shape_cast %138 : vector<1x64x512xbf16> to vector<64x512xbf16>
    %140 = vector.extract_strided_slice %136 {offsets = [16, 0], sizes = [32, 64], strides = [1, 1]} : vector<64x64xbf16> to vector<32x64xbf16>
    %c1_90 = arith.constant 1 : index
    %c0_91 = arith.constant 0 : index
    %c0_92 = arith.constant 0 : index
    %141 = vector.load %arg6[%c1_90, %c0_91, %c0_92] : memref<3x64x512xbf16, #tpu.memory_space<vmem>>, vector<1x64x512xbf16>
    %142 = vector.shape_cast %141 : vector<1x64x512xbf16> to vector<64x512xbf16>
    %143 = vector.extract_strided_slice %136 {offsets = [32, 0], sizes = [32, 64], strides = [1, 1]} : vector<64x64xbf16> to vector<32x64xbf16>
    %c2_93 = arith.constant 2 : index
    %c0_94 = arith.constant 0 : index
    %c0_95 = arith.constant 0 : index
    %144 = vector.load %arg6[%c2_93, %c0_94, %c0_95] : memref<3x64x512xbf16, #tpu.memory_space<vmem>>, vector<1x64x512xbf16>
    %145 = vector.shape_cast %144 : vector<1x64x512xbf16> to vector<64x512xbf16>
    %cst_96 = arith.constant dense<0.000000e+00> : vector<32x512xf32>
    %146 = tpu.matmul %137, %139, %cst_96 {dimension_numbers = #tpu.dot_dimension_numbers<[1], [0], [0], [1], [0, 0, 1, 1], [], []>} : vector<32x64xbf16>, vector<64x512xbf16>, vector<32x512xf32> -> vector<32x512xf32>
    %cst_97 = arith.constant dense<0.000000e+00> : vector<32x512xf32>
    %147 = tpu.matmul %140, %142, %cst_97 {dimension_numbers = #tpu.dot_dimension_numbers<[1], [0], [0], [1], [0, 0, 1, 1], [], []>} : vector<32x64xbf16>, vector<64x512xbf16>, vector<32x512xf32> -> vector<32x512xf32>
    %148 = arith.addf %146, %147 : vector<32x512xf32>
    %cst_98 = arith.constant dense<0.000000e+00> : vector<32x512xf32>
    %149 = tpu.matmul %143, %145, %cst_98 {dimension_numbers = #tpu.dot_dimension_numbers<[1], [0], [0], [1], [0, 0, 1, 1], [], []>} : vector<32x64xbf16>, vector<64x512xbf16>, vector<32x512xf32> -> vector<32x512xf32>
    %150 = arith.addf %148, %149 : vector<32x512xf32>
    %151 = vector.extract_strided_slice %150 {offsets = [0, 0], sizes = [32, 256], strides = [1, 1]} : vector<32x512xf32> to vector<32x256xf32>
    %152 = vector.extract_strided_slice %150 {offsets = [0, 256], sizes = [32, 256], strides = [1, 1]} : vector<32x512xf32> to vector<32x256xf32>
    %153 = arith.maximumf %151, %152 : vector<32x256xf32>
    %154 = vector.extract_strided_slice %153 {offsets = [0, 0], sizes = [16, 256], strides = [1, 1]} : vector<32x256xf32> to vector<16x256xf32>
    %155 = vector.extract_strided_slice %153 {offsets = [16, 0], sizes = [16, 256], strides = [1, 1]} : vector<32x256xf32> to vector<16x256xf32>
    %156 = arith.maximumf %154, %155 : vector<16x256xf32>
    %c0_99 = arith.constant 0 : index
    %c0_100 = arith.constant 0 : index
    %157 = vector.load %arg7[%c0_99, %c0_100] : memref<3x256xf32, #tpu.memory_space<vmem>>, vector<1x256xf32>
    %c1_101 = arith.constant 1 : index
    %c0_102 = arith.constant 0 : index
    %158 = vector.load %arg7[%c1_101, %c0_102] : memref<3x256xf32, #tpu.memory_space<vmem>>, vector<1x256xf32>
    %c2_103 = arith.constant 2 : index
    %c0_104 = arith.constant 0 : index
    %159 = vector.load %arg7[%c2_103, %c0_104] : memref<3x256xf32, #tpu.memory_space<vmem>>, vector<1x256xf32>
    %160 = vector.broadcast %157 : vector<1x256xf32> to vector<16x256xf32>
    %161 = arith.addf %156, %160 : vector<16x256xf32>
    %cst_105 = arith.constant 0.000000e+00 : f32
    %162 = vector.broadcast %cst_105 : f32 to vector<16x256xf32>
    %163 = arith.maximumf %161, %162 : vector<16x256xf32>
    %164 = vector.broadcast %158 : vector<1x256xf32> to vector<16x256xf32>
    %165 = arith.mulf %163, %164 : vector<16x256xf32>
    %166 = vector.broadcast %159 : vector<1x256xf32> to vector<16x256xf32>
    %167 = arith.addf %165, %166 : vector<16x256xf32>
    %168 = arith.truncf %167 : vector<16x256xf32> to vector<16x256xbf16>
    %c0_106 = arith.constant 0 : index
    %c0_107 = arith.constant 0 : index
    %169 = vector.load %arg8[%c0_106, %c0_107] : memref<256x10xbf16, #tpu.memory_space<vmem>>, vector<256x10xbf16>
    %cst_108 = arith.constant dense<0.000000e+00> : vector<16x10xf32>
    %170 = tpu.matmul %168, %169, %cst_108 {dimension_numbers = #tpu.dot_dimension_numbers<[1], [0], [0], [1], [0, 0, 1, 1], [], []>} : vector<16x256xbf16>, vector<256x10xbf16>, vector<16x10xf32> -> vector<16x10xf32>
    %c0_109 = arith.constant 0 : index
    %c0_110 = arith.constant 0 : index
    %171 = vector.load %arg9[%c0_109, %c0_110] : memref<1x10xf32, #tpu.memory_space<vmem>>, vector<1x10xf32>
    %172 = vector.broadcast %171 : vector<1x10xf32> to vector<16x10xf32>
    %173 = arith.addf %170, %172 : vector<16x10xf32>
    %cst_111 = arith.constant dense<0xFF800000> : vector<16xf32>
    %174 = vector.multi_reduction <maximumf>, %173, %cst_111 [1] : vector<16x10xf32> to vector<16xf32>
    %175 = vector.shape_cast %174 : vector<16xf32> to vector<16x1xf32>
    %176 = vector.broadcast %175 : vector<16x1xf32> to vector<16x10xf32>
    %177 = arith.subf %173, %176 : vector<16x10xf32>
    %178 = math.exp %177 : vector<16x10xf32>
    %cst_112 = arith.constant dense<0.000000e+00> : vector<16xf32>
    %179 = vector.multi_reduction <add>, %178, %cst_112 [1] : vector<16x10xf32> to vector<16xf32>
    %180 = vector.shape_cast %179 : vector<16xf32> to vector<16x1xf32>
    %181 = math.log %180 : vector<16x1xf32>
    %182 = vector.broadcast %181 : vector<16x1xf32> to vector<16x10xf32>
    %183 = arith.subf %177, %182 : vector<16x10xf32>
    %c0_113 = arith.constant 0 : index
    %c0_114 = arith.constant 0 : index
    %184 = vector.load %arg10[%c0_113, %c0_114] : memref<16x10xf32, #tpu.memory_space<vmem>>, vector<16x10xf32>
    tpu.vector_store %arg10[%c0_113, %c0_114], %183 {strides = array<i32>} : memref<16x10xf32, #tpu.memory_space<vmem>>, vector<16x10xf32>,
    return
  }
  func.func @transform_0(%arg0: i32) -> (i32, i32, i32) {
    %c0_i32 = arith.constant 0 : i32
    %c0_i32_0 = arith.constant 0 : i32
    %c0_i32_1 = arith.constant 0 : i32
    return %arg0, %c0_i32, %c0_i32_0 : i32, i32, i32
  }
  func.func @transform_1(%arg0: i32) -> (i32, i32, i32) {
    %c0_i32 = arith.constant 0 : i32
    %c0_i32_0 = arith.constant 0 : i32
    %c0_i32_1 = arith.constant 0 : i32
    %c0_i32_2 = arith.constant 0 : i32
    return %c0_i32, %c0_i32_0, %c0_i32_1 : i32, i32, i32
  }
  func.func @transform_2(%arg0: i32) -> (i32, i32) {
    %c0_i32 = arith.constant 0 : i32
    %c0_i32_0 = arith.constant 0 : i32
    %c0_i32_1 = arith.constant 0 : i32
    return %c0_i32, %c0_i32_0 : i32, i32
  }
  func.func @transform_3(%arg0: i32) -> (i32, i32, i32) {
    %c0_i32 = arith.constant 0 : i32
    %c0_i32_0 = arith.constant 0 : i32
    %c0_i32_1 = arith.constant 0 : i32
    %c0_i32_2 = arith.constant 0 : i32
    return %c0_i32, %c0_i32_0, %c0_i32_1 : i32, i32, i32
  }
  func.func @transform_4(%arg0: i32) -> (i32, i32) {
    %c0_i32 = arith.constant 0 : i32
    %c0_i32_0 = arith.constant 0 : i32
    %c0_i32_1 = arith.constant 0 : i32
    return %c0_i32, %c0_i32_0 : i32, i32
  }
  func.func @transform_5(%arg0: i32) -> (i32, i32, i32) {
    %c0_i32 = arith.constant 0 : i32
    %c0_i32_0 = arith.constant 0 : i32
    %c0_i32_1 = arith.constant 0 : i32
    %c0_i32_2 = arith.constant 0 : i32
    return %c0_i32, %c0_i32_0, %c0_i32_1 : i32, i32, i32
  }
  func.func @transform_6(%arg0: i32) -> (i32, i32) {
    %c0_i32 = arith.constant 0 : i32
    %c0_i32_0 = arith.constant 0 : i32
    %c0_i32_1 = arith.constant 0 : i32
    return %c0_i32, %c0_i32_0 : i32, i32
  }
  func.func @transform_7(%arg0: i32) -> (i32, i32) {
    %c0_i32 = arith.constant 0 : i32
    %c0_i32_0 = arith.constant 0 : i32
    %c0_i32_1 = arith.constant 0 : i32
    return %c0_i32, %c0_i32_0 : i32, i32
  }
  func.func @transform_8(%arg0: i32) -> (i32, i32) {
    %c0_i32 = arith.constant 0 : i32
    %c0_i32_0 = arith.constant 0 : i32
    %c0_i32_1 = arith.constant 0 : i32
    return %c0_i32, %c0_i32_0 : i32, i32
  }
  func.func @transform_9(%arg0: i32) -> (i32, i32) {
    %c0_i32 = arith.constant 0 : i32
    %c0_i32_0 = arith.constant 0 : i32
    return %arg0, %c0_i32 : i32, i32
  }
}

</mosaic_0001>

<bundles_post_ra>
// kernel: net_forward.1
= control target key start
LH: loop header
LB: loop body
LE: loop exit
PB: predicated region body
PF: predicated region fallthrough
CT: control target
= control target key end

     0   :  { %s7687_s30 = smov 0   ;;  %s11583_s0 = inlined_call_operand.vmem [shape: bf16[2,112,112], index: 0, kind: input, shape index: {}]   ;;  %s11584_s1 = inlined_call_operand.vmem [shape: bf16[8,112,384], index: 1, kind: input, shape index: {}]   ;;  %s11585_s2 = inlined_call_operand.vmem [shape: f32[3,192], index: 2, kind: input, shape index: {}]   ;;  %s11586_s3 = inlined_call_operand.vmem [shape: bf16[5,192,128], index: 3, kind: input, shape index: {}]   ;;  %s11587_s4 = inlined_call_operand.vmem [shape: f32[3,64], index: 4, kind: input, shape index: {}]   ;;  %s11588_s5 = inlined_call_operand.vmem [shape: bf16[3,64,512], index: 5, kind: input, shape index: {}]   ;;  %s11589_s6 = inlined_call_operand.vmem [shape: f32[3,256], index: 6, kind: input, shape index: {}]   ;;  %s11590_s7 = inlined_call_operand.vmem [shape: bf16[256,10], index: 7, kind: input, shape index: {}]   ;;  %s11591_s8 = inlined_call_operand.vmem [shape: f32[1,10], index: 8, kind: input, shape index: {}]   ;;  %s11592_s9 = inlined_call_operand.vmem [shape: f32[32,10], index: 9, kind: output, shape index: {}]  }
   0x1 LB: > { %s7693_s10 = sadd.s32 4294967295, %s7634_s30   ;;  %p5535_p0 = scmp.ge.s32.totalorder %s7634_s30, 1  ;;  %s7634_s30 = sphi %s7687_s30, %s19_s30  }
   0x2   : > { %p287_p1 = scmp.lt.s32.totalorder %s7634_s30, 3 }
   0x4   : > { %p288_p2 = pnand %p5535_p0, %p287_p1 }
   0x6   : > { %291 = sbr.rel (%p288_p2) target bundleno = 1978 (0x7ba), region = 56 }
   0xb   : > { %v5665_v0 = vld [vmem:[%s11584_s1 + $0x330] sm:$0xf]  ;;  %v7320_v1 = vld [vmem:[%s11584_s1 + $0x338] sm:$0xf0]  ;;  %v7319_v2 = vld [vmem:[%s11584_s1 + $0x334] sm:$0xf] }
   0xc   : > { %v5666_v3 = vor.u32 %v7320_v1, %v5665_v0  ;;  %v5667_v4 = vld [vmem:[%s11584_s1 + $0x33c] sm:$0xf0]  ;;  %v5673_v5 = vld [vmem:[%s11584_s1 + $0x338] sm:$0xf]  ;;  %v7321_v6 = vld [vmem:[%s11584_s1 + $0x340] sm:$0xf0] }
   0xd   : > { %v5670_v7 = vor.u32 %v7319_v2, %v5667_v4  ;;  %v5674_v8 = vor.u32 %v7321_v6, %v5673_v5  ;;  %v5771_v9 = vld [vmem:[%s11584_s1 + $0x90] sm:$0xf]  ;;  %v7299_v10 = vld [vmem:[%s11584_s1 + $0x98] sm:$0xf0]  ;;  %v5653_v11 = vld [vmem:[%s11584_s1 + $0x318] sm:$0xf] }
   0xe   : > { %568 = vmatpush.bf16.msra.mxu0 %v5666_v3  ;;  %v5772_v12 = vor.u32 %v7299_v10, %v5771_v9  ;;  %v7317_v13 = vld [vmem:[%s11584_s1 + $0x320] sm:$0xf0]  ;;  %v7316_v14 = vld [vmem:[%s11584_s1 + $0x31c] sm:$0xf]  ;;  %v5655_v15 = vld [vmem:[%s11584_s1 + $0x324] sm:$0xf0] }
   0xf   : > { %607 = vmatpush.bf16.msra.mxu1 %v5670_v7  ;;  %646 = vmatpush.bf16.msra.mxu2 %v5674_v8  ;;  %v5654_v16 = vor.u32 %v7317_v13, %v5653_v11  ;;  %v5658_v17 = vor.u32 %v7316_v14, %v5655_v15  ;;  %v5661_v18 = vld [vmem:[%s11584_s1 + $0x320] sm:$0xf]  ;;  %v7318_v19 = vld [vmem:[%s11584_s1 + $0x328] sm:$0xf0]  ;;  %v5759_v20 = vld [vmem:[%s11584_s1 + $0x78] sm:$0xf] }
  0x10   : > { %805 = vmatpush.bf16.msra.mxu3 %v5772_v12  ;;  %v5662_v21 = vor.u32 %v7318_v19, %v5661_v18  ;;  %v7296_v22 = vld [vmem:[%s11584_s1 + $0x80] sm:$0xf0]  ;;  %v5641_v23 = vld [vmem:[%s11584_s1 + $0x300] sm:$0xf]  ;;  %v7314_v24 = vld [vmem:[%s11584_s1 + $0x308] sm:$0xf0] }
  0x11   : > { %v5760_v25 = vor.u32 %v7296_v22, %v5759_v20  ;;  %v7313_v26 = vld [vmem:[%s11584_s1 + $0x304] sm:$0xf]  ;;  %v5643_v27 = vld [vmem:[%s11584_s1 + $0x30c] sm:$0xf0]  ;;  %v5649_v28 = vld [vmem:[%s11584_s1 + $0x308] sm:$0xf]  ;;  %v5642_v29 = vor.u32 %v7314_v24, %v5641_v23 }
  0x12   : > { %569 = vmatpush.bf16.msra.mxu0 %v5654_v16  ;;  %v7315_v30 = vld [vmem:[%s11584_s1 + $0x310] sm:$0xf0]  ;;  %v5747_v31 = vld [vmem:[%s11584_s1 + $0x60] sm:$0xf]  ;;  %v7293_v32 = vld [vmem:[%s11584_s1 + $0x68] sm:$0xf0]  ;;  %v5646_v33 = vor.u32 %v7313_v26, %v5643_v27 }
  0x13   : > { %608 = vmatpush.bf16.msra.mxu1 %v5658_v17  ;;  %647 = vmatpush.bf16.msra.mxu2 %v5662_v21  ;;  %v5650_v34 = vor.u32 %v7315_v30, %v5649_v28  ;;  %v5629_v35 = vld [vmem:[%s11584_s1 + $0x2e8] sm:$0xf]  ;;  %v7311_v36 = vld [vmem:[%s11584_s1 + $0x2f0] sm:$0xf0]  ;;  %v7310_v37 = vld [vmem:[%s11584_s1 + $0x2ec] sm:$0xf]  ;;  %v5748_v38 = vor.u32 %v7293_v32, %v5747_v31 }
  0x14   : > { %806 = vmatpush.bf16.msra.mxu3 %v5760_v25  ;;  %v5631_v39 = vld [vmem:[%s11584_s1 + $0x2f4] sm:$0xf0]  ;;  %v5637_v40 = vld [vmem:[%s11584_s1 + $0x2f0] sm:$0xf]  ;;  %v7312_v41 = vld [vmem:[%s11584_s1 + $0x2f8] sm:$0xf0]  ;;  %v5630_v44 = vor.u32 %v7311_v36, %v5629_v35 }
  0x15   : > { %v5735_v42 = vld [vmem:[%s11584_s1 + $0x48] sm:$0xf]  ;;  %v7290_v43 = vld [vmem:[%s11584_s1 + $0x50] sm:$0xf0]  ;;  %v5634_v45 = vor.u32 %v7310_v37, %v5631_v39  ;;  %v5638_v46 = vor.u32 %v7312_v41, %v5637_v40  ;;  %v5617_v47 = vld [vmem:[%s11584_s1 + $0x2d0] sm:$0xf] }
  0x16   : > { %570 = vmatpush.bf16.msra.mxu0 %v5642_v29  ;;  %v7308_v48 = vld [vmem:[%s11584_s1 + $0x2d8] sm:$0xf0]  ;;  %v7307_v49 = vld [vmem:[%s11584_s1 + $0x2d4] sm:$0xf]  ;;  %v5736_v50 = vor.u32 %v7290_v43, %v5735_v42  ;;  %v5619_v51 = vld [vmem:[%s11584_s1 + $0x2dc] sm:$0xf0] }
  0x17   : > { %609 = vmatpush.bf16.msra.mxu1 %v5646_v33  ;;  %648 = vmatpush.bf16.msra.mxu2 %v5650_v34  ;;  %v5625_v52 = vld [vmem:[%s11584_s1 + $0x2d8] sm:$0xf]  ;;  %v7309_v53 = vld [vmem:[%s11584_s1 + $0x2e0] sm:$0xf0]  ;;  %v5723_v54 = vld [vmem:[%s11584_s1 + $0x30] sm:$0xf]  ;;  %v5618_v56 = vor.u32 %v7308_v48, %v5617_v47  ;;  %v5622_v57 = vor.u32 %v7307_v49, %v5619_v51 }
  0x18   : > { %807 = vmatpush.bf16.msra.mxu3 %v5748_v38  ;;  %v7287_v55 = vld [vmem:[%s11584_s1 + $0x38] sm:$0xf0]  ;;  %v5626_v58 = vor.u32 %v7309_v53, %v5625_v52  ;;  %v5605_v59 = vld [vmem:[%s11584_s1 + $0x2b8] sm:$0xf]  ;;  %v7305_v60 = vld [vmem:[%s11584_s1 + $0x2c0] sm:$0xf0] }
  0x19   : > { %v7304_v61 = vld [vmem:[%s11584_s1 + $0x2bc] sm:$0xf]  ;;  %v5724_v62 = vor.u32 %v7287_v55, %v5723_v54  ;;  %v5607_v63 = vld [vmem:[%s11584_s1 + $0x2c4] sm:$0xf0]  ;;  %v5613_v0 = vld [vmem:[%s11584_s1 + $0x2c0] sm:$0xf]  ;;  %v5606_v4 = vor.u32 %v7305_v60, %v5605_v59 }
  0x1a   : > { %571 = vmatpush.bf16.msra.mxu0 %v5630_v44  ;;  %v7306_v1 = vld [vmem:[%s11584_s1 + $0x2c8] sm:$0xf0]  ;;  %v5711_v2 = vld [vmem:[%s11584_s1 + $0x18] sm:$0xf]  ;;  %v7284_v3 = vld [vmem:[%s11584_s1 + $0x20] sm:$0xf0]  ;;  %v5610_v8 = vor.u32 %v7304_v61, %v5607_v63 }
  0x1b   : > { %610 = vmatpush.bf16.msra.mxu1 %v5634_v45  ;;  %649 = vmatpush.bf16.msra.mxu2 %v5638_v46  ;;  %p323_p3 = scmp.lt.s32.totalorder %s7693_s10, 1  ;;  %v5593_v5 = vld [vmem:[%s11584_s1 + $0x2a0] sm:$0xf]  ;;  %v7302_v6 = vld [vmem:[%s11584_s1 + $0x2a8] sm:$0xf0]  ;;  %v5614_v9 = vor.u32 %v7306_v1, %v5613_v0  ;;  %v5712_v12 = vor.u32 %v7284_v3, %v5711_v2  ;;  %vm548_vm0 = vcmask 916480  }
  0x1c   : > { %808 = vmatpush.bf16.msra.mxu3 %v5736_v50  ;;  %v7301_v7 = vld [vmem:[%s11584_s1 + $0x2a4] sm:$0xf]  ;;  %v5595_v10 = vld [vmem:[%s11584_s1 + $0x2ac] sm:$0xf0]  ;;  %v5601_v11 = vld [vmem:[%s11584_s1 + $0x2a8] sm:$0xf]  ;;  %v5594_v18 = vor.u32 %v7302_v6, %v5593_v5 }
  0x1d   : > { %s324_s22 = scalar_select %p323_p3, %s7693_s10, 1  ;;  %v7303_v13 = vld [vmem:[%s11584_s1 + $0x2b0] sm:$0xf0]  ;;  %v5699_v14 = vld [vmem:[%s11584_s1] sm:$0xf]  ;;  %v5598_v21 = vor.u32 %v7301_v7, %v5595_v10  ;;  %vm993_vm1 = vcmask 523264  }
  0x1e   : > { %572 = vmatpush.bf16.msra.mxu0 %v5618_v56  ;;  %v7281_v15 = vld [vmem:[%s11584_s1 + $0x8] sm:$0xf0]  ;;  %v5929_v16 = vld [vmem:[%s11584_s1 + $0x3d8] sm:$0xf]  ;;  %v7362_v17 = vld [vmem:[%s11584_s1 + $0x3e0] sm:$0xf0]  ;;  %v5602_v22 = vor.u32 %v7303_v13, %v5601_v11 }
  0x1f   : > { %611 = vmatpush.bf16.msra.mxu1 %v5622_v57  ;;  %650 = vmatpush.bf16.msra.mxu2 %v5626_v58  ;;  %s7572_s29 = smul.u32 56, %s324_s22  ;;  %v7361_v19 = vld [vmem:[%s11584_s1 + $0x3dc] sm:$0xf]  ;;  %v5931_v20 = vld [vmem:[%s11584_s1 + $0x3e4] sm:$0xf0]  ;;  %v5700_v25 = vor.u32 %v7281_v15, %v5699_v14  ;;  %v5930_v26 = vor.u32 %v7362_v17, %v5929_v16  ;;  %s7636_s11 = smov 64  }
  0x20   : > { %809 = vmatpush.bf16.msra.mxu3 %v5724_v62  ;;  %v7298_v23 = vld [vmem:[%s11584_s1 + $0x94] sm:$0xf]  ;;  %v5773_v24 = vld [vmem:[%s11584_s1 + $0x9c] sm:$0xf0]  ;;  %v7359_v28 = vld [vmem:[%s11584_s1 + $0x3c8] sm:$0xf0]  ;;  %v5934_v31 = vor.u32 %v7361_v19, %v5931_v20 }
  0x21   : > { %s7882_s21 = scalar_lea.vmem %s11583_s0, %s7572_s29  ;;  %v5917_v27 = vld [vmem:[%s11584_s1 + $0x3c0] sm:$0xf]  ;;  %v7358_v29 = vld [vmem:[%s11584_s1 + $0x3c4] sm:$0xf]  ;;  %v5919_v32 = vld [vmem:[%s11584_s1 + $0x3cc] sm:$0xf0]  ;;  %v5776_v34 = vor.u32 %v7298_v23, %v5773_v24 }
  0x22   : > { %573 = vmatpush.bf16.msra.mxu0 %v5606_v4  ;;  %v7900_v30 = vld [vmem:[%s7882_s21 + $0x8] sm:$0xff]  ;;  %v7906_v33 = vld [vmem:[%s7882_s21] sm:$0xff]  ;;  %v5918_v35 = vor.u32 %v7359_v28, %v5917_v27  ;;  %v7295_v36 = vld [vmem:[%s11584_s1 + $0x7c] sm:$0xf]  ;;  %v5922_v38 = vor.u32 %v7358_v29, %v5919_v32  ;;  %vm5448_vm2 = vcmask 80896   ;;  %s5537_s13 = sshll.u32 %s7693_s10, 1 }
  0x23   : > { %612 = vmatpush.bf16.msra.mxu1 %v5610_v8  ;;  %651 = vmatpush.bf16.msra.mxu2 %v5614_v9  ;;  %v5761_v37 = vld [vmem:[%s11584_s1 + $0x84] sm:$0xf0]  ;;  %v7356_v40 = vld [vmem:[%s11584_s1 + $0x3b0] sm:$0xf0]  ;;  %v7355_v41 = vld [vmem:[%s11584_s1 + $0x3ac] sm:$0xf] }
  0x24   : > { %810 = vmatpush.bf16.msra.mxu3 %v5712_v12  ;;  %v5905_v39 = vld [vmem:[%s11584_s1 + $0x3a8] sm:$0xf]  ;;  %v5907_v42 = vld [vmem:[%s11584_s1 + $0x3b4] sm:$0xf0]  ;;  %v5764_v43 = vor.u32 %v7295_v36, %v5761_v37  ;;  %v7292_v45 = vld [vmem:[%s11584_s1 + $0x64] sm:$0xf] }
  0x25   : > { %v5906_v44 = vor.u32 %v7356_v40, %v5905_v39  ;;  %v5749_v46 = vld [vmem:[%s11584_s1 + $0x6c] sm:$0xf0]  ;;  %v5910_v47 = vor.u32 %v7355_v41, %v5907_v42  ;;  %v7353_v49 = vld [vmem:[%s11584_s1 + $0x398] sm:$0xf0]  ;;  %v7352_v50 = vld [vmem:[%s11584_s1 + $0x394] sm:$0xf] }
  0x26   : > { %574 = vmatpush.bf16.msra.mxu0 %v5594_v18  ;;  %v5893_v48 = vld [vmem:[%s11584_s1 + $0x390] sm:$0xf]  ;;  %v5895_v51 = vld [vmem:[%s11584_s1 + $0x39c] sm:$0xf0]  ;;  %v5752_v52 = vor.u32 %v7292_v45, %v5749_v46  ;;  %v7289_v56 = vld [vmem:[%s11584_s1 + $0x4c] sm:$0xf] }
  0x27   : > { %613 = vmatpush.bf16.msra.mxu1 %v5598_v21  ;;  %652 = vmatpush.bf16.msra.mxu2 %v5602_v22  ;;  %v5894_v53 = vor.u32 %v7353_v49, %v5893_v48  ;;  %v5898_v54 = vor.u32 %v7352_v50, %v5895_v51  ;;  %v7953_v55 = vld [vmem:[%s7882_s21 + $0x10] sm:$0xff]  ;;  %v5737_v57 = vld [vmem:[%s11584_s1 + $0x54] sm:$0xf0]  ;;  %v7350_v60 = vld [vmem:[%s11584_s1 + $0x380] sm:$0xf0]  ;;  %p329_p4 = scmp.lt.s32.totalorder %s5537_s13, 3 }
  0x28   : > { %811 = vmatpush.bf16.msra.mxu3 %v5700_v25  ;;  %v5881_v58 = vld [vmem:[%s11584_s1 + $0x378] sm:$0xf]  ;;  %v5740_v59 = vor.u32 %v7289_v56, %v5737_v57  ;;  %v7349_v61 = vld [vmem:[%s11584_s1 + $0x37c] sm:$0xf]  ;;  %v5883_v62 = vld [vmem:[%s11584_s1 + $0x384] sm:$0xf0] }
  0x29   : > { %5675 = vmatmul.msk.bf16.vlgmr.msra.gmra.mxu0 %vm548_vm0, %v7900_v30  ;;  %v5882_v63 = vor.u32 %v7350_v60, %v5881_v58  ;;  %v5886_v0 = vor.u32 %v7349_v61, %v5883_v62  ;;  %v7286_v1 = vld [vmem:[%s11584_s1 + $0x34] sm:$0xf]  ;;  %v5725_v2 = vld [vmem:[%s11584_s1 + $0x3c] sm:$0xf0]  ;;  %v5779_v3 = vld [vmem:[%s11584_s1 + $0x98] sm:$0xf] }
  0x2a   : > { %5681 = vmatmul.msk.bf16.vlgmr.msra.gmra.mxu1 %vm548_vm0, %v7900_v30  ;;  %5687 = vmatmul.msk.bf16.vlgmr.msra.gmra.mxu2 %vm548_vm0, %v7900_v30  ;;  %v5728_v4 = vor.u32 %v7286_v1, %v5725_v2  ;;  %v7300_v5 = vld [vmem:[%s11584_s1 + $0xa0] sm:$0xf0]  ;;  %v7994_v7 = vld [vmem:[%s7882_s21 + $0x18] sm:$0xff]  ;;  %v5869_v8 = vld [vmem:[%s11584_s1 + $0x360] sm:$0xf]  ;;  %s11925_s13 = smov (!%p329_p4, %s5537_s13), 3 }
  0x2b   : > { %1225 = vmatpush.bf16.msrb.mxu2 %v5930_v26  ;;  %5781 = vmatmul.msk.bf16.vlgmr.msra.gmra.mxu3 %vm548_vm0, %v7906_v33  ;;  %v5780_v6 = vor.u32 %v7300_v5, %v5779_v3  ;;  %v7347_v9 = vld [vmem:[%s11584_s1 + $0x368] sm:$0xf0]  ;;  %v7346_v10 = vld [vmem:[%s11584_s1 + $0x364] sm:$0xf]  ;;  %v5871_v12 = vld [vmem:[%s11584_s1 + $0x36c] sm:$0xf0] }
  0x2c   : > { %1264 = vmatpush.bf16.msrb.mxu3 %v5934_v31  ;;  %844 = vmatpush.bf16.msrb.mxu0 %v5776_v34  ;;  %v5870_v11 = vor.u32 %v7347_v9, %v5869_v8  ;;  %v5767_v13 = vld [vmem:[%s11584_s1 + $0x80] sm:$0xf]  ;;  %v7297_v14 = vld [vmem:[%s11584_s1 + $0x88] sm:$0xf0]  ;;  %v5874_v15 = vor.u32 %v7346_v10, %v5871_v12  ;;  %v7283_v17 = vld [vmem:[%s11584_s1 + $0x1c] sm:$0xf] }
  0x2d   : > { %883 = vmatpush.bf16.msrb.mxu1 %v5780_v6  ;;  %v5768_v16 = vor.u32 %v7297_v14, %v5767_v13  ;;  %v5713_v18 = vld [vmem:[%s11584_s1 + $0x24] sm:$0xf0]  ;;  %v7294_v21 = vld [vmem:[%s11584_s1 + $0x70] sm:$0xf0]  ;;  %v8035_v23 = vld [vmem:[%s7882_s21 + $0x20] sm:$0xff]  ;;  %s5538_s14 = sshll.u32 %s11925_s13, 3 }
  0x2e   : > { %v5755_v19 = vld [vmem:[%s11584_s1 + $0x68] sm:$0xf]  ;;  %v5716_v20 = vor.u32 %v7283_v17, %v5713_v18  ;;  %v5743_v24 = vld [vmem:[%s11584_s1 + $0x50] sm:$0xf]  ;;  %v7291_v25 = vld [vmem:[%s11584_s1 + $0x58] sm:$0xf0]  ;;  %s332_s17 = scalar_lea.vmem %s11592_s9, %s5538_s14 }
  0x2f   : > { %1226 = vmatpush.bf16.msrb.mxu2 %v5918_v35  ;;  %v5756_v22 = vor.u32 %v7294_v21, %v5755_v19  ;;  %v5744_v26 = vor.u32 %v7291_v25, %v5743_v24  ;;  %v5857_v27 = vld [vmem:[%s11584_s1 + $0x348] sm:$0xf]  ;;  %v7344_v28 = vld [vmem:[%s11584_s1 + $0x350] sm:$0xf0]  ;;  %v7343_v29 = vld [vmem:[%s11584_s1 + $0x34c] sm:$0xf] }
  0x30   : > { %1265 = vmatpush.bf16.msrb.mxu3 %v5922_v38  ;;  %845 = vmatpush.bf16.msrb.mxu0 %v5764_v43  ;;  %v5858_v31 = vor.u32 %v7344_v28, %v5857_v27  ;;  %v5859_v32 = vld [vmem:[%s11584_s1 + $0x354] sm:$0xf0]  ;;  %v7288_v35 = vld [vmem:[%s11584_s1 + $0x40] sm:$0xf0]  ;;  %v5701_v39 = vld [vmem:[%s11584_s1 + $0xc] sm:$0xf0] }
  0x31   : > { %884 = vmatpush.bf16.msrb.mxu1 %v5768_v16  ;;  %v5731_v34 = vld [vmem:[%s11584_s1 + $0x38] sm:$0xf]  ;;  %v5862_v36 = vor.u32 %v7343_v29, %v5859_v32  ;;  %v7280_v38 = vld [vmem:[%s11584_s1 + $0x4] sm:$0xf]  ;;  %v5719_v40 = vld [vmem:[%s11584_s1 + $0x20] sm:$0xf] }
  0x32   : > { %v5732_v37 = vor.u32 %v7288_v35, %v5731_v34  ;;  %v5704_v41 = vor.u32 %v7280_v38, %v5701_v39  ;;  %v7285_v42 = vld [vmem:[%s11584_s1 + $0x28] sm:$0xf0]  ;;  %v7282_v45 = vld [vmem:[%s11584_s1 + $0x10] sm:$0xf0]  ;;  %v7340_v48 = vld [vmem:[%s11584_s1 + $0x13c] sm:$0xf] }
  0x33   : > { %1227 = vmatpush.bf16.msrb.mxu2 %v5906_v44  ;;  %v5720_v43 = vor.u32 %v7285_v42, %v5719_v40  ;;  %v5707_v44 = vld [vmem:[%s11584_s1 + $0x8] sm:$0xf]  ;;  %v6039_v50 = vld [vmem:[%s11584_s1 + $0x140] sm:$0xf]  ;;  %v7337_v58 = vld [vmem:[%s11584_s1 + $0x124] sm:$0xf] }
  0x34   : > { %1266 = vmatpush.bf16.msrb.mxu3 %v5910_v47  ;;  %846 = vmatpush.bf16.msrb.mxu0 %v5752_v52  ;;  %v5708_v46 = vor.u32 %v7282_v45, %v5707_v44  ;;  %v8088_v47 = vld [vmem:[%s7882_s21 + $0x28] sm:$0xff]  ;;  %v7339_v62 = vld [vmem:[%s11584_s1 + $0x130] sm:$0xf0]  ;;  %v6009_v5 = vld [vmem:[%s11584_s1 + $0x114] sm:$0xf0] }
  0x35   : > { %885 = vmatpush.bf16.msrb.mxu1 %v5756_v22  ;;  %v6033_v49 = vld [vmem:[%s11584_s1 + $0x144] sm:$0xf0]  ;;  %v7342_v52 = vld [vmem:[%s11584_s1 + $0x148] sm:$0xf0]  ;;  %v7360_v2 = vld [vmem:[%s11584_s1 + $0x3d0] sm:$0xf0] }
  0x36   : > { %v6036_v51 = vor.u32 %v7340_v48, %v6033_v49  ;;  %v6040_v56 = vor.u32 %v7342_v52, %v6039_v50  ;;  %v6027_v60 = vld [vmem:[%s11584_s1 + $0x128] sm:$0xf]  ;;  %v7334_v3 = vld [vmem:[%s11584_s1 + $0x10c] sm:$0xf]  ;;  %v6015_v6 = vld [vmem:[%s11584_s1 + $0x110] sm:$0xf] }
  0x37   : > { %1228 = vmatpush.bf16.msrb.mxu2 %v5894_v53  ;;  %v5937_v53 = vld [vmem:[%s11584_s1 + $0x3e0] sm:$0xf]  ;;  %v5925_v1 = vld [vmem:[%s11584_s1 + $0x3c8] sm:$0xf]  ;;  %v7336_v8 = vld [vmem:[%s11584_s1 + $0x118] sm:$0xf0]  ;;  %v6012_v9 = vor.u32 %v7334_v3, %v6009_v5 }
  0x38   : > { %1267 = vmatpush.bf16.msrb.mxu3 %v5898_v54  ;;  %847 = vmatpush.bf16.msrb.mxu0 %v5740_v59  ;;  %v7363_v54 = vld [vmem:[%s11584_s1 + $0x3e8] sm:$0xf0]  ;;  %v6021_v59 = vld [vmem:[%s11584_s1 + $0x12c] sm:$0xf0]  ;;  %v6016_v10 = vor.u32 %v7336_v8, %v6015_v6  ;;  %v7357_v12 = vld [vmem:[%s11584_s1 + $0x3b8] sm:$0xf0] }
  0x39   : > { %5676 = vmatmul.msk.bf16.gmra.mxu0 %vm548_vm0, %v7953_v55  ;;  %886 = vmatpush.bf16.msrb.mxu1 %v5744_v26  ;;  %v5938_v57 = vor.u32 %v7363_v54, %v5937_v53  ;;  %v6024_v61 = vor.u32 %v7337_v58, %v6021_v59  ;;  %v7331_v14 = vld [vmem:[%s11584_s1 + $0xf4] sm:$0xf]  ;;  %v6003_v16 = vld [vmem:[%s11584_s1 + $0xf8] sm:$0xf]  ;;  %v7333_v18 = vld [vmem:[%s11584_s1 + $0x100] sm:$0xf0] }
  0x3a   : > { %5682 = vmatmul.msk.bf16.gmra.mxu1 %vm548_vm0, %v7953_v55  ;;  %5688 = vmatmul.msk.bf16.gmra.mxu2 %vm548_vm0, %v7953_v55  ;;  %v6004_v19 = vor.u32 %v7333_v18, %v6003_v16  ;;  %v7354_v21 = vld [vmem:[%s11584_s1 + $0x3a0] sm:$0xf0]  ;;  %v7328_v24 = vld [vmem:[%s11584_s1 + $0xdc] sm:$0xf]  ;;  %v5985_v25 = vld [vmem:[%s11584_s1 + $0xe4] sm:$0xf0] }
  0x3b   : > { %5782 = vmatmul.msk.bf16.gmra.mxu3 %vm548_vm0, %v7900_v30  ;;  %1229 = vmatpush.bf16.msrb.mxu2 %v5882_v63  ;;  %v6028_v63 = vor.u32 %v7339_v62, %v6027_v60  ;;  %v5991_v26 = vld [vmem:[%s11584_s1 + $0xe0] sm:$0xf]  ;;  %v5988_v27 = vor.u32 %v7328_v24, %v5985_v25  ;;  %v7330_v28 = vld [vmem:[%s11584_s1 + $0xe8] sm:$0xf0]  ;;  %v7341_v38 = vld [vmem:[%s11584_s1 + $0x140] sm:$0xf0] }
  0x3c   : > { %1268 = vmatpush.bf16.msrb.mxu3 %v5886_v0  ;;  %848 = vmatpush.bf16.msrb.mxu0 %v5728_v4  ;;  %v8129_v0 = vld [vmem:[%s7882_s21 + $0x30] sm:$0xff]  ;;  %v5926_v4 = vor.u32 %v7360_v2, %v5925_v1  ;;  %v5992_v29 = vor.u32 %v7330_v28, %v5991_v26  ;;  %v5889_v34 = vld [vmem:[%s11584_s1 + $0x380] sm:$0xf]  ;;  %v7351_v35 = vld [vmem:[%s11584_s1 + $0x388] sm:$0xf0] }
  0x3d   : > { %887 = vmatpush.bf16.msrb.mxu1 %v5732_v37  ;;  %v5890_v37 = vor.u32 %v7351_v35, %v5889_v34  ;;  %v7325_v45 = vld [vmem:[%s11584_s1 + $0xc4] sm:$0xf]  ;;  %v5979_v48 = vld [vmem:[%s11584_s1 + $0xc8] sm:$0xf]  ;;  %v7327_v50 = vld [vmem:[%s11584_s1 + $0xd0] sm:$0xf0] }
  0x3e   : > { %v7338_v52 = vld [vmem:[%s11584_s1 + $0x128] sm:$0xf0]  ;;  %v5980_v53 = vor.u32 %v7327_v50, %v5979_v48  ;;  %v7335_v58 = vld [vmem:[%s11584_s1 + $0x110] sm:$0xf0]  ;;  %v5877_v1 = vld [vmem:[%s11584_s1 + $0x368] sm:$0xf] }
  0x3f   : > { %1230 = vmatpush.bf16.msrb.mxu2 %v5870_v11  ;;  %v5913_v11 = vld [vmem:[%s11584_s1 + $0x3b0] sm:$0xf]  ;;  %v7348_v2 = vld [vmem:[%s11584_s1 + $0x370] sm:$0xf0]  ;;  %v7332_v5 = vld [vmem:[%s11584_s1 + $0xf8] sm:$0xf0] }
  0x40   : > { %1269 = vmatpush.bf16.msrb.mxu3 %v5874_v15  ;;  %849 = vmatpush.bf16.msrb.mxu0 %v5716_v20  ;;  %v5914_v13 = vor.u32 %v7357_v12, %v5913_v11  ;;  %v5997_v15 = vld [vmem:[%s11584_s1 + $0xfc] sm:$0xf0]  ;;  %v5901_v20 = vld [vmem:[%s11584_s1 + $0x398] sm:$0xf]  ;;  %v5878_v3 = vor.u32 %v7348_v2, %v5877_v1  ;;  %v7322_v16 = vld [vmem:[%s11584_s1 + $0xac] sm:$0xf] }
  0x41   : > { %888 = vmatpush.bf16.msrb.mxu1 %v5720_v43  ;;  %v6000_v17 = vor.u32 %v7331_v14, %v5997_v15  ;;  %v5902_v22 = vor.u32 %v7354_v21, %v5901_v20  ;;  %v5967_v18 = vld [vmem:[%s11584_s1 + $0xb0] sm:$0xf]  ;;  %v7324_v20 = vld [vmem:[%s11584_s1 + $0xb8] sm:$0xf0]  ;;  %v5971_v26 = vld [vmem:[%s11584_s1 + $0xc0] sm:$0xf] }
  0x42   : > { %v5865_v21 = vld [vmem:[%s11584_s1 + $0x350] sm:$0xf]  ;;  %v5968_v24 = vor.u32 %v7324_v20, %v5967_v18  ;;  %v7323_v34 = vld [vmem:[%s11584_s1 + $0xb0] sm:$0xf0]  ;;  %v7383_v48 = vld [vmem:[%s11584_s1 + $0x1e8] sm:$0xf0] }
  0x43   : > { %1231 = vmatpush.bf16.msrb.mxu2 %v5858_v31  ;;  %v7401_v20 = vld [vmem:[%s11584_s1 + $0x470] sm:$0xf0] }
  0x44   : > { %1270 = vmatpush.bf16.msrb.mxu3 %v5862_v36  ;;  %850 = vmatpush.bf16.msrb.mxu0 %v5704_v41  ;;  %v6031_v36 = vld [vmem:[%s11584_s1 + $0x138] sm:$0xf] }
  0x45   : > { %889 = vmatpush.bf16.msrb.mxu1 %v5708_v46  ;;  %v6032_v39 = vor.u32 %v7341_v38, %v6031_v36  ;;  %v5973_v46 = vld [vmem:[%s11584_s1 + $0xcc] sm:$0xf0] }
  0x46   : > { %v5976_v49 = vor.u32 %v7325_v45, %v5973_v46  ;;  %v6293_v45 = vld [vmem:[%s11584_s1 + $0x1e0] sm:$0xf] }
  0x47   : > { %1493 = vmatpush.bf16.msra.mxu2 %v6036_v51  ;;  %v6019_v51 = vld [vmem:[%s11584_s1 + $0x120] sm:$0xf]  ;;  %v6294_v50 = vor.u32 %v7383_v48, %v6293_v45 }
  0x48   : > { %1532 = vmatpush.bf16.msra.mxu3 %v6040_v56  ;;  %1303 = vmatpush.bf16.msra.mxu0 %v5938_v57  ;;  %v6020_v54 = vor.u32 %v7338_v52, %v6019_v51  ;;  %v6007_v57 = vld [vmem:[%s11584_s1 + $0x108] sm:$0xf] }
  0x49   : > { %5677 = vmatmul.msk.bf16.gmra.mxu0 %vm548_vm0, %v7994_v7  ;;  %1454 = vmatpush.bf16.msra.mxu1 %v6032_v39 }
  0x4a   : > { %5683 = vmatmul.msk.bf16.gmra.mxu1 %vm548_vm0, %v7994_v7  ;;  %5689 = vmatmul.msk.bf16.gmra.mxu2 %vm548_vm0, %v7994_v7 }
  0x4b   : > { %5783 = vmatmul.msk.bf16.gmra.mxu3 %vm548_vm0, %v7953_v55  ;;  %1494 = vmatpush.bf16.msra.mxu2 %v6024_v61  ;;  %v6008_v61 = vor.u32 %v7335_v58, %v6007_v57  ;;  %v6191_v57 = vld [vmem:[%s11584_s1 + $0x480] sm:$0xf]  ;;  %v7404_v58 = vld [vmem:[%s11584_s1 + $0x488] sm:$0xf0] }
  0x4c   : > { %1533 = vmatpush.bf16.msra.mxu3 %v6028_v63  ;;  %1304 = vmatpush.bf16.msra.mxu0 %v5926_v4  ;;  %v5995_v4 = vld [vmem:[%s11584_s1 + $0xf0] sm:$0xf] }
  0x4d   : > { %1455 = vmatpush.bf16.msra.mxu1 %v6020_v54  ;;  %v5996_v6 = vor.u32 %v7332_v5, %v5995_v4  ;;  %v6187_v4 = vld [vmem:[%s11584_s1 + $0x470] sm:$0xf]  ;;  %v7402_v5 = vld [vmem:[%s11584_s1 + $0x478] sm:$0xf0] }
  0x4f   : > { %1495 = vmatpush.bf16.msra.mxu2 %v6012_v9  ;;  %v5983_v9 = vld [vmem:[%s11584_s1 + $0xd8] sm:$0xf] }
  0x50   : > { %1534 = vmatpush.bf16.msra.mxu3 %v6016_v10  ;;  %1305 = vmatpush.bf16.msra.mxu0 %v5914_v13  ;;  %v7329_v10 = vld [vmem:[%s11584_s1 + $0xe0] sm:$0xf0] }
  0x51   : > { %1456 = vmatpush.bf16.msra.mxu1 %v6008_v61  ;;  %v5984_v13 = vor.u32 %v7329_v10, %v5983_v9  ;;  %v6188_v9 = vor.u32 %v7402_v5, %v6187_v4  ;;  %v7380_v10 = vld [vmem:[%s11584_s1 + $0x1d0] sm:$0xf0] }
  0x53   : > { %1496 = vmatpush.bf16.msra.mxu2 %v6000_v17  ;;  %v5961_v17 = vld [vmem:[%s11584_s1 + $0xb4] sm:$0xf0] }
  0x54   : > { %1535 = vmatpush.bf16.msra.mxu3 %v6004_v19  ;;  %1306 = vmatpush.bf16.msra.mxu0 %v5902_v22  ;;  %v5964_v19 = vor.u32 %v7322_v16, %v5961_v17  ;;  %v7345_v22 = vld [vmem:[%s11584_s1 + $0x358] sm:$0xf0] }
  0x55   : > { %1457 = vmatpush.bf16.msra.mxu1 %v5996_v6  ;;  %v5866_v25 = vor.u32 %v7345_v22, %v5865_v21  ;;  %v6281_v6 = vld [vmem:[%s11584_s1 + $0x1c8] sm:$0xf] }
  0x57   : > { %1497 = vmatpush.bf16.msra.mxu2 %v5988_v27  ;;  %v7326_v27 = vld [vmem:[%s11584_s1 + $0xc8] sm:$0xf0] }
  0x58   : > { %1536 = vmatpush.bf16.msra.mxu3 %v5992_v29  ;;  %1307 = vmatpush.bf16.msra.mxu0 %v5890_v37  ;;  %v5972_v28 = vor.u32 %v7326_v27, %v5971_v26 }
  0x59   : > { %5678 = vmatmul.msk.bf16.gmra.mxu0 %vm548_vm0, %v8035_v23  ;;  %1458 = vmatpush.bf16.msra.mxu1 %v5984_v13 }
  0x5a   : > { %5684 = vmatmul.msk.bf16.gmra.mxu1 %vm548_vm0, %v8035_v23  ;;  %5690 = vmatmul.msk.bf16.gmra.mxu2 %vm548_vm0, %v8035_v23 }
  0x5b   : > { %5784 = vmatmul.msk.bf16.gmra.mxu3 %vm548_vm0, %v7994_v7  ;;  %1498 = vmatpush.bf16.msra.mxu2 %v5976_v49 }
  0x5c   : > { %1537 = vmatpush.bf16.msra.mxu3 %v5980_v53  ;;  %1308 = vmatpush.bf16.msra.mxu0 %v5878_v3 }
  0x5d   : > { %1459 = vmatpush.bf16.msra.mxu1 %v5972_v28  ;;  %v6175_v28 = vld [vmem:[%s11584_s1 + $0x458] sm:$0xf] }
  0x5f   : > { %1499 = vmatpush.bf16.msra.mxu2 %v5964_v19  ;;  %v6179_v19 = vld [vmem:[%s11584_s1 + $0x468] sm:$0xf] }
  0x60   : > { %1538 = vmatpush.bf16.msra.mxu3 %v5968_v24  ;;  %1309 = vmatpush.bf16.msra.mxu0 %v5866_v25  ;;  %v6180_v21 = vor.u32 %v7401_v20, %v6179_v19 }
  0x69   : > { %5679 = vmatmul.msk.bf16.gmra.mxu0 %vm548_vm0, %v8088_v47 }
  0x6a   : > { %5685 = vmatmul.msk.bf16.gmra.mxu1 %vm548_vm0, %v8088_v47  ;;  %5691 = vmatmul.msk.bf16.gmra.mxu2 %vm548_vm0, %v8088_v47 }
  0x6b   : > { %5785 = vmatmul.msk.bf16.gmra.mxu3 %vm548_vm0, %v8035_v23 }
  0x79   : > { %5680 = vmatmul.msk.bf16.gmra.mxu0 %vm548_vm0, %v8129_v0 }
  0x7a   : > { %5686 = vmatmul.msk.bf16.gmra.mxu1 %vm548_vm0, %v8129_v0  ;;  %5692 = vmatmul.msk.bf16.gmra.mxu2 %vm548_vm0, %v8129_v0 }
  0x7b   : > { %5786 = vmatmul.msk.bf16.gmra.mxu3 %vm548_vm0, %v8088_v47 }
  0x89   : > { %5787 = vmatmul.msk.bf16.vlgmr.msrb.gmra.mxu0 %vm548_vm0, %v7906_v33 }
  0x8a   : > { %5793 = vmatmul.msk.bf16.vlgmr.msrb.gmra.mxu1 %vm548_vm0, %v7906_v33  ;;  %5939 = vmatmul.msk.bf16.vlgmr.msrb.gmra.mxu2 %vm548_vm0, %v7900_v30 }
  0x8b   : > { %5945 = vmatmul.msk.bf16.vlgmr.msrb.gmra.mxu3 %vm548_vm0, %v7900_v30 }
  0x8c   : > { %2242 = vmatpush.bf16.msrb.mxu3 %v6294_v50 }
  0x99   : > { %5788 = vmatmul.msk.bf16.gmra.mxu0 %vm548_vm0, %v7900_v30 }
  0x9a   : > { %5794 = vmatmul.msk.bf16.gmra.mxu1 %vm548_vm0, %v7900_v30  ;;  %5940 = vmatmul.msk.bf16.gmra.mxu2 %vm548_vm0, %v7953_v55 }
  0x9b   : > { %5946 = vmatmul.msk.bf16.gmra.mxu3 %vm548_vm0, %v7953_v55 }
  0xa6   : > { %v576_v31 = vpop.f32.mrf.mxu0 }
  0xa7   : > { %v8209_v32 = vpop.f32.mrf.mxu1 }
  0xa9   : > { %5789 = vmatmul.msk.bf16.gmra.mxu0 %vm548_vm0, %v7953_v55 }
  0xaa   : > { %5795 = vmatmul.msk.bf16.gmra.mxu1 %vm548_vm0, %v7953_v55  ;;  %5941 = vmatmul.msk.bf16.gmra.mxu2 %vm548_vm0, %v7994_v7 }
  0xab   : > { %5947 = vmatmul.msk.bf16.gmra.mxu3 %vm548_vm0, %v7994_v7 }
  0xad   : > { %v8231_v40 = vpop.f32.mrf.mxu2 }
  0xae   : > { %v813_v41 = vpop.f32.mrf.mxu3  ;;  %v578_v42 = vpop.f32.mrf.mxu0 }
  0xaf   : > { %v8233_v43 = vadd.f32 %v813_v41, %v576_v31  ;;  %v8235_v44 = vpop.f32.mrf.mxu1  ;;  %v5959_v31 = vld [vmem:[%s11584_s1 + $0xa8] sm:$0xf] }
  0xb0   : > { %v5960_v37 = vor.u32 %v7323_v34, %v5959_v31  ;;  %v6199_v41 = vld [vmem:[%s11584_s1 + $0x488] sm:$0xf]  ;;  %v7399_v31 = vld [vmem:[%s11584_s1 + $0x460] sm:$0xf0]  ;;  %v6269_v34 = vld [vmem:[%s11584_s1 + $0x1b0] sm:$0xf] }
  0xb2   : > { %1460 = vmatpush.bf16.msra.mxu1 %v5960_v37 }
  0xb5   : > { %v8255_v56 = vpop.f32.mrf.mxu2 }
  0xb6   : > { %v815_v59 = vpop.f32.mrf.mxu3  ;;  %v581_v60 = vpop.f32.mrf.mxu0 }
  0xb7   : > { %v8263_v62 = vadd.f32 %v815_v59, %v578_v42  ;;  %v8265_v63 = vpop.f32.mrf.mxu1  ;;  %v7405_v42 = vld [vmem:[%s11584_s1 + $0x490] sm:$0xf0]  ;;  %v6192_v59 = vor.u32 %v7404_v58, %v6191_v57  ;;  %v7396_v57 = vld [vmem:[%s11584_s1 + $0x448] sm:$0xf0]  ;;  %v6257_v58 = vld [vmem:[%s11584_s1 + $0x198] sm:$0xf] }
  0xb8   : > { %v6200_v46 = vor.u32 %v7405_v42, %v6199_v41  ;;  %v6167_v41 = vld [vmem:[%s11584_s1 + $0x450] sm:$0xf]  ;;  %v7398_v42 = vld [vmem:[%s11584_s1 + $0x458] sm:$0xf0] }
  0xb9   : > { %5790 = vmatmul.msk.bf16.gmra.mxu0 %vm548_vm0, %v7994_v7  ;;  %v6168_v45 = vor.u32 %v7398_v42, %v6167_v41 }
  0xba   : > { %5796 = vmatmul.msk.bf16.gmra.mxu1 %vm548_vm0, %v7994_v7  ;;  %5942 = vmatmul.msk.bf16.gmra.mxu2 %vm548_vm0, %v8035_v23 }
  0xbb   : > { %5948 = vmatmul.msk.bf16.gmra.mxu3 %vm548_vm0, %v8035_v23  ;;  %2091 = vmatpush.bf16.msrb.mxu2 %v6200_v46 }
  0xbc   : > { %2013 = vmatpush.bf16.msrb.mxu0 %v6192_v59 }
  0xbd   : > { %v8287_v8 = vpop.f32.mrf.mxu2 }
  0xbe   : > { %v818_v11 = vpop.f32.mrf.mxu3  ;;  %v583_v12 = vpop.f32.mrf.mxu0 }
  0xbf   : > { %v8295_v14 = vadd.f32 %v818_v11, %v581_v60  ;;  %v8297_v15 = vpop.f32.mrf.mxu1  ;;  %v6282_v11 = vor.u32 %v7380_v10, %v6281_v6  ;;  %2092 = vmatpush.bf16.msrb.mxu2 %v6188_v9 }
  0xc0   : > { %2014 = vmatpush.bf16.msrb.mxu0 %v6180_v21 }
  0xc1   : > { %2243 = vmatpush.bf16.msrb.mxu3 %v6282_v11  ;;  %v6155_v11 = vld [vmem:[%s11584_s1 + $0x438] sm:$0xf] }
  0xc4   : > { %2015 = vmatpush.bf16.msrb.mxu0 %v6168_v45 }
  0xc5   : > { %v8323_v29 = vpop.f32.mrf.mxu2 }
  0xc6   : > { %v820_v35 = vpop.f32.mrf.mxu3  ;;  %v586_v36 = vpop.f32.mrf.mxu0 }
  0xc7   : > { %v8331_v38 = vadd.f32 %v820_v35, %v583_v12  ;;  %v8333_v39 = vpop.f32.mrf.mxu1  ;;  %v6176_v35 = vor.u32 %v7399_v31, %v6175_v28  ;;  %v7393_v28 = vld [vmem:[%s11584_s1 + $0x430] sm:$0xf0]  ;;  %v6245_v31 = vld [vmem:[%s11584_s1 + $0x180] sm:$0xf] }
  0xc9   : > { %5791 = vmatmul.msk.bf16.gmra.mxu0 %vm548_vm0, %v8035_v23  ;;  %2093 = vmatpush.bf16.msrb.mxu2 %v6176_v35  ;;  %v7371_v35 = vld [vmem:[%s11584_s1 + $0x188] sm:$0xf0] }
  0xca   : > { %5797 = vmatmul.msk.bf16.gmra.mxu1 %vm548_vm0, %v8035_v23  ;;  %5943 = vmatmul.msk.bf16.gmra.mxu2 %vm548_vm0, %v8088_v47 }
  0xcb   : > { %5949 = vmatmul.msk.bf16.gmra.mxu3 %vm548_vm0, %v8088_v47 }
  0xcd   : > { %v8355_v49 = vpop.f32.mrf.mxu2 }
  0xce   : > { %v823_v51 = vpop.f32.mrf.mxu3  ;;  %v588_v52 = vpop.f32.mrf.mxu0 }
  0xcf   : > { %v8357_v53 = vadd.f32 %v823_v51, %v586_v36  ;;  %v8359_v54 = vpop.f32.mrf.mxu1  ;;  %v7377_v36 = vld [vmem:[%s11584_s1 + $0x1b8] sm:$0xf0] }
  0xd0   : > { %v6270_v37 = vor.u32 %v7377_v36, %v6269_v34  ;;  %v6246_v36 = vor.u32 %v7371_v35, %v6245_v31  ;;  %v6181_v31 = vld [vmem:[%s11584_s1 + $0x474] sm:$0xf0] }
  0xd2   : > { %2244 = vmatpush.bf16.msrb.mxu3 %v6270_v37 }
  0xd5   : > { %v8367_v60 = vpop.f32.mrf.mxu2 }
  0xd6   : > { %v825_v61 = vpop.f32.mrf.mxu3  ;;  %v591_v1 = vpop.f32.mrf.mxu0 }
  0xd7   : > { %v8369_v2 = vadd.f32 %v825_v61, %v588_v52  ;;  %v8371_v3 = vpop.f32.mrf.mxu1  ;;  %v7374_v61 = vld [vmem:[%s11584_s1 + $0x1a0] sm:$0xf0] }
  0xd9   : > { %11649 = vst [vmem:[#allocation2_spill] sm:$0xff] %v8369_v2  ;;  %5792 = vmatmul.msk.bf16.gmra.mxu0 %vm548_vm0, %v8088_v47 }
  0xda   : > { %5798 = vmatmul.msk.bf16.gmra.mxu1 %vm548_vm0, %v8088_v47  ;;  %5944 = vmatmul.msk.bf16.gmra.mxu2 %vm548_vm0, %v8129_v0 }
  0xdb   : > { %5950 = vmatmul.msk.bf16.gmra.mxu3 %vm548_vm0, %v8129_v0 }
  0xdd   : > { %v8393_v12 = vpop.f32.mrf.mxu2 }
  0xde   : > { %v828_v13 = vpop.f32.mrf.mxu3  ;;  %v593_v16 = vpop.f32.mrf.mxu0 }
  0xdf   : > { %v8395_v17 = vadd.f32 %v828_v13, %v591_v1  ;;  %v8397_v18 = vpop.f32.mrf.mxu1  ;;  %v6258_v1 = vor.u32 %v7374_v61, %v6257_v58  ;;  %v7395_v13 = vld [vmem:[%s11584_s1 + $0x440] sm:$0xf0] }
  0xe0   : > { %v7403_v58 = vld [vmem:[%s11584_s1 + $0x484] sm:$0xf] }
  0xe1   : > { %2245 = vmatpush.bf16.msrb.mxu3 %v6258_v1 }
  0xe5   : > { %v8405_v22 = vpop.f32.mrf.mxu2  ;;  %2246 = vmatpush.bf16.msrb.mxu3 %v6246_v36 }
  0xe6   : > { %v830_v24 = vpop.f32.mrf.mxu3  ;;  %v596_v25 = vpop.f32.mrf.mxu0 }
  0xe7   : > { %v8407_v26 = vadd.f32 %v830_v24, %v593_v16  ;;  %v8409_v27 = vpop.f32.mrf.mxu1  ;;  %v6156_v16 = vor.u32 %v7395_v13, %v6155_v11 }
  0xe8   : > { %11651 = vst [vmem:[#allocation4_spill] sm:$0xff] %v8409_v27 }
  0xe9   : > { %11650 = vst [vmem:[#allocation3_spill] sm:$0xff] %v8407_v26  ;;  %5951 = vmatmul.msk.bf16.vlgmr.msra.gmra.mxu0 %vm548_vm0, %v7900_v30 }
  0xea   : > { %6041 = vmatmul.msk.bf16.vlgmr.msra.gmra.mxu1 %vm548_vm0, %v7906_v33  ;;  %6047 = vmatmul.msk.bf16.vlgmr.msra.gmra.mxu2 %vm548_vm0, %v7906_v33 }
  0xeb   : > { %6053 = vmatmul.msk.bf16.vlgmr.msra.gmra.mxu3 %vm548_vm0, %v7906_v33  ;;  %v6163_v33 = vld [vmem:[%s11584_s1 + $0x440] sm:$0xf]  ;;  %2016 = vmatpush.bf16.msrb.mxu0 %v6156_v16 }
  0xec   : > { %v6164_v59 = vor.u32 %v7396_v57, %v6163_v33  ;;  %v6143_v33 = vld [vmem:[%s11584_s1 + $0x420] sm:$0xf]  ;;  %v7392_v57 = vld [vmem:[%s11584_s1 + $0x428] sm:$0xf0] }
  0xed   : > { %v8437_v46 = vpop.f32.mrf.mxu2 }
  0xee   : > { %11652 = vst [vmem:[#allocation5_spill] sm:$0xff] %v8437_v46  ;;  %v833_v48 = vpop.f32.mrf.mxu3  ;;  %v598_v50 = vpop.f32.mrf.mxu0  ;;  %2094 = vmatpush.bf16.msrb.mxu2 %v6164_v59  ;;  %v6193_v59 = vld [vmem:[%s11584_s1 + $0x48c] sm:$0xf0] }
  0xef   : > { %v8439_v51 = vadd.f32 %v833_v48, %v596_v25  ;;  %v8441_v52 = vpop.f32.mrf.mxu1  ;;  %v6196_v61 = vor.u32 %v7403_v58, %v6193_v59 }
  0xf0   : > { %11654 = vst [vmem:[#allocation7_spill] sm:$0xff] %v8441_v52 }
  0xf1   : > { %11653 = vst [vmem:[#allocation6_spill] sm:$0xff] %v8439_v51  ;;  %2052 = vmatpush.bf16.msrb.mxu1 %v6196_v61 }
  0xf5   : > { %v8455_v4 = vpop.f32.mrf.mxu2 }
  0xf6   : > { %11655 = vst [vmem:[#allocation8_spill] sm:$0xff] %v8455_v4  ;;  %v835_v5 = vpop.f32.mrf.mxu3  ;;  %v601_v6 = vpop.f32.mrf.mxu0 }
  0xf7   : > { %v8457_v9 = vadd.f32 %v835_v5, %v598_v50  ;;  %v8459_v10 = vpop.f32.mrf.mxu1 }
  0xf8   : > { %11657 = vst [vmem:[#allocation10_spill] sm:$0xff] %v8459_v10  ;;  %v6277_v10 = vld [vmem:[%s11584_s1 + $0x1b8] sm:$0xf] }
  0xf9   : > { %11656 = vst [vmem:[#allocation9_spill] sm:$0xff] %v8457_v9  ;;  %5952 = vmatmul.msk.bf16.gmra.mxu0 %vm548_vm0, %v7953_v55 }
  0xfa   : > { %6042 = vmatmul.msk.bf16.gmra.mxu1 %vm548_vm0, %v7900_v30  ;;  %6048 = vmatmul.msk.bf16.gmra.mxu2 %vm548_vm0, %v7900_v30 }
  0xfb   : > { %6054 = vmatmul.msk.bf16.gmra.mxu3 %vm548_vm0, %v7900_v30  ;;  %v6151_v30 = vld [vmem:[%s11584_s1 + $0x428] sm:$0xf] }
  0xfc   : > { %v6152_v34 = vor.u32 %v7393_v28, %v6151_v30  ;;  %v7400_v28 = vld [vmem:[%s11584_s1 + $0x46c] sm:$0xf] }
  0xfd   : > { %v8475_v19 = vpop.f32.mrf.mxu2 }
  0xfe   : > { %11658 = vst [vmem:[#allocation11_spill] sm:$0xff] %v8475_v19  ;;  %v838_v20 = vpop.f32.mrf.mxu3  ;;  %v603_v21 = vpop.f32.mrf.mxu0  ;;  %2095 = vmatpush.bf16.msrb.mxu2 %v6152_v34  ;;  %v6184_v34 = vor.u32 %v7400_v28, %v6181_v31 }
  0xff   : > { %v8477_v24 = vadd.f32 %v838_v20, %v601_v6  ;;  %v8479_v25 = vpop.f32.mrf.mxu1  ;;  %v6139_v20 = vld [vmem:[%s11584_s1 + $0x410] sm:$0xf] }
 0x100   : > { %11660 = vst [vmem:[#allocation13_spill] sm:$0xff] %v8479_v25  ;;  %2053 = vmatpush.bf16.msrb.mxu1 %v6184_v34  ;;  %v7365_v34 = vld [vmem:[%s11584_s1 + $0x158] sm:$0xf0] }
 0x101   : > { %11659 = vst [vmem:[#allocation12_spill] sm:$0xff] %v8477_v24  ;;  %v7434_v24 = vld [vmem:[%s11584_s1 + $0x4d0] sm:$0xf0] }
 0x105   : > { %v8493_v37 = vpop.f32.mrf.mxu2 }
 0x106   : > { %11661 = vst [vmem:[#allocation14_spill] sm:$0xff] %v8493_v37  ;;  %v840_v41 = vpop.f32.mrf.mxu3  ;;  %v852_v42 = vpop.f32.mrf.mxu0 }
 0x107   : > { %v8495_v45 = vadd.f32 %v840_v41, %v603_v21  ;;  %v8498_v48 = vadd.f32 %v852_v42, %v8209_v32  ;;  %v891_v50 = vpop.f32.mrf.mxu1  ;;  %v6144_v32 = vor.u32 %v7392_v57, %v6143_v33  ;;  %v6233_v21 = vld [vmem:[%s11584_s1 + $0x168] sm:$0xf]  ;;  %v7397_v33 = vld [vmem:[%s11584_s1 + $0x454] sm:$0xf] }
 0x108   : > { %v892_v11 = vadd.f32 %v891_v50, %v8231_v40  ;;  %v6131_v42 = vld [vmem:[%s11584_s1 + $0x408] sm:$0xf]  ;;  %v7389_v50 = vld [vmem:[%s11584_s1 + $0x410] sm:$0xf0] }
 0x109   : > { %11662 = vst [vmem:[#allocation15_spill] sm:$0xff] %v8495_v45  ;;  %5953 = vmatmul.msk.bf16.gmra.mxu0 %vm548_vm0, %v7994_v7  ;;  %945 = vrot.lane.b32.xlu0 %v8498_v48, %s7636_s11  ;;  %v6132_v61 = vor.u32 %v7389_v50, %v6131_v42  ;;  %v7391_v42 = vld [vmem:[%s11584_s1 + $0x424] sm:$0xf]  ;;  %v6145_v50 = vld [vmem:[%s11584_s1 + $0x42c] sm:$0xf0] }
 0x10a   : > { %6043 = vmatmul.msk.bf16.gmra.mxu1 %vm548_vm0, %v7953_v55  ;;  %6049 = vmatmul.msk.bf16.gmra.mxu2 %vm548_vm0, %v7953_v55  ;;  %v6403_v45 = vld [vmem:[%s11584_s1 + $0x4c8] sm:$0xf] }
 0x10b   : > { %6055 = vmatmul.msk.bf16.gmra.mxu3 %vm548_vm0, %v7953_v55  ;;  %2017 = vmatpush.bf16.msrb.mxu0 %v6144_v32  ;;  %v7390_v55 = vld [vmem:[%s11584_s1 + $0x418] sm:$0xf0]  ;;  %v6169_v32 = vld [vmem:[%s11584_s1 + $0x45c] sm:$0xf0] }
 0x10c   : > { %v6140_v40 = vor.u32 %v7390_v55, %v6139_v20 }
 0x10d   : > { %v8522_v1 = vpop.f32.mrf.mxu2 }
 0x10e   : > { %v8524_v5 = vpop.f32.mrf.mxu3  ;;  %v854_v6 = vpop.f32.mrf.mxu0  ;;  %2096 = vmatpush.bf16.msrb.mxu2 %v6140_v40  ;;  %v7387_v40 = vld [vmem:[%s11584_s1 + $0x400] sm:$0xf0] }
 0x10f   : > { %v893_v13 = vpop.f32.mrf.mxu1  ;;  %v8528_v16 = vadd.f32 %v854_v6, %v8235_v44  ;;  %v7368_v44 = vld [vmem:[%s11584_s1 + $0x170] sm:$0xf0]  ;;  %v6172_v6 = vor.u32 %v7397_v33, %v6169_v32  ;;  %2018 = vmatpush.bf16.msrb.mxu0 %v6132_v61  ;;  %v7386_v33 = vld [vmem:[%s11584_s1 + $0x3f8] sm:$0xf0]  ;;  %v6133_v32 = vld [vmem:[%s11584_s1 + $0x414] sm:$0xf0] }
 0x110   : > { %v6234_v30 = vor.u32 %v7368_v44, %v6233_v21  ;;  %v894_v57 = vadd.f32 %v893_v13, %v8255_v56  ;;  %v7394_v56 = vld [vmem:[%s11584_s1 + $0x43c] sm:$0xf]  ;;  %v6127_v21 = vld [vmem:[%s11584_s1 + $0x3f8] sm:$0xf] }
 0x111   : > { %949 = vrot.lane.b32.xlu1 %v8528_v16, %s7636_s11  ;;  %947 = vrot.lane.b32.xlu0 %v892_v11, %s7636_s11  ;;  %v6128_v31 = vor.u32 %v7387_v40, %v6127_v21 }
 0x112   : > { %2247 = vmatpush.bf16.msrb.mxu3 %v6234_v30  ;;  %2054 = vmatpush.bf16.msrb.mxu1 %v6172_v6 }
 0x113   : > { %2097 = vmatpush.bf16.msrb.mxu2 %v6128_v31 }
 0x115   : > { %v8551_v35 = vpop.f32.mrf.mxu2 }
 0x116   : > { %v8553_v36 = vpop.f32.mrf.mxu3  ;;  %v857_v41 = vpop.f32.mrf.mxu0 }
 0x117   : > { %v896_v58 = vpop.f32.mrf.mxu1  ;;  %v8599_v44 = vadd.f32 %v857_v41, %v8265_v63  ;;  %v6148_v41 = vor.u32 %v7391_v42, %v6145_v50 }
 0x118   : > { %v897_v59 = vadd.f32 %v896_v58, %v8287_v8  ;;  %v6157_v8 = vld [vmem:[%s11584_s1 + $0x444] sm:$0xf0] }
 0x119   : > { %5954 = vmatmul.msk.bf16.gmra.mxu0 %vm548_vm0, %v8035_v23  ;;  %951 = vrot.lane.b32.xlu1 %v894_v57, %s7636_s11  ;;  %v6160_v11 = vor.u32 %v7394_v56, %v6157_v8  ;;  %v7388_v57 = vld [vmem:[%s11584_s1 + $0x40c] sm:$0xf]  ;;  %v7385_v8 = vld [vmem:[%s11584_s1 + $0x3f4] sm:$0xf] }
 0x11a   : > { %6044 = vmatmul.msk.bf16.gmra.mxu1 %vm548_vm0, %v7994_v7  ;;  %6050 = vmatmul.msk.bf16.gmra.mxu2 %vm548_vm0, %v7994_v7 }
 0x11b   : > { %955 = vrot.lane.b32.xlu2 %v897_v59, %s7636_s11  ;;  %6056 = vmatmul.msk.bf16.gmra.mxu3 %vm548_vm0, %v7994_v7  ;;  %v6221_v7 = vld [vmem:[%s11584_s1 + $0x150] sm:$0xf]  ;;  %v6136_v59 = vor.u32 %v7388_v57, %v6133_v32  ;;  %v7382_v57 = vld [vmem:[%s11584_s1 + $0x1e4] sm:$0xf] }
 0x11c   : > { %2055 = vmatpush.bf16.msrb.mxu1 %v6160_v11  ;;  %v6222_v63 = vor.u32 %v7365_v34, %v6221_v7  ;;  %v6121_v11 = vld [vmem:[%s11584_s1 + $0x3fc] sm:$0xf0] }
 0x11d   : > { %v8585_v13 = vpop.f32.mrf.mxu2  ;;  %v6124_v7 = vor.u32 %v7385_v8, %v6121_v11 }
 0x11e   : > { %v8587_v20 = vpop.f32.mrf.mxu3  ;;  %v859_v55 = vpop.f32.mrf.mxu0  ;;  %2248 = vmatpush.bf16.msrb.mxu3 %v6222_v63 }
 0x11f   : > { %v8602_v30 = vadd.f32 %v859_v55, %v8297_v15  ;;  %v898_v28 = vpop.f32.mrf.mxu1  ;;  %v6119_v15 = vld [vmem:[%s11584_s1 + $0x3f0] sm:$0xf] }
 0x120   : > { %v6120_v58 = vor.u32 %v7386_v33, %v6119_v15  ;;  %2056 = vmatpush.bf16.msrb.mxu1 %v6148_v41  ;;  %v899_v31 = vadd.f32 %v898_v28, %v8323_v29  ;;  %v6451_v29 = vld [vmem:[%s11584_s1 + $0x528] sm:$0xf] }
 0x121   : > { %953 = vrot.lane.b32.xlu1 %v8599_v44, %s7636_s11  ;;  %957 = vrot.lane.b32.xlu0 %v8602_v30, %s7636_s11 }
 0x122   : > { %2019 = vmatpush.bf16.msrb.mxu0 %v6120_v58  ;;  %v6295_v58 = vld [vmem:[%s11584_s1 + $0x1ec] sm:$0xf0] }
 0x123   : > { %v6298_v32 = vor.u32 %v7382_v57, %v6295_v58  ;;  %v7439_v58 = vld [vmem:[%s11584_s1 + $0x4fc] sm:$0xf] }
 0x124   : > { %2057 = vmatpush.bf16.msrb.mxu1 %v6136_v59 }
 0x125   : > { %v8629_v61 = vpop.f32.mrf.mxu2 }
 0x126   : > { %v8631_v6 = vpop.f32.mrf.mxu3  ;;  %v862_v56 = vpop.f32.mrf.mxu0  ;;  %2281 = vmatpush.bf16.msra.mxu0 %v6298_v32 }
 0x127   : > { %v8640_v55 = vadd.f32 %v862_v56, %v8333_v39  ;;  %v901_v21 = vpop.f32.mrf.mxu1  ;;  %v7446_v39 = vld [vmem:[%s11584_s1 + $0x530] sm:$0xf0] }
 0x128   : > { %v902_v40 = vadd.f32 %v901_v21, %v8355_v49  ;;  %2058 = vmatpush.bf16.msrb.mxu1 %v6124_v7  ;;  %v7445_v49 = vld [vmem:[%s11584_s1 + $0x52c] sm:$0xf]  ;;  %v6452_v34 = vor.u32 %v7446_v39, %v6451_v29  ;;  %v6439_v21 = vld [vmem:[%s11584_s1 + $0x510] sm:$0xf]  ;;  %v7442_v7 = vld [vmem:[%s11584_s1 + $0x514] sm:$0xf] }
 0x129   : > { %5955 = vmatmul.msk.bf16.gmra.mxu0 %vm548_vm0, %v8088_v47  ;;  %961 = vrot.lane.b32.xlu2 %v8640_v55, %s7636_s11 }
 0x12a   : > { %6045 = vmatmul.msk.bf16.gmra.mxu1 %vm548_vm0, %v8035_v23  ;;  %6051 = vmatmul.msk.bf16.gmra.mxu2 %vm548_vm0, %v8035_v23 }
 0x12b   : > { %959 = vrot.lane.b32.xlu1 %v899_v31, %s7636_s11  ;;  %963 = vrot.lane.b32.xlu0 %v902_v40, %s7636_s11  ;;  %v7443_v40 = vld [vmem:[%s11584_s1 + $0x518] sm:$0xf0] }
 0x12c   : > { %6057 = vmatmul.msk.bf16.gmra.mxu3 %vm548_vm0, %v8035_v23  ;;  %v6453_v23 = vld [vmem:[%s11584_s1 + $0x534] sm:$0xf0]  ;;  %2661 = vmatpush.bf16.msra.mxu2 %v6452_v34 }
 0x12d   : > { %v8665_v28 = vpop.f32.mrf.mxu2  ;;  %v6456_v63 = vor.u32 %v7445_v49, %v6453_v23  ;;  %v7379_v49 = vld [vmem:[%s11584_s1 + $0x1cc] sm:$0xf]  ;;  %v6283_v34 = vld [vmem:[%s11584_s1 + $0x1d4] sm:$0xf0] }
 0x12e   : > { %v8670_v42 = vpop.f32.mrf.mxu3  ;;  %v864_v50 = vpop.f32.mrf.mxu0 }
 0x12f   : > { %v8673_v41 = vadd.f32 %v864_v50, %v8359_v54  ;;  %v903_v15 = vpop.f32.mrf.mxu1  ;;  %2700 = vmatpush.bf16.msra.mxu3 %v6456_v63 }
 0x130   : > { %v904_v33 = vadd.f32 %v903_v15, %v8367_v60 }
 0x131   : > { %11663 = vst [vmem:[#allocation16_spill] sm:$0xff] %v8673_v41 }
 0x132   : > { %967 = vrot.lane.b32.xlu2 %v904_v33, %s7636_s11 }
 0x133   : > { %965 = vrot.lane.b32.xlu1 %v8673_v41, %s7636_s11 }
 0x135   : > { %v8685_v54 = vpop.f32.mrf.mxu2 }
 0x136   : > { %11664 = vst [vmem:[#allocation17_spill] sm:$0xff] %v8685_v54  ;;  %v8687_v59 = vpop.f32.mrf.mxu3  ;;  %v867_v60 = vpop.f32.mrf.mxu0 }
 0x137   : > { %v8690_v56 = vadd.f32 %v867_v60, %v8371_v3  ;;  %v906_v8 = vpop.f32.mrf.mxu1  ;;  %v6440_v3 = vor.u32 %v7443_v40, %v6439_v21  ;;  %v8754_v21 = vld [vmem:[%s7882_s21 + $0x8] sm:$0xff]  ;;  %v8763_v40 = vld [vmem:[%s7882_s21] sm:$0xff] }
 0x138   : > { %v907_v11 = vadd.f32 %v906_v8, %v8393_v12  ;;  %v6441_v12 = vld [vmem:[%s11584_s1 + $0x51c] sm:$0xf0]  ;;  %v6429_v8 = vld [vmem:[%s11584_s1 + $0x504] sm:$0xf0] }
 0x139   : > { %5956 = vmatmul.msk.bf16.gmra.mxu0 %vm548_vm0, %v8129_v0  ;;  %969 = vrot.lane.b32.xlu0 %v8690_v56, %s7636_s11  ;;  %v6444_v31 = vor.u32 %v7442_v7, %v6441_v12  ;;  %v7376_v7 = vld [vmem:[%s11584_s1 + $0x1b4] sm:$0xf] }
 0x13a   : > { %6046 = vmatmul.msk.bf16.gmra.mxu1 %vm548_vm0, %v8088_v47  ;;  %6052 = vmatmul.msk.bf16.gmra.mxu2 %vm548_vm0, %v8088_v47 }
 0x13b   : > { %971 = vrot.lane.b32.xlu1 %v907_v11, %s7636_s11  ;;  %2662 = vmatpush.bf16.msra.mxu2 %v6440_v3  ;;  %v6432_v11 = vor.u32 %v7439_v58, %v6429_v8  ;;  %v6271_v3 = vld [vmem:[%s11584_s1 + $0x1bc] sm:$0xf0]  ;;  %v6417_v8 = vld [vmem:[%s11584_s1 + $0x4ec] sm:$0xf0] }
 0x13c   : > { %6058 = vmatmul.msk.bf16.gmra.mxu3 %vm548_vm0, %v8088_v47  ;;  %v6286_v47 = vor.u32 %v7379_v49, %v6283_v34 }
 0x13d   : > { %v8716_v0 = vpop.f32.mrf.mxu2  ;;  %2701 = vmatpush.bf16.msra.mxu3 %v6444_v31  ;;  %v6274_v31 = vor.u32 %v7376_v7, %v6271_v3  ;;  %v8802_v3 = vld [vmem:[%s7882_s21 + $0x10] sm:$0xff] }
 0x13e   : > { %11665 = vst [vmem:[#allocation18_spill] sm:$0xff] %v8716_v0  ;;  %v8718_v29 = vpop.f32.mrf.mxu3  ;;  %v869_v39 = vpop.f32.mrf.mxu0  ;;  %2282 = vmatpush.bf16.msra.mxu0 %v6286_v47  ;;  %v7437_v47 = vld [vmem:[%s11584_s1 + $0x4e8] sm:$0xf0] }
 0x13f   : > { %v8727_v23 = vadd.f32 %v869_v39, %v8397_v18  ;;  %v908_v50 = vpop.f32.mrf.mxu1  ;;  %v6427_v18 = vld [vmem:[%s11584_s1 + $0x4f8] sm:$0xf] }
 0x140   : > { %v909_v63 = vadd.f32 %v908_v50, %v8405_v22  ;;  %v7440_v22 = vld [vmem:[%s11584_s1 + $0x500] sm:$0xf0]  ;;  %v6415_v50 = vld [vmem:[%s11584_s1 + $0x4e0] sm:$0xf] }
 0x141   : > { %11666 = vst [vmem:[#allocation19_spill] sm:$0xff] %v8727_v23  ;;  %973 = vrot.lane.b32.xlu2 %v8727_v23, %s7636_s11  ;;  %v6428_v60 = vor.u32 %v7440_v22, %v6427_v18  ;;  %2702 = vmatpush.bf16.msra.mxu3 %v6432_v11  ;;  %v7370_v23 = vld [vmem:[%s11584_s1 + $0x184] sm:$0xf] }
 0x142   : > { %975 = vrot.lane.b32.xlu0 %v909_v63, %s7636_s11  ;;  %2283 = vmatpush.bf16.msra.mxu0 %v6274_v31  ;;  %v6416_v63 = vor.u32 %v7437_v47, %v6415_v50  ;;  %v7373_v31 = vld [vmem:[%s11584_s1 + $0x19c] sm:$0xf]  ;;  %v6259_v50 = vld [vmem:[%s11584_s1 + $0x1a4] sm:$0xf0] }
 0x143   : > { %2663 = vmatpush.bf16.msra.mxu2 %v6428_v60  ;;  %v7436_v60 = vld [vmem:[%s11584_s1 + $0x4e4] sm:$0xf] }
 0x144   : > { %v6420_v7 = vor.u32 %v7436_v60, %v6417_v8 }
 0x145   : > { %v8733_v15 = vpop.f32.mrf.mxu2 }
 0x146   : > { %11667 = vst [vmem:[#allocation20_spill] sm:$0xff] %v8733_v15  ;;  %v8735_v33 = vpop.f32.mrf.mxu3  ;;  %v8737_v57 = vpop.f32.mrf.mxu0  ;;  %2703 = vmatpush.bf16.msra.mxu3 %v6420_v7 }
 0x147   : > { %11668 = vst [vmem:[#allocation21_spill] sm:$0xff] %v8735_v33  ;;  %v8748_v32 = vpop.f32.mrf.mxu1  ;;  %2664 = vmatpush.bf16.msra.mxu2 %v6416_v63  ;;  %v6262_v63 = vor.u32 %v7373_v31, %v6259_v50  ;;  %v7433_v31 = vld [vmem:[%s11584_s1 + $0x4cc] sm:$0xf]  ;;  %v6404_v50 = vor.u32 %v7434_v24, %v6403_v45  ;;  %v6247_v24 = vld [vmem:[%s11584_s1 + $0x18c] sm:$0xf0] }
 0x148   : > { %11669 = vst [vmem:[#allocation22_spill] sm:$0xff] %v8737_v57  ;;  %v6301_v45 = vld [vmem:[%s11584_s1 + $0x1e8] sm:$0xf] }
 0x149   : > { %11670 = vst [vmem:[#allocation23_spill] sm:$0xff] %v8748_v32  ;;  %6201 = vmatmul.msk.bf16.vlgmr.msrb.gmra.mxu0 %vm548_vm0, %v8754_v21 }
 0x14a   : > { %6207 = vmatmul.msk.bf16.vlgmr.msrb.gmra.mxu1 %vm548_vm0, %v8754_v21  ;;  %6213 = vmatmul.msk.bf16.vlgmr.msrb.gmra.mxu2 %vm548_vm0, %v8754_v21 }
 0x14b   : > { %2284 = vmatpush.bf16.msra.mxu0 %v6262_v63  ;;  %2665 = vmatpush.bf16.msra.mxu2 %v6404_v50 }
 0x14c   : > { %6303 = vmatmul.msk.bf16.vlgmr.msrb.gmra.mxu3 %vm548_vm0, %v8763_v40 }
 0x14d   : > { %v8773_v12 = vpop.f32.mrf.mxu2 }
 0x14e   : > { %11671 = vst [vmem:[#allocation24_spill] sm:$0xff] %v8773_v12  ;;  %v8775_v39 = vpop.f32.mrf.mxu3  ;;  %v8777_v49 = vpop.f32.mrf.mxu0 }
 0x14f   : > { %11672 = vst [vmem:[#allocation25_spill] sm:$0xff] %v8775_v39  ;;  %v8779_v34 = vpop.f32.mrf.mxu1 }
 0x150   : > { %11673 = vst [vmem:[#allocation26_spill] sm:$0xff] %v8777_v49 }
 0x151   : > { %11674 = vst [vmem:[#allocation27_spill] sm:$0xff] %v8779_v34 }
 0x155   : > { %v8787_v18 = vpop.f32.mrf.mxu2 }
 0x156   : > { %11675 = vst [vmem:[#allocation28_spill] sm:$0xff] %v8787_v18  ;;  %v8789_v22 = vpop.f32.mrf.mxu3  ;;  %v8791_v58 = vpop.f32.mrf.mxu0 }
 0x157   : > { %11676 = vst [vmem:[#allocation29_spill] sm:$0xff] %v8789_v22  ;;  %v8799_v11 = vpop.f32.mrf.mxu1 }
 0x158   : > { %11677 = vst [vmem:[#allocation30_spill] sm:$0xff] %v8791_v58 }
 0x159   : > { %11678 = vst [vmem:[#allocation31_spill] sm:$0xff] %v8799_v11  ;;  %6202 = vmatmul.msk.bf16.gmra.mxu0 %vm548_vm0, %v8802_v3 }
 0x15a   : > { %6208 = vmatmul.msk.bf16.gmra.mxu1 %vm548_vm0, %v8802_v3  ;;  %6214 = vmatmul.msk.bf16.gmra.mxu2 %vm548_vm0, %v8802_v3 }
 0x15c   : > { %6304 = vmatmul.msk.bf16.gmra.mxu3 %vm548_vm0, %v8754_v21 }
 0x15d   : > { %v8818_v47 = vpop.f32.mrf.mxu2 }
 0x15e   : > { %11679 = vst [vmem:[#allocation32_spill] sm:$0xff] %v8818_v47  ;;  %v8820_v60 = vpop.f32.mrf.mxu3  ;;  %v8822_v8 = vpop.f32.mrf.mxu0  ;;  %v6405_v47 = vld [vmem:[%s11584_s1 + $0x4d4] sm:$0xf0] }
 0x15f   : > { %11680 = vst [vmem:[#allocation33_spill] sm:$0xff] %v8820_v60  ;;  %v8824_v7 = vpop.f32.mrf.mxu1  ;;  %v6408_v9 = vor.u32 %v7433_v31, %v6405_v47  ;;  %v8854_v47 = vld [vmem:[%s7882_s21 + $0x18] sm:$0xff]  ;;  %v7384_v31 = vld [vmem:[%s11584_s1 + $0x1f0] sm:$0xf0] }
 0x160   : > { %11681 = vst [vmem:[#allocation34_spill] sm:$0xff] %v8822_v8  ;;  %v6302_v50 = vor.u32 %v7384_v31, %v6301_v45  ;;  %v6391_v45 = vld [vmem:[%s11584_s1 + $0x4b0] sm:$0xf]  ;;  %v6393_v31 = vld [vmem:[%s11584_s1 + $0x4bc] sm:$0xf0] }
 0x161   : > { %11682 = vst [vmem:[#allocation35_spill] sm:$0xff] %v8824_v7  ;;  %2704 = vmatpush.bf16.msra.mxu3 %v6408_v9  ;;  %v6250_v9 = vor.u32 %v7370_v23, %v6247_v24  ;;  %v7381_v7 = vld [vmem:[%s11584_s1 + $0x1d8] sm:$0xf0] }
 0x162   : > { %2320 = vmatpush.bf16.msra.mxu1 %v6302_v50  ;;  %v6289_v50 = vld [vmem:[%s11584_s1 + $0x1d0] sm:$0xf] }
 0x163   : > { %2285 = vmatpush.bf16.msra.mxu0 %v6250_v9  ;;  %v7431_v9 = vld [vmem:[%s11584_s1 + $0x4b8] sm:$0xf0]  ;;  %v6290_v60 = vor.u32 %v7381_v7, %v6289_v50 }
 0x165   : > { %v8838_v63 = vpop.f32.mrf.mxu2 }
 0x166   : > { %11683 = vst [vmem:[#allocation36_spill] sm:$0xff] %v8838_v63  ;;  %v8840_v18 = vpop.f32.mrf.mxu3  ;;  %v1311_v51 = vpop.f32.mrf.mxu0  ;;  %2321 = vmatpush.bf16.msra.mxu1 %v6290_v60 }
 0x167   : > { %11684 = vst [vmem:[#allocation37_spill] sm:$0xff] %v8840_v18  ;;  %v8842_v12 = vpop.f32.mrf.mxu1 }
 0x169   : > { %6203 = vmatmul.msk.bf16.gmra.mxu0 %vm548_vm0, %v8854_v47 }
 0x16a   : > { %6209 = vmatmul.msk.bf16.gmra.mxu1 %vm548_vm0, %v8854_v47  ;;  %6215 = vmatmul.msk.bf16.gmra.mxu2 %vm548_vm0, %v8854_v47 }
 0x16c   : > { %6305 = vmatmul.msk.bf16.gmra.mxu3 %vm548_vm0, %v8802_v3 }
 0x16d   : > { %v1501_v63 = vpop.f32.mrf.mxu2 }
 0x16e   : > { %v8868_v15 = vadd.f32 %v1501_v63, %v8524_v5  ;;  %v1540_v23 = vpop.f32.mrf.mxu3  ;;  %v1313_v24 = vpop.f32.mrf.mxu0  ;;  %v7430_v5 = vld [vmem:[%s11584_s1 + $0x4b4] sm:$0xf]  ;;  %v6392_v63 = vor.u32 %v7431_v9, %v6391_v45 }
 0x16f   : > { %v8870_v18 = vpop.f32.mrf.mxu1  ;;  %v6396_v37 = vor.u32 %v7430_v5, %v6393_v31  ;;  %v1541_v45 = vadd.f32 %v1540_v23, %v1311_v51  ;;  %v7378_v5 = vld [vmem:[%s11584_s1 + $0x1c0] sm:$0xf0]  ;;  %v7367_v51 = vld [vmem:[%s11584_s1 + $0x16c] sm:$0xf] }
 0x170   : > { %1594 = vrot.lane.b32.xlu2 %v8868_v15, %s7636_s11  ;;  %2666 = vmatpush.bf16.msra.mxu2 %v6392_v63 }
 0x171   : > { %2705 = vmatpush.bf16.msra.mxu3 %v6396_v37  ;;  %v6235_v37 = vld [vmem:[%s11584_s1 + $0x174] sm:$0xf0] }
 0x172   : > { %v6238_v60 = vor.u32 %v7367_v51, %v6235_v37 }
 0x174   : > { %2286 = vmatpush.bf16.msra.mxu0 %v6238_v60  ;;  %v7427_v60 = vld [vmem:[%s11584_s1 + $0x49c] sm:$0xf] }
 0x175   : > { %v1503_v8 = vpop.f32.mrf.mxu2 }
 0x176   : > { %v8893_v9 = vadd.f32 %v1503_v8, %v8553_v36  ;;  %v1542_v25 = vpop.f32.mrf.mxu3  ;;  %v1316_v58 = vpop.f32.mrf.mxu0  ;;  %v6278_v36 = vor.u32 %v7378_v5, %v6277_v10  ;;  %v6265_v10 = vld [vmem:[%s11584_s1 + $0x1a0] sm:$0xf]  ;;  %v7375_v8 = vld [vmem:[%s11584_s1 + $0x1a8] sm:$0xf0]  ;;  %v6253_v5 = vld [vmem:[%s11584_s1 + $0x188] sm:$0xf] }
 0x177   : > { %v1543_v7 = vadd.f32 %v1542_v25, %v1313_v24  ;;  %v8901_v63 = vpop.f32.mrf.mxu1  ;;  %v8914_v25 = vld [vmem:[%s7882_s21 + $0x20] sm:$0xff]  ;;  %v6266_v23 = vor.u32 %v7375_v8, %v6265_v10  ;;  %v6381_v8 = vld [vmem:[%s11584_s1 + $0x4a4] sm:$0xf0] }
 0x178   : > { %1598 = vrot.lane.b32.xlu0 %v8893_v9, %s7636_s11  ;;  %1596 = vrot.lane.b32.xlu2 %v1541_v45, %s7636_s11 }
 0x179   : > { %1600 = vrot.lane.b32.xlu1 %v1543_v7, %s7636_s11  ;;  %6204 = vmatmul.msk.bf16.gmra.mxu0 %vm548_vm0, %v8914_v25  ;;  %v7372_v7 = vld [vmem:[%s11584_s1 + $0x190] sm:$0xf0] }
 0x17a   : > { %6210 = vmatmul.msk.bf16.gmra.mxu1 %vm548_vm0, %v8914_v25  ;;  %6216 = vmatmul.msk.bf16.gmra.mxu2 %vm548_vm0, %v8914_v25  ;;  %v6254_v10 = vor.u32 %v7372_v7, %v6253_v5  ;;  %v6223_v5 = vld [vmem:[%s11584_s1 + $0x15c] sm:$0xf0]  ;;  %v6241_v7 = vld [vmem:[%s11584_s1 + $0x170] sm:$0xf] }
 0x17b   : > { %2322 = vmatpush.bf16.msra.mxu1 %v6278_v36  ;;  %v6379_v36 = vld [vmem:[%s11584_s1 + $0x498] sm:$0xf] }
 0x17c   : > { %6306 = vmatmul.msk.bf16.gmra.mxu3 %vm548_vm0, %v8854_v47 }
 0x17d   : > { %v1506_v24 = vpop.f32.mrf.mxu2 }
 0x17e   : > { %v8931_v31 = vadd.f32 %v1506_v24, %v8587_v20  ;;  %v1545_v50 = vpop.f32.mrf.mxu3  ;;  %v1318_v45 = vpop.f32.mrf.mxu0  ;;  %v7428_v20 = vld [vmem:[%s11584_s1 + $0x4a0] sm:$0xf0]  ;;  %v6384_v24 = vor.u32 %v7427_v60, %v6381_v8 }
 0x17f   : > { %v1546_v51 = vadd.f32 %v1545_v50, %v1316_v58  ;;  %v8939_v37 = vpop.f32.mrf.mxu1  ;;  %2323 = vmatpush.bf16.msra.mxu1 %v6266_v23  ;;  %v6380_v58 = vor.u32 %v7428_v20, %v6379_v36  ;;  %v8955_v23 = vpop.permute.xlu0 %945  ;;  %v7364_v50 = vld [vmem:[%s11584_s1 + $0x154] sm:$0xf]  ;;  %v7369_v20 = vld [vmem:[%s11584_s1 + $0x178] sm:$0xf0] }
 0x180   : > { %1602 = vrot.lane.b32.xlu2 %v8931_v31, %s7636_s11  ;;  %v6226_v36 = vor.u32 %v7364_v50, %v6223_v5  ;;  %2706 = vmatpush.bf16.msra.mxu3 %v6384_v24  ;;  %v6242_v60 = vor.u32 %v7369_v20, %v6241_v7  ;;  %v7366_v50 = vld [vmem:[%s11584_s1 + $0x160] sm:$0xf0]  ;;  %v7424_v7 = vld [vmem:[%s11584_s1 + $0x28c] sm:$0xf]  ;;  %v6561_v20 = vld [vmem:[%s11584_s1 + $0x290] sm:$0xf] }
 0x181   : > { %1604 = vrot.lane.b32.xlu0 %v1546_v51, %s7636_s11  ;;  %2667 = vmatpush.bf16.msra.mxu2 %v6380_v58  ;;  %v6229_v58 = vld [vmem:[%s11584_s1 + $0x158] sm:$0xf] }
 0x182   : > { %2287 = vmatpush.bf16.msra.mxu0 %v6226_v36  ;;  %v6555_v36 = vld [vmem:[%s11584_s1 + $0x294] sm:$0xf0] }
 0x183   : > { %v8970_v51 = vpop.permute.xlu1 %949  ;;  %2324 = vmatpush.bf16.msra.mxu1 %v6254_v10  ;;  %v6230_v10 = vor.u32 %v7366_v50, %v6229_v58  ;;  %v7426_v58 = vld [vmem:[%s11584_s1 + $0x298] sm:$0xf0] }
 0x184   : > { %v6562_v39 = vor.u32 %v7426_v58, %v6561_v20 }
 0x185   : > { %v1508_v8 = vpop.f32.mrf.mxu2 }
 0x186   : > { %v8973_v11 = vadd.f32 %v1508_v8, %v8631_v6  ;;  %v1547_v19 = vpop.f32.mrf.mxu3  ;;  %v1321_v22 = vpop.f32.mrf.mxu0  ;;  %v8987_v6 = vld [vmem:[%s7882_s21 + $0x28] sm:$0xff]  ;;  %v6558_v8 = vor.u32 %v7424_v7, %v6555_v36  ;;  %2968 = vmatpush.bf16.msrb.mxu3 %v6562_v39  ;;  %v6459_v7 = vld [vmem:[%s11584_s1 + $0x530] sm:$0xf] }
 0x187   : > { %v1548_v5 = vadd.f32 %v1547_v19, %v1318_v45  ;;  %v8981_v24 = vpop.f32.mrf.mxu1  ;;  %2325 = vmatpush.bf16.msra.mxu1 %v6242_v60  ;;  %v8995_v19 = vpop.permute.xlu0 %947 }
 0x188   : > { %1606 = vrot.lane.b32.xlu1 %v8973_v11, %s7636_s11  ;;  %2929 = vmatpush.bf16.msrb.mxu2 %v6558_v8 }
 0x189   : > { %1608 = vrot.lane.b32.xlu2 %v1548_v5, %s7636_s11  ;;  %6205 = vmatmul.msk.bf16.gmra.mxu0 %vm548_vm0, %v8987_v6 }
 0x18a   : > { %6211 = vmatmul.msk.bf16.gmra.mxu1 %vm548_vm0, %v8987_v6  ;;  %6217 = vmatmul.msk.bf16.gmra.mxu2 %vm548_vm0, %v8987_v6 }
 0x18b   : > { %v8997_v45 = vpop.permute.xlu1 %951  ;;  %2326 = vmatpush.bf16.msra.mxu1 %v6230_v10 }
 0x18c   : > { %6307 = vmatmul.msk.bf16.gmra.mxu3 %vm548_vm0, %v8914_v25 }
 0x18d   : > { %v1511_v60 = vpop.f32.mrf.mxu2 }
 0x18e   : > { %v9014_v50 = vadd.f32 %v1511_v60, %v8670_v42  ;;  %v1550_v5 = vpop.f32.mrf.mxu3  ;;  %v1323_v10 = vpop.f32.mrf.mxu0  ;;  %v7447_v42 = vld [vmem:[%s11584_s1 + $0x538] sm:$0xf0] }
 0x18f   : > { %v1551_v34 = vadd.f32 %v1550_v5, %v1321_v22  ;;  %v9016_v4 = vpop.f32.mrf.mxu1  ;;  %v6460_v36 = vor.u32 %v7447_v42, %v6459_v7  ;;  %v9031_v60 = vpop.permute.xlu2 %955  ;;  %v9042_v7 = vld [vmem:[%s7882_s21 + $0x30] sm:$0xff]  ;;  %v6549_v42 = vld [vmem:[%s11584_s1 + $0x278] sm:$0xf] }
 0x190   : > { %11685 = vst [vmem:[#allocation38_spill] sm:$0xff] %v9016_v4  ;;  %1610 = vrot.lane.b32.xlu0 %v9014_v50, %s7636_s11 }
 0x191   : > { %1612 = vrot.lane.b32.xlu1 %v1551_v34, %s7636_s11  ;;  %2739 = vmatpush.bf16.msrb.mxu0 %v6460_v36 }
 0x193   : > { %v9027_v22 = vpop.permute.xlu1 %953  ;;  %v9029_v20 = vpop.permute.xlu0 %957 }
 0x195   : > { %v1513_v39 = vpop.f32.mrf.mxu2 }
 0x196   : > { %v9034_v34 = vadd.f32 %v1513_v39, %v8687_v59  ;;  %v1552_v8 = vpop.f32.mrf.mxu3  ;;  %v1326_v58 = vpop.f32.mrf.mxu0  ;;  %v7421_v59 = vld [vmem:[%s11584_s1 + $0x274] sm:$0xf]  ;;  %v7423_v39 = vld [vmem:[%s11584_s1 + $0x280] sm:$0xf0] }
 0x197   : > { %v1553_v5 = vadd.f32 %v1552_v8, %v1323_v10  ;;  %v9036_v32 = vpop.f32.mrf.mxu1  ;;  %v6543_v10 = vld [vmem:[%s11584_s1 + $0x27c] sm:$0xf0]  ;;  %v6550_v8 = vor.u32 %v7423_v39, %v6549_v42 }
 0x198   : > { %11686 = vst [vmem:[#allocation39_spill] sm:$0xff] %v9034_v34  ;;  %1614 = vrot.lane.b32.xlu2 %v9034_v34, %s7636_s11  ;;  %v6546_v36 = vor.u32 %v7421_v59, %v6543_v10 }
 0x199   : > { %11687 = vst [vmem:[#allocation40_spill] sm:$0xff] %v9036_v32  ;;  %1616 = vrot.lane.b32.xlu0 %v1553_v5, %s7636_s11  ;;  %6206 = vmatmul.msk.bf16.gmra.mxu0 %vm548_vm0, %v9042_v7  ;;  %v962_v5 = vpop.permute.xlu2 %961  ;;  %v7418_v32 = vld [vmem:[%s11584_s1 + $0x25c] sm:$0xf] }
 0x19a   : > { %6212 = vmatmul.msk.bf16.gmra.mxu1 %vm548_vm0, %v9042_v7  ;;  %6218 = vmatmul.msk.bf16.gmra.mxu2 %vm548_vm0, %v9042_v7 }
 0x19b   : > { %2930 = vmatpush.bf16.msrb.mxu2 %v6546_v36  ;;  %2969 = vmatpush.bf16.msrb.mxu3 %v6550_v8  ;;  %v6447_v8 = vld [vmem:[%s11584_s1 + $0x518] sm:$0xf] }
 0x19c   : > { %6308 = vmatmul.msk.bf16.gmra.mxu3 %vm548_vm0, %v8987_v6 }
 0x19d   : > { %v9064_v46 = vpop.permute.xlu1 %959  ;;  %v9066_v49 = vpop.permute.xlu0 %963 }
 0x19e   : > { %v9070_v52 = vsel %vm993_vm1, %v962_v5, %v9066_v49  ;;  %v1516_v59 = vpop.f32.mrf.mxu2  ;;  %v1555_v10 = vpop.f32.mrf.mxu3  ;;  %v7444_v5 = vld [vmem:[%s11584_s1 + $0x520] sm:$0xf0] }
 0x19f   : > { %v9075_v39 = vadd.f32 %v1516_v59, %v8718_v29  ;;  %v1556_v57 = vadd.f32 %v1555_v10, %v1326_v58  ;;  %v1328_v36 = vpop.f32.mrf.mxu0  ;;  %v9077_v27 = vpop.f32.mrf.mxu1  ;;  %v6448_v42 = vor.u32 %v7444_v5, %v6447_v8  ;;  %v7420_v8 = vld [vmem:[%s11584_s1 + $0x268] sm:$0xf0] }
 0x1a0   : > { %11688 = vst [vmem:[#allocation41_spill] sm:$0xff] %v9077_v27 }
 0x1a1   : > { %1618 = vrot.lane.b32.xlu1 %v9075_v39, %s7636_s11  ;;  %1620 = vrot.lane.b32.xlu2 %v1556_v57, %s7636_s11  ;;  %v6531_v57 = vld [vmem:[%s11584_s1 + $0x264] sm:$0xf0] }
 0x1a2   : > { %2740 = vmatpush.bf16.msrb.mxu0 %v6448_v42  ;;  %v6537_v42 = vld [vmem:[%s11584_s1 + $0x260] sm:$0xf] }
 0x1a3   : > { %v6538_v5 = vor.u32 %v7420_v8, %v6537_v42 }
 0x1a5   : > { %v9088_v29 = vpop.permute.xlu1 %965  ;;  %2970 = vmatpush.bf16.msrb.mxu3 %v6538_v5 }
 0x1a6   : > { %v9090_v58 = vpop.f32.mrf.mxu2  ;;  %v1557_v59 = vpop.f32.mrf.mxu3 }
 0x1a7   : > { %11689 = vst [vmem:[#allocation42_spill] sm:$0xff] %v9090_v58  ;;  %v9092_v10 = vadd.f32 %v1557_v59, %v1328_v36  ;;  %v1331_v27 = vpop.f32.mrf.mxu0  ;;  %v9094_v33 = vpop.f32.mrf.mxu1  ;;  %v6534_v36 = vor.u32 %v7418_v32, %v6531_v57  ;;  %v6435_v32 = vld [vmem:[%s11584_s1 + $0x500] sm:$0xf]  ;;  %v7441_v57 = vld [vmem:[%s11584_s1 + $0x508] sm:$0xf0] }
 0x1a8   : > { %11691 = vst [vmem:[#allocation44_spill] sm:$0xff] %v9094_v33  ;;  %v9114_v33 = vpop.permute.xlu2 %967  ;;  %v6436_v58 = vor.u32 %v7441_v57, %v6435_v32 }
 0x1a9   : > { %11690 = vst [vmem:[#allocation43_spill] sm:$0xff] %v9092_v10  ;;  %6309 = vmatmul.msk.bf16.vlgmr.msra.gmra.mxu0 %vm548_vm0, %v8763_v40  ;;  %2931 = vmatpush.bf16.msrb.mxu2 %v6534_v36 }
 0x1aa   : > { %6315 = vmatmul.msk.bf16.vlgmr.msra.gmra.mxu1 %vm548_vm0, %v8763_v40  ;;  %6461 = vmatmul.msk.bf16.vlgmr.msra.gmra.mxu2 %vm548_vm0, %v8754_v21 }
 0x1ab   : > { %v970_v59 = vpop.permute.xlu0 %969  ;;  %2741 = vmatpush.bf16.msrb.mxu0 %v6436_v58 }
 0x1ac   : > { %6467 = vmatmul.msk.bf16.vlgmr.msra.gmra.mxu3 %vm548_vm0, %v8754_v21 }
 0x1ad   : > { %v9124_v10 = vpop.permute.xlu1 %971 }
 0x1ae   : > { %v9128_v42 = vsel %vm993_vm1, %v970_v59, %v9124_v10  ;;  %v9130_v36 = vpop.f32.mrf.mxu2  ;;  %v7415_v59 = vld [vmem:[%s11584_s1 + $0x244] sm:$0xf] }
 0x1af   : > { %11692 = vst [vmem:[#allocation45_spill] sm:$0xff] %v9130_v36  ;;  %v1560_v0 = vpop.f32.mrf.mxu3  ;;  %v1333_v2 = vpop.f32.mrf.mxu0 }
 0x1b0   : > { %v9134_v34 = vadd.f32 %v1560_v0, %v1331_v27  ;;  %v9136_v41 = vpop.f32.mrf.mxu1  ;;  %v974_v4 = vpop.permute.xlu2 %973 }
 0x1b1   : > { %11694 = vst [vmem:[#allocation47_spill] sm:$0xff] %v9136_v41 }
 0x1b2   : > { %11693 = vst [vmem:[#allocation46_spill] sm:$0xff] %v9134_v34 }
 0x1b4   : > { %v9138_v54 = vpop.permute.xlu0 %975 }
 0x1b5   : > { %11695 = vst [vmem:[#allocation48_spill] sm:$0xff] %v9138_v54  ;;  %v9142_v5 = vsel %vm993_vm1, %v974_v4, %v9138_v54  ;;  %v7412_v54 = vld [vmem:[%s11584_s1 + $0x22c] sm:$0xf] }
 0x1b6   : > { %11696 = vst [vmem:[#allocation49_spill] sm:$0xff] %v9142_v5  ;;  %v9146_v32 = vpop.f32.mrf.mxu2 }
 0x1b7   : > { %11697 = vst [vmem:[#allocation50_spill] sm:$0xff] %v9146_v32  ;;  %v1562_v57 = vpop.f32.mrf.mxu3  ;;  %v1336_v8 = vpop.f32.mrf.mxu0 }
 0x1b8   : > { %v9148_v36 = vadd.f32 %v1562_v57, %v1333_v2  ;;  %v9150_v27 = vpop.f32.mrf.mxu1 }
 0x1b9   : > { %11699 = vst [vmem:[#allocation52_spill] sm:$0xff] %v9150_v27  ;;  %6310 = vmatmul.msk.bf16.gmra.mxu0 %vm548_vm0, %v8754_v21  ;;  %v6525_v27 = vld [vmem:[%s11584_s1 + $0x248] sm:$0xf] }
 0x1ba   : > { %11698 = vst [vmem:[#allocation51_spill] sm:$0xff] %v9148_v36  ;;  %6316 = vmatmul.msk.bf16.gmra.mxu1 %vm548_vm0, %v8754_v21  ;;  %6462 = vmatmul.msk.bf16.gmra.mxu2 %vm548_vm0, %v8802_v3  ;;  %v6519_v21 = vld [vmem:[%s11584_s1 + $0x24c] sm:$0xf0] }
 0x1bb   : > { %v6522_v41 = vor.u32 %v7415_v59, %v6519_v21  ;;  %v6507_v59 = vld [vmem:[%s11584_s1 + $0x234] sm:$0xf0]  ;;  %v6513_v21 = vld [vmem:[%s11584_s1 + $0x230] sm:$0xf] }
 0x1bc   : > { %6468 = vmatmul.msk.bf16.gmra.mxu3 %vm548_vm0, %v8802_v3 }
 0x1bd   : > { %2932 = vmatpush.bf16.msrb.mxu2 %v6522_v41 }
 0x1be   : > { %v9160_v4 = vpop.f32.mrf.mxu2 }
 0x1bf   : > { %11700 = vst [vmem:[#allocation53_spill] sm:$0xff] %v9160_v4  ;;  %v1565_v0 = vpop.f32.mrf.mxu3  ;;  %v1338_v58 = vpop.f32.mrf.mxu0  ;;  %v7414_v4 = vld [vmem:[%s11584_s1 + $0x238] sm:$0xf0] }
 0x1c0   : > { %v9162_v2 = vadd.f32 %v1565_v0, %v1336_v8  ;;  %v9164_v57 = vpop.f32.mrf.mxu1  ;;  %v7417_v8 = vld [vmem:[%s11584_s1 + $0x250] sm:$0xf0]  ;;  %v6423_v0 = vld [vmem:[%s11584_s1 + $0x4e8] sm:$0xf] }
 0x1c1   : > { %11702 = vst [vmem:[#allocation55_spill] sm:$0xff] %v9164_v57  ;;  %v7438_v57 = vld [vmem:[%s11584_s1 + $0x4f0] sm:$0xf0]  ;;  %v6526_v5 = vor.u32 %v7417_v8, %v6525_v27 }
 0x1c2   : > { %11701 = vst [vmem:[#allocation54_spill] sm:$0xff] %v9162_v2  ;;  %v6424_v26 = vor.u32 %v7438_v57, %v6423_v0  ;;  %v6510_v2 = vor.u32 %v7412_v54, %v6507_v59  ;;  %v6514_v0 = vor.u32 %v7414_v4, %v6513_v21  ;;  %v7435_v54 = vld [vmem:[%s11584_s1 + $0x4d8] sm:$0xf0] }
 0x1c3   : > { %2971 = vmatpush.bf16.msrb.mxu3 %v6526_v5 }
 0x1c4   : > { %2742 = vmatpush.bf16.msrb.mxu0 %v6424_v26  ;;  %2933 = vmatpush.bf16.msrb.mxu2 %v6510_v2  ;;  %v6411_v26 = vld [vmem:[%s11584_s1 + $0x4d0] sm:$0xf] }
 0x1c5   : > { %v6412_v5 = vor.u32 %v7435_v54, %v6411_v26  ;;  %v994_v26 = vsel %vm993_vm1, %v8955_v23, %v8995_v19  ;;  %v1463_v54 = vadd.f32 %v8842_v12, %v8522_v1  ;;  %v6529_v1 = vld [vmem:[%s11584_s1 + $0x258] sm:$0xf]  ;;  %v7419_v12 = vld [vmem:[%s11584_s1 + $0x260] sm:$0xf0] }
 0x1c6   : > { %v9196_v27 = vpop.f32.mrf.mxu2 }
 0x1c7   : > { %11703 = vst [vmem:[#allocation56_spill] sm:$0xff] %v9196_v27  ;;  %v1567_v57 = vpop.f32.mrf.mxu3  ;;  %v2021_v8 = vpop.f32.mrf.mxu0  ;;  %2972 = vmatpush.bf16.msrb.mxu3 %v6514_v0  ;;  %v6541_v27 = vld [vmem:[%s11584_s1 + $0x270] sm:$0xf] }
 0x1c8   : > { %v9198_v36 = vadd.f32 %v1567_v57, %v1338_v58  ;;  %v9200_v34 = vpop.f32.mrf.mxu1  ;;  %v7425_v58 = vld [vmem:[%s11584_s1 + $0x290] sm:$0xf0]  ;;  %2743 = vmatpush.bf16.msrb.mxu0 %v6412_v5 }
 0x1c9   : > { %6311 = vmatmul.msk.bf16.gmra.mxu0 %vm548_vm0, %v8802_v3 }
 0x1ca   : > { %11704 = vst [vmem:[#allocation57_spill] sm:$0xff] %v9198_v36  ;;  %6317 = vmatmul.msk.bf16.gmra.mxu1 %vm548_vm0, %v8802_v3  ;;  %6463 = vmatmul.msk.bf16.gmra.mxu2 %vm548_vm0, %v8854_v47  ;;  %v1595_v41 = vpop.permute.xlu2 %1594  ;;  %v6553_v3 = vld [vmem:[%s11584_s1 + $0x288] sm:$0xf] }
 0x1cb   : > { %v6554_v21 = vor.u32 %v7425_v58, %v6553_v3  ;;  %v1030_v58 = vmax.f32 %v8233_v43, %v994_v26  ;;  %v6517_v43 = vld [vmem:[%s11584_s1 + $0x240] sm:$0xf] }
 0x1cc   : > { %6469 = vmatmul.msk.bf16.gmra.mxu3 %vm548_vm0, %v8854_v47  ;;  %v6495_v26 = vld [vmem:[%s11584_s1 + $0x21c] sm:$0xf0] }
 0x1cd   : > { %2890 = vmatpush.bf16.msrb.mxu1 %v6554_v21 }
 0x1ce   : > { %v9216_v4 = vpop.f32.mrf.mxu2 }
 0x1cf   : > { %v2250_v2 = vpop.f32.mrf.mxu3  ;;  %v2023_v59 = vpop.f32.mrf.mxu0 }
 0x1d0   : > { %v9224_v57 = vadd.f32 %v2250_v2, %v2021_v8  ;;  %v9226_v0 = vpop.f32.mrf.mxu1  ;;  %v7422_v8 = vld [vmem:[%s11584_s1 + $0x278] sm:$0xf0] }
 0x1d1   : > { %11706 = vst [vmem:[#allocation59_spill] sm:$0xff] %v9226_v0  ;;  %v6542_v3 = vor.u32 %v7422_v8, %v6541_v27  ;;  %v6530_v0 = vor.u32 %v7419_v12, %v6529_v1  ;;  %v7432_v1 = vld [vmem:[%s11584_s1 + $0x4c0] sm:$0xf0] }
 0x1d2   : > { %11705 = vst [vmem:[#allocation58_spill] sm:$0xff] %v9224_v57  ;;  %v1597_v36 = vpop.permute.xlu2 %1596 }
 0x1d3   : > { %v1642_v5 = vsel %vm993_vm1, %v1595_v41, %v1597_v36  ;;  %2891 = vmatpush.bf16.msrb.mxu1 %v6542_v3  ;;  %v1679_v8 = vmax.f32 %v8868_v15, %v1597_v36  ;;  %v6505_v15 = vld [vmem:[%s11584_s1 + $0x228] sm:$0xf]  ;;  %v7413_v36 = vld [vmem:[%s11584_s1 + $0x230] sm:$0xf0] }
 0x1d4   : > { %v1678_v2 = vmax.f32 %v1463_v54, %v1642_v5  ;;  %v6501_v54 = vld [vmem:[%s11584_s1 + $0x218] sm:$0xf] }
 0x1d6   : > { %v1702_v23 = vmax.f32 %v1030_v58, %v1678_v2  ;;  %v9241_v21 = vpop.f32.mrf.mxu2  ;;  %v7411_v58 = vld [vmem:[%s11584_s1 + $0x220] sm:$0xf0]  ;;  %v6399_v2 = vld [vmem:[%s11584_s1 + $0x4b8] sm:$0xf] }
 0x1d7   : > { %v2252_v57 = vpop.f32.mrf.mxu3  ;;  %v2026_v32 = vpop.f32.mrf.mxu0  ;;  %2892 = vmatpush.bf16.msrb.mxu1 %v6530_v0  ;;  %v1726_v0 = vld [vmem:[%s11585_s2] ss:$4 sm:$0x3] }
 0x1d8   : > { %v9249_v41 = vadd.f32 %v2252_v57, %v2023_v59  ;;  %v9251_v27 = vpop.f32.mrf.mxu1  ;;  %v7416_v59 = vld [vmem:[%s11584_s1 + $0x248] sm:$0xf0] }
 0x1d9   : > { %11708 = vst [vmem:[#allocation61_spill] sm:$0xff] %v9251_v27  ;;  %6312 = vmatmul.msk.bf16.gmra.mxu0 %vm548_vm0, %v8854_v47  ;;  %v6518_v57 = vor.u32 %v7416_v59, %v6517_v43  ;;  %v6502_v59 = vor.u32 %v7411_v58, %v6501_v54  ;;  %v6506_v54 = vor.u32 %v7413_v36, %v6505_v15  ;;  %v9305_v58 = vperm.slane %v1726_v0, 0  ;;  %v6489_v15 = vld [vmem:[%s11584_s1 + $0x200] sm:$0xf] }
 0x1da   : > { %11707 = vst [vmem:[#allocation60_spill] sm:$0xff] %v9249_v41  ;;  %6318 = vmatmul.msk.bf16.gmra.mxu1 %vm548_vm0, %v8854_v47  ;;  %6464 = vmatmul.msk.bf16.gmra.mxu2 %vm548_vm0, %v8914_v25  ;;  %v7409_v47 = vld [vmem:[%s11584_s1 + $0x214] sm:$0xf] }
 0x1db   : > { %2893 = vmatpush.bf16.msrb.mxu1 %v6518_v57  ;;  %v6498_v3 = vor.u32 %v7409_v47, %v6495_v26  ;;  %v6400_v57 = vor.u32 %v7432_v1, %v6399_v2  ;;  %v1031_v47 = vmax.f32 %v8498_v48, %v8995_v19  ;;  %v9299_v26 = vpop.permute.xlu2 %1602  ;;  %2973 = vmatpush.bf16.msrb.mxu3 %v6502_v59  ;;  %v9307_v2 = vperm.slane %v1726_v0, 1  ;;  %v6493_v48 = vld [vmem:[%s11584_s1 + $0x210] sm:$0xf]  ;;  %v7410_v19 = vld [vmem:[%s11584_s1 + $0x218] sm:$0xf0] }
 0x1dc   : > { %6470 = vmatmul.msk.bf16.gmra.mxu3 %vm548_vm0, %v8914_v25 }
 0x1dd   : > { %2934 = vmatpush.bf16.msrb.mxu2 %v6498_v3  ;;  %2744 = vmatpush.bf16.msrb.mxu0 %v6400_v57  ;;  %v1703_v1 = vmax.f32 %v1031_v47, %v1679_v8  ;;  %v6059_v3 = vld [vmem:[%s11585_s2 + $0x1] ss:$4 sm:$0x3]  ;;  %v7406_v8 = vld [vmem:[%s11584_s1 + $0x1fc] sm:$0xf] }
 0x1de   : > { %v9280_v5 = vpop.f32.mrf.mxu2  ;;  %v6483_v57 = vld [vmem:[%s11584_s1 + $0x204] sm:$0xf0] }
 0x1df   : > { %11709 = vst [vmem:[#allocation62_spill] sm:$0xff] %v9280_v5  ;;  %v2255_v12 = vpop.f32.mrf.mxu3  ;;  %v2028_v43 = vpop.f32.mrf.mxu0  ;;  %2894 = vmatpush.bf16.msrb.mxu1 %v6506_v54  ;;  %v1737_v0 = vadd.f32 %v9307_v2, %v1703_v1  ;;  %v7408_v54 = vld [vmem:[%s11584_s1 + $0x208] sm:$0xf0]  ;;  %v6387_v1 = vld [vmem:[%s11584_s1 + $0x4a0] sm:$0xf] }
 0x1e0   : > { %v9301_v41 = vadd.f32 %v2255_v12, %v2026_v32  ;;  %v9303_v5 = vpop.f32.mrf.mxu1  ;;  %v6494_v32 = vor.u32 %v7410_v19, %v6493_v48  ;;  %v1736_v12 = vadd.f32 %v9305_v58, %v1702_v23  ;;  %v6486_v23 = vor.u32 %v7406_v8, %v6483_v57  ;;  %v7429_v48 = vld [vmem:[%s11584_s1 + $0x4a8] sm:$0xf0]  ;;  %v6481_v8 = vld [vmem:[%s11584_s1 + $0x1f8] sm:$0xf]  ;;  %v7407_v57 = vld [vmem:[%s11584_s1 + $0x200] sm:$0xf0] }
 0x1e1   : > { %11711 = vst [vmem:[#allocation64_spill] sm:$0xff] %v9303_v5  ;;  %v995_v5 = vsel %vm993_vm1, %v8970_v51, %v8997_v45 }
 0x1e2   : > { %11710 = vst [vmem:[#allocation63_spill] sm:$0xff] %v9301_v41  ;;  %2935 = vmatpush.bf16.msrb.mxu2 %v6486_v23 }
 0x1e3   : > { %2895 = vmatpush.bf16.msrb.mxu1 %v6494_v32  ;;  %v6490_v32 = vor.u32 %v7408_v54, %v6489_v15  ;;  %v6482_v15 = vor.u32 %v7407_v57, %v6481_v8  ;;  %v9360_v54 = vperm.slane %v6059_v3, 1 }
 0x1e5   : > { %2974 = vmatpush.bf16.msrb.mxu3 %v6490_v32 }
 0x1e6   : > { %v9320_v59 = vpop.f32.mrf.mxu2 }
 0x1e7   : > { %11712 = vst [vmem:[#allocation65_spill] sm:$0xff] %v9320_v59  ;;  %v2257_v36 = vpop.f32.mrf.mxu3  ;;  %v2031_v47 = vpop.f32.mrf.mxu0  ;;  %v6388_v59 = vor.u32 %v7429_v48, %v6387_v1  ;;  %v1760_v1 = vmax.f32 %v1736_v12, 0.0  ;;  %v1761_v48 = vmax.f32 %v1737_v0, 0.0  ;;  %2896 = vmatpush.bf16.msrb.mxu1 %v6482_v15  ;;  %v1032_v0 = vmax.f32 %v8263_v62, %v995_v5 }
 0x1e8   : > { %v9340_v19 = vadd.f32 %v2257_v36, %v2028_v43  ;;  %v9342_v41 = vpop.f32.mrf.mxu1  ;;  %v6060_v43 = vld [vmem:[%s11585_s2 + $0x2] ss:$4 sm:$0x3]  ;;  %v9358_v36 = vperm.slane %v6059_v3, 0  ;;  %v1033_v3 = vmax.f32 %v8528_v16, %v8997_v45 }
 0x1e9   : > { %11714 = vst [vmem:[#allocation67_spill] sm:$0xff] %v9342_v41  ;;  %6313 = vmatmul.msk.bf16.gmra.mxu0 %vm548_vm0, %v8914_v25  ;;  %v1465_v41 = vadd.f32 %v8870_v18, %v8551_v35  ;;  %v9377_v8 = vperm.slane %v6060_v43, 0  ;;  %v9379_v35 = vperm.slane %v6060_v43, 1  ;;  %v996_v43 = vsel %vm993_vm1, %v9027_v22, %v9031_v60 }
 0x1ea   : > { %11713 = vst [vmem:[#allocation66_spill] sm:$0xff] %v9340_v19  ;;  %v9362_v19 = vpop.permute.xlu2 %1608  ;;  %6319 = vmatmul.msk.bf16.gmra.mxu1 %vm548_vm0, %v8914_v25  ;;  %6465 = vmatmul.msk.bf16.gmra.mxu2 %vm548_vm0, %v8987_v6  ;;  %v1599_v51 = vpop.permute.xlu0 %1598  ;;  %v1789_v18 = vmul.f32 %v9358_v36, %v1760_v1 }
 0x1eb   : > { %v1601_v23 = vpop.permute.xlu1 %1600  ;;  %2745 = vmatpush.bf16.msrb.mxu0 %v6388_v59  ;;  %v1790_v59 = vmul.f32 %v9360_v54, %v1761_v48 }
 0x1ec   : > { %6471 = vmatmul.msk.bf16.gmra.mxu3 %vm548_vm0, %v8987_v6  ;;  %v1643_v12 = vsel %vm993_vm1, %v1599_v51, %v1601_v23  ;;  %v1681_v25 = vmax.f32 %v8893_v9, %v1601_v23  ;;  %v1818_v1 = vadd.f32 %v9377_v8, %v1789_v18  ;;  %v1034_v18 = vmax.f32 %v8295_v14, %v996_v43 }
 0x1ed   : > { %v1680_v57 = vmax.f32 %v1465_v41, %v1643_v12  ;;  %v1685_v41 = vmax.f32 %v8973_v11, %v9362_v19  ;;  %v1819_v48 = vadd.f32 %v9379_v35, %v1790_v59 }
 0x1ee   : > { %v1705_v16 = vmax.f32 %v1033_v3, %v1681_v25  ;;  %v9383_v45 = vpop.f32.mrf.mxu2  ;;  %v1035_v25 = vmax.f32 %v8599_v44, %v9031_v60 }
 0x1ef   : > { %v1704_v32 = vmax.f32 %v1032_v0, %v1680_v57  ;;  %v2260_v27 = vpop.f32.mrf.mxu3  ;;  %v2033_v51 = vpop.f32.mrf.mxu0 }
 0x1f0   : > { %v1739_v9 = vadd.f32 %v9307_v2, %v1705_v16  ;;  %v9386_v15 = vadd.f32 %v2260_v27, %v2031_v47  ;;  %v9388_v62 = vpop.f32.mrf.mxu1  ;;  %v1468_v27 = vadd.f32 %v8901_v63, %v8585_v13  ;;  %v1037_v47 = vmax.f32 %v8602_v30, %v9064_v46 }
 0x1f1   : > { %v1738_v5 = vadd.f32 %v9305_v58, %v1704_v32  ;;  %v3258_v16 = vpack.c.bf16 %v1819_v48, %v1818_v1 }
 0x1f2   : > { %11715 = vst [vmem:[#allocation68_spill] sm:$0xff] %v9386_v15  ;;  %v1763_v23 = vmax.f32 %v1739_v9, 0.0  ;;  %v9398_v3 = vpop.permute.xlu2 %1614  ;;  %v1709_v59 = vmax.f32 %v1037_v47, %v1685_v41  ;;  %v997_v41 = vsel %vm993_vm1, %v9029_v20, %v9064_v46 }
 0x1f3   : > { %v1762_v11 = vmax.f32 %v1738_v5, 0.0  ;;  %v1605_v12 = vpop.permute.xlu0 %1604  ;;  %v3593_v47 = vunpack.c.h.b16 %v3258_v16  ;;  %v3592_v20 = vunpack.c.l.b16 %v3258_v16 }
 0x1f4   : > { %v1792_v22 = vmul.f32 %v9360_v54, %v1763_v23  ;;  %v1644_v0 = vsel %vm993_vm1, %v9299_v26, %v1605_v12  ;;  %v1683_v57 = vmax.f32 %v8931_v31, %v1605_v12  ;;  %v1743_v43 = vadd.f32 %v9307_v2, %v1709_v59 }
 0x1f5   : > { %v1791_v13 = vmul.f32 %v9358_v36, %v1762_v11  ;;  %v1682_v63 = vmax.f32 %v1468_v27, %v1644_v0  ;;  %v1470_v27 = vadd.f32 %v8939_v37, %v8629_v61  ;;  %v1036_v61 = vmax.f32 %v8331_v38, %v997_v41 }
 0x1f6   : > { %v1821_v30 = vadd.f32 %v9379_v35, %v1792_v22  ;;  %v1707_v32 = vmax.f32 %v1035_v25, %v1683_v57  ;;  %v9413_v9 = vpop.f32.mrf.mxu2  ;;  %v1043_v37 = vmax.f32 %v8690_v56, %v9124_v10  ;;  %v1767_v59 = vmax.f32 %v1743_v43, 0.0 }
 0x1f7   : > { %v1820_v44 = vadd.f32 %v9377_v8, %v1791_v13  ;;  %v1706_v60 = vmax.f32 %v1034_v18, %v1682_v63  ;;  %v2262_v5 = vpop.f32.mrf.mxu3  ;;  %v2036_v23 = vpop.f32.mrf.mxu0 }
 0x1f8   : > { %v1741_v26 = vadd.f32 %v9307_v2, %v1707_v32  ;;  %v9417_v31 = vadd.f32 %v2262_v5, %v2033_v51  ;;  %v9419_v14 = vpop.f32.mrf.mxu1  ;;  %v1796_v5 = vmul.f32 %v9360_v54, %v1767_v59  ;;  %v999_v59 = vsel %vm993_vm1, %v9088_v29, %v9114_v33 }
 0x1f9   : > { %v3259_v1 = vpack.c.bf16 %v1821_v30, %v1820_v44  ;;  %v1740_v48 = vadd.f32 %v9305_v58, %v1706_v60  ;;  %6314 = vmatmul.msk.bf16.gmra.mxu0 %vm548_vm0, %v8987_v6 }
 0x1fa   : > { %11716 = vst [vmem:[#allocation69_spill] sm:$0xff] %v9417_v31  ;;  %v1765_v51 = vmax.f32 %v1741_v26, 0.0  ;;  %6320 = vmatmul.msk.bf16.gmra.mxu1 %vm548_vm0, %v8987_v6  ;;  %6466 = vmatmul.msk.bf16.gmra.mxu2 %vm548_vm0, %v9042_v7  ;;  %v1607_v46 = vpop.permute.xlu1 %1606  ;;  %v11804_v31 = vld [vmem:[#allocation35_spill] sm:$0xff] }
 0x1fb   : > { %v3595_v11 = vunpack.c.h.b16 %v3259_v1  ;;  %v1764_v12 = vmax.f32 %v1740_v48, 0.0  ;;  %v1645_v25 = vsel %vm993_vm1, %v1607_v46, %v9362_v19  ;;  %v9436_v22 = vpop.permute.xlu2 %1620  ;;  %v3594_v0 = vunpack.c.l.b16 %v3259_v1 }
 0x1fc   : > { %6472 = vmatmul.msk.bf16.gmra.mxu3 %vm548_vm0, %v9042_v7  ;;  %v1684_v57 = vmax.f32 %v1470_v27, %v1645_v25  ;;  %v1691_v18 = vmax.f32 %v9075_v39, %v9436_v22  ;;  %v1794_v16 = vmul.f32 %v9360_v54, %v1765_v51  ;;  %v1473_v48 = vadd.f32 %v8981_v24, %v8665_v28 }
 0x1fd   : > { %v9445_v13 = vpack.c.b16 %v3595_v11, %v3593_v47  ;;  %v9447_v63 = vpack.c.b16 %v3594_v0, %v3592_v20  ;;  %v1793_v19 = vmul.f32 %v9358_v36, %v1764_v12  ;;  %v1039_v47 = vmax.f32 %v8640_v55, %v9066_v49 }
 0x1fe   : > { %v1708_v38 = vmax.f32 %v1036_v61, %v1684_v57  ;;  %v9451_v30 = vmax.f32 %v1043_v37, %v1691_v18  ;;  %v9453_v56 = vpop.f32.mrf.mxu2  ;;  %v1823_v1 = vadd.f32 %v9379_v35, %v1794_v16  ;;  %v1825_v28 = vadd.f32 %v9379_v35, %v1796_v5  ;;  %v9487_v16 = vld [vmem:[%s7882_s21 + $0x8] sm:$0xff]  ;;  %v11721_v5 = vld [vmem:[#allocation38_spill] sm:$0xff] }
 0x1ff   : > { %v2265_v10 = vpop.f32.mrf.mxu3  ;;  %v2038_v32 = vpop.f32.mrf.mxu0  ;;  %v1822_v43 = vadd.f32 %v9377_v8, %v1793_v19  ;;  %v11718_v55 = vmax.f32 %v8357_v53, %v9070_v52  ;;  %v7602_v52 = vld [vmem:[%s7882_s21] sm:$0xff] }
 0x200   : > { %v1742_v44 = vadd.f32 %v9305_v58, %v1708_v38  ;;  %v9456_v60 = vadd.f32 %v2265_v10, %v2036_v23  ;;  %v9458_v39 = vpop.f32.mrf.mxu1 }
 0x201   : > { %v3260_v24 = vpack.c.bf16 %v1823_v1, %v1822_v43  ;;  %v11722_v1 = vld [vmem:[#allocation16_spill] sm:$0xff] }
 0x202   : > { %11717 = vst [vmem:[#allocation70_spill] sm:$0xff] %v9456_v60  ;;  %v1766_v26 = vmax.f32 %v1742_v44, 0.0  ;;  %v1611_v41 = vpop.permute.xlu0 %1610  ;;  %v11720_v44 = vld [vmem:[#allocation17_spill] sm:$0xff] }
 0x203   : > { %v1613_v27 = vpop.permute.xlu1 %1612  ;;  %v3596_v38 = vunpack.c.l.b16 %v3260_v24  ;;  %v1475_v29 = vadd.f32 %v11721_v5, %v11720_v44  ;;  %v3597_v43 = vunpack.c.h.b16 %v3260_v24 }
 0x204   : > { %v1795_v23 = vmul.f32 %v9358_v36, %v1766_v26  ;;  %v1646_v51 = vsel %vm993_vm1, %v1611_v41, %v1613_v27  ;;  %v1687_v46 = vmax.f32 %v9014_v50, %v1613_v27  ;;  %v11723_v27 = vld [vmem:[#allocation39_spill] sm:$0xff] }
 0x205   : > { %v1686_v20 = vmax.f32 %v1473_v48, %v1646_v51  ;;  %v1041_v48 = vmax.f32 %v11722_v1, %v9114_v33  ;;  %v11725_v51 = vld [vmem:[#allocation2_spill] sm:$0xff] }
 0x206   : > { %v1711_v11 = vmax.f32 %v1039_v47, %v1687_v46  ;;  %v9470_v12 = vpop.f32.mrf.mxu2  ;;  %v1824_v25 = vadd.f32 %v9377_v8, %v1795_v23  ;;  %v1040_v46 = vmax.f32 %v11725_v51, %v999_v59 }
 0x207   : > { %v1710_v49 = vmax.f32 %v11718_v55, %v1686_v20  ;;  %v2267_v0 = vpop.f32.mrf.mxu3  ;;  %v2041_v61 = vpop.f32.mrf.mxu0 }
 0x208   : > { %v1745_v37 = vadd.f32 %v9307_v2, %v1711_v11  ;;  %v9478_v50 = vadd.f32 %v2267_v0, %v2038_v32  ;;  %v9480_v57 = vpop.f32.mrf.mxu1  ;;  %v3261_v18 = vpack.c.bf16 %v1825_v28, %v1824_v25 }
 0x209   : > { %v1744_v19 = vadd.f32 %v9305_v58, %v1710_v49  ;;  %6473 = vmatmul.msk.bf16.vlgmr.msrb.gmra.mxu0 %vm548_vm0, %v9487_v16 }
 0x20a   : > { %11719 = vst [vmem:[#allocation71_spill] sm:$0xff] %v9478_v50  ;;  %v1769_v53 = vmax.f32 %v1745_v37, 0.0  ;;  %6563 = vmatmul.msk.bf16.vlgmr.msrb.gmra.mxu1 %vm548_vm0, %v8763_v40  ;;  %6569 = vmatmul.msk.bf16.vlgmr.msrb.gmra.mxu2 %vm548_vm0, %v7602_v52  ;;  %v3598_v10 = vunpack.c.l.b16 %v3261_v18  ;;  %v3599_v32 = vunpack.c.h.b16 %v3261_v18 }
 0x20b   : > { %v1768_v26 = vmax.f32 %v1744_v19, 0.0  ;;  %v1617_v41 = vpop.permute.xlu0 %1616  ;;  %v1749_v19 = vadd.f32 %v9307_v2, %v9451_v30 }
 0x20c   : > { %6575 = vmatmul.msk.bf16.vlgmr.msrb.gmra.mxu3 %vm548_vm0, %v7602_v52  ;;  %v1647_v40 = vsel %vm993_vm1, %v9398_v3, %v1617_v41  ;;  %v1689_v47 = vmax.f32 %v11723_v27, %v1617_v41  ;;  %v9503_v23 = vpack.c.b16 %v3598_v10, %v3596_v38  ;;  %v9506_v11 = vpack.c.b16 %v3599_v32, %v3597_v43  ;;  %v11728_v10 = vld [vmem:[#allocation18_spill] sm:$0xff]  ;;  %v11729_v32 = vld [vmem:[#allocation40_spill] sm:$0xff] }
 0x20d   : > { %v1688_v20 = vmax.f32 %v1475_v29, %v1647_v40  ;;  %v1797_v25 = vmul.f32 %v9358_v36, %v1768_v26  ;;  %v1798_v28 = vmul.f32 %v9360_v54, %v1769_v53  ;;  %v1478_v44 = vadd.f32 %v11729_v32, %v11728_v10 }
 0x20e   : > { %11724 = vst [vmem:[#allocation17_spill] sm:$0xff] %v9503_v23  ;;  %v1713_v24 = vmax.f32 %v1041_v48, %v1689_v47  ;;  %v9510_v33 = vpop.f32.mrf.mxu2  ;;  %v1773_v30 = vmax.f32 %v1749_v19, 0.0  ;;  %v11730_v47 = vmax.f32 %v8395_v17, %v9128_v42 }
 0x20f   : > { %11726 = vst [vmem:[#allocation38_spill] sm:$0xff] %v9506_v11  ;;  %v1712_v55 = vmax.f32 %v1040_v46, %v1688_v20  ;;  %v2270_v49 = vpop.f32.mrf.mxu3  ;;  %v2043_v0 = vpop.f32.mrf.mxu0  ;;  %v1826_v52 = vadd.f32 %v9377_v8, %v1797_v25  ;;  %v1827_v53 = vadd.f32 %v9379_v35, %v1798_v28 }
 0x210   : > { %v1747_v3 = vadd.f32 %v9307_v2, %v1713_v24  ;;  %v9513_v37 = vadd.f32 %v2270_v49, %v2041_v61  ;;  %v9515_v18 = vpop.f32.mrf.mxu1  ;;  %v1802_v49 = vmul.f32 %v9360_v54, %v1773_v30 }
 0x211   : > { %v1746_v59 = vadd.f32 %v9305_v58, %v1712_v55  ;;  %v3262_v1 = vpack.c.bf16 %v1827_v53, %v1826_v52  ;;  %v7603_v55 = vld [vmem:[%s7882_s21 + $0x10] sm:$0xff] }
 0x212   : > { %11727 = vst [vmem:[#allocation16_spill] sm:$0xff] %v9513_v37  ;;  %v1771_v38 = vmax.f32 %v1747_v3, 0.0  ;;  %v1831_v10 = vadd.f32 %v9379_v35, %v1802_v49 }
 0x213   : > { %v1770_v5 = vmax.f32 %v1746_v59, 0.0  ;;  %v1619_v29 = vpop.permute.xlu1 %1618  ;;  %v3600_v17 = vunpack.c.l.b16 %v3262_v1  ;;  %v3601_v3 = vunpack.c.h.b16 %v3262_v1 }
 0x214   : > { %v1800_v61 = vmul.f32 %v9360_v54, %v1771_v38  ;;  %v1648_v26 = vsel %vm993_vm1, %v1619_v29, %v9436_v22 }
 0x215   : > { %v1799_v41 = vmul.f32 %v9358_v36, %v1770_v5  ;;  %v1690_v43 = vmax.f32 %v1478_v44, %v1648_v26 }
 0x216   : > { %v1829_v48 = vadd.f32 %v9379_v35, %v1800_v61  ;;  %v9529_v40 = vpop.f32.mrf.mxu2 }
 0x217   : > { %v1828_v27 = vadd.f32 %v9377_v8, %v1799_v41  ;;  %v1714_v51 = vmax.f32 %v11730_v47, %v1690_v43  ;;  %v2272_v46 = vpop.f32.mrf.mxu3  ;;  %v2046_v20 = vpop.f32.mrf.mxu0  ;;  %v7604_v47 = vld [vmem:[%s7882_s21 + $0x18] sm:$0xff] }
 0x218   : > { %v9535_v25 = vadd.f32 %v2272_v46, %v2043_v0  ;;  %v9537_v22 = vpop.f32.mrf.mxu1 }
 0x219   : > { %v3263_v28 = vpack.c.bf16 %v1829_v48, %v1828_v27  ;;  %v1748_v24 = vadd.f32 %v9305_v58, %v1714_v51  ;;  %6474 = vmatmul.msk.bf16.gmra.mxu0 %vm548_vm0, %v7603_v55 }
 0x21a   : > { %11731 = vst [vmem:[#allocation39_spill] sm:$0xff] %v9535_v25  ;;  %6564 = vmatmul.msk.bf16.gmra.mxu1 %vm548_vm0, %v9487_v16  ;;  %6570 = vmatmul.msk.bf16.gmra.mxu2 %vm548_vm0, %v9487_v16 }
 0x21b   : > { %v1772_v42 = vmax.f32 %v1748_v24, 0.0  ;;  %v3602_v0 = vunpack.c.l.b16 %v3263_v28  ;;  %v3603_v59 = vunpack.c.h.b16 %v3263_v28  ;;  %v11737_v28 = vld [vmem:[#allocation59_spill] sm:$0xff] }
 0x21c   : > { %6576 = vmatmul.msk.bf16.gmra.mxu3 %vm548_vm0, %v9487_v16 }
 0x21d   : > { %v1801_v19 = vmul.f32 %v9358_v36, %v1772_v42  ;;  %v9550_v52 = vpack.c.b16 %v3602_v0, %v3600_v17  ;;  %v9552_v53 = vpack.c.b16 %v3603_v59, %v3601_v3  ;;  %v11738_v59 = vld [vmem:[#allocation61_spill] sm:$0xff] }
 0x21e   : > { %v9554_v38 = vpop.f32.mrf.mxu2 }
 0x21f   : > { %11732 = vst [vmem:[#allocation2_spill] sm:$0xff] %v9550_v52  ;;  %v1830_v32 = vadd.f32 %v9377_v8, %v1801_v19  ;;  %v2275_v44 = vpop.f32.mrf.mxu3  ;;  %v2048_v5 = vpop.f32.mrf.mxu0 }
 0x220   : > { %11733 = vst [vmem:[#allocation18_spill] sm:$0xff] %v9552_v53  ;;  %v9558_v29 = vadd.f32 %v2275_v44, %v2046_v20  ;;  %v9560_v61 = vpop.f32.mrf.mxu1  ;;  %v7454_v20 = vld [vmem:[%s11586_s3 + $0x30] sm:$0xff] }
 0x221   : > { %v9562_v16 = vpack.c.bf16 %v1831_v10, %v1830_v32  ;;  %v11739_v32 = vld [vmem:[#allocation62_spill] sm:$0xff] }
 0x222   : > { %11734 = vst [vmem:[#allocation40_spill] sm:$0xff] %v9558_v29 }
 0x223   : > { %11735 = vst [vmem:[#allocation72_spill] sm:$0xff] %v9562_v16 }
 0x226   : > { %v9564_v26 = vpop.f32.mrf.mxu2 }
 0x227   : > { %v2277_v41 = vpop.f32.mrf.mxu3  ;;  %v2289_v43 = vpop.f32.mrf.mxu0 }
 0x228   : > { %v9566_v30 = vadd.f32 %v2277_v41, %v2048_v5  ;;  %v9569_v1 = vadd.f32 %v2289_v43, %v9200_v34  ;;  %v2328_v48 = vpop.f32.mrf.mxu1  ;;  %v7455_v34 = vld [vmem:[%s11586_s3 + $0x38] sm:$0xff]  ;;  %v7605_v5 = vld [vmem:[%s7882_s21 + $0x20] sm:$0xff] }
 0x229   : > { %v2329_v27 = vadd.f32 %v2328_v48, %v9216_v4  ;;  %6475 = vmatmul.msk.bf16.gmra.mxu0 %vm548_vm0, %v7604_v47  ;;  %3704 = vmatpush.bf16.msra.mxu2 %v7455_v34  ;;  %v7451_v41 = vld [vmem:[%s11586_s3 + $0x18] sm:$0xff] }
 0x22a   : > { %11736 = vst [vmem:[#allocation73_spill] sm:$0xff] %v9566_v30  ;;  %6565 = vmatmul.msk.bf16.gmra.mxu1 %vm548_vm0, %v7603_v55  ;;  %6571 = vmatmul.msk.bf16.gmra.mxu2 %vm548_vm0, %v7603_v55  ;;  %v7459_v43 = vld [vmem:[%s11586_s3 + $0x58] sm:$0xff] }
 0x22b   : > { %2384 = vrot.lane.b32.xlu0 %v2329_v27, %s7636_s11  ;;  %2382 = vrot.lane.b32.xlu2 %v9569_v1, %s7636_s11 }
 0x22c   : > { %6577 = vmatmul.msk.bf16.gmra.mxu3 %vm548_vm0, %v7603_v55  ;;  %v7453_v55 = vld [vmem:[%s11586_s3 + $0x28] sm:$0xff] }
 0x22d   : > { %3705 = vmatpush.bf16.msra.mxu2 %v7454_v20  ;;  %3737 = vmatpush.bf16.msra.mxu3 %v7459_v43  ;;  %v7458_v20 = vld [vmem:[%s11586_s3 + $0x50] sm:$0xff] }
 0x22e   : > { %v9583_v4 = vpop.f32.mrf.mxu2 }
 0x22f   : > { %v9585_v51 = vpop.f32.mrf.mxu3  ;;  %v2291_v46 = vpop.f32.mrf.mxu0 }
 0x230   : > { %v9591_v24 = vadd.f32 %v2291_v46, %v11737_v28  ;;  %v2330_v49 = vpop.f32.mrf.mxu1  ;;  %v7450_v46 = vld [vmem:[%s11586_s3 + $0x10] sm:$0xff] }
 0x231   : > { %v2331_v17 = vadd.f32 %v2330_v49, %v9241_v21  ;;  %3706 = vmatpush.bf16.msra.mxu2 %v7453_v55  ;;  %v7452_v21 = vld [vmem:[%s11586_s3 + $0x20] sm:$0xff]  ;;  %v11740_v28 = vld [vmem:[#allocation64_spill] sm:$0xff]  ;;  %3738 = vmatpush.bf16.msra.mxu3 %v7458_v20 }
 0x232   : > { %2386 = vrot.lane.b32.xlu1 %v9591_v24, %s7636_s11  ;;  %v7456_v20 = vld [vmem:[%s11586_s3 + $0x40] sm:$0xff] }
 0x233   : > { %2388 = vrot.lane.b32.xlu2 %v2331_v17, %s7636_s11 }
 0x235   : > { %3707 = vmatpush.bf16.msra.mxu2 %v7452_v21  ;;  %v7457_v21 = vld [vmem:[%s11586_s3 + $0x48] sm:$0xff] }
 0x236   : > { %v9600_v42 = vpop.f32.mrf.mxu2  ;;  %3739 = vmatpush.bf16.msra.mxu3 %v7457_v21 }
 0x237   : > { %v9602_v0 = vpop.f32.mrf.mxu3  ;;  %v2294_v3 = vpop.f32.mrf.mxu0 }
 0x238   : > { %v9608_v19 = vadd.f32 %v2294_v3, %v11738_v59  ;;  %v2333_v10 = vpop.f32.mrf.mxu1  ;;  %v7449_v3 = vld [vmem:[%s11586_s3 + $0x8] sm:$0xff] }
 0x239   : > { %v2334_v44 = vadd.f32 %v2333_v10, %v11739_v32  ;;  %6476 = vmatmul.msk.bf16.gmra.mxu0 %vm548_vm0, %v7605_v5  ;;  %3708 = vmatpush.bf16.msra.mxu2 %v7451_v41  ;;  %v11742_v41 = vld [vmem:[#allocation67_spill] sm:$0xff] }
 0x23a   : > { %6566 = vmatmul.msk.bf16.gmra.mxu1 %vm548_vm0, %v7604_v47  ;;  %6572 = vmatmul.msk.bf16.gmra.mxu2 %vm548_vm0, %v7604_v47 }
 0x23b   : > { %2390 = vrot.lane.b32.xlu0 %v9608_v19, %s7636_s11  ;;  %2392 = vrot.lane.b32.xlu1 %v2334_v44, %s7636_s11  ;;  %v7448_v44 = vld [vmem:[%s11586_s3] sm:$0xff] }
 0x23c   : > { %6578 = vmatmul.msk.bf16.gmra.mxu3 %vm548_vm0, %v7604_v47  ;;  %v11741_v47 = vld [vmem:[#allocation65_spill] sm:$0xff] }
 0x23d   : > { %3709 = vmatpush.bf16.msra.mxu2 %v7450_v46  ;;  %3740 = vmatpush.bf16.msra.mxu3 %v7456_v20 }
 0x23e   : > { %v9625_v48 = vpop.f32.mrf.mxu2 }
 0x23f   : > { %v9627_v27 = vpop.f32.mrf.mxu3  ;;  %v2296_v34 = vpop.f32.mrf.mxu0 }
 0x240   : > { %v9636_v49 = vadd.f32 %v2296_v34, %v11740_v28  ;;  %v2335_v17 = vpop.f32.mrf.mxu1 }
 0x241   : > { %v2336_v55 = vadd.f32 %v2335_v17, %v11741_v47  ;;  %3710 = vmatpush.bf16.msra.mxu2 %v7449_v3 }
 0x242   : > { %2394 = vrot.lane.b32.xlu2 %v9636_v49, %s7636_s11 }
 0x243   : > { %2396 = vrot.lane.b32.xlu0 %v2336_v55, %s7636_s11 }
 0x245   : > { %3711 = vmatpush.bf16.msra.mxu2 %v7448_v44 }
 0x246   : > { %v9648_v59 = vpop.f32.mrf.mxu2 }
 0x247   : > { %v9650_v10 = vpop.f32.mrf.mxu3  ;;  %v2299_v32 = vpop.f32.mrf.mxu0 }
 0x248   : > { %v9656_v43 = vadd.f32 %v2299_v32, %v11742_v41  ;;  %v2338_v34 = vpop.f32.mrf.mxu1  ;;  %v7606_v32 = vld [vmem:[%s7882_s21 + $0x28] sm:$0xff] }
 0x249   : > { %v2339_v46 = vadd.f32 %v2338_v34, %v9383_v45  ;;  %6477 = vmatmul.msk.bf16.gmra.mxu0 %vm548_vm0, %v8987_v6 }
 0x24a   : > { %11743 = vst [vmem:[#allocation59_spill] sm:$0xff] %v9656_v43  ;;  %6567 = vmatmul.msk.bf16.gmra.mxu1 %vm548_vm0, %v7605_v5  ;;  %6573 = vmatmul.msk.bf16.gmra.mxu2 %vm548_vm0, %v7605_v5 }
 0x24b   : > { %2398 = vrot.lane.b32.xlu1 %v9656_v43, %s7636_s11  ;;  %2400 = vrot.lane.b32.xlu2 %v2339_v46, %s7636_s11 }
 0x24c   : > { %6579 = vmatmul.msk.bf16.gmra.mxu3 %vm548_vm0, %v7605_v5 }
 0x24e   : > { %v9670_v45 = vpop.f32.mrf.mxu2 }
 0x24f   : > { %11744 = vst [vmem:[#allocation61_spill] sm:$0xff] %v9670_v45  ;;  %v9672_v6 = vpop.f32.mrf.mxu3  ;;  %v2301_v28 = vpop.f32.mrf.mxu0 }
 0x250   : > { %v9675_v17 = vadd.f32 %v2301_v28, %v9388_v62  ;;  %v2340_v47 = vpop.f32.mrf.mxu1 }
 0x251   : > { %v2341_v55 = vadd.f32 %v2340_v47, %v9413_v9 }
 0x252   : > { %2402 = vrot.lane.b32.xlu0 %v9675_v17, %s7636_s11 }
 0x253   : > { %2404 = vrot.lane.b32.xlu1 %v2341_v55, %s7636_s11 }
 0x256   : > { %v9681_v3 = vpop.f32.mrf.mxu2 }
 0x257   : > { %11745 = vst [vmem:[#allocation62_spill] sm:$0xff] %v9681_v3  ;;  %v9683_v5 = vpop.f32.mrf.mxu3  ;;  %v2304_v21 = vpop.f32.mrf.mxu0  ;;  %v11805_v3 = vld [vmem:[#allocation58_spill] sm:$0xff] }
 0x259   : > { %6478 = vmatmul.msk.bf16.gmra.mxu0 %vm548_vm0, %v9042_v7 }
 0x25a   : > { %6568 = vmatmul.msk.bf16.gmra.mxu1 %vm548_vm0, %v7606_v32  ;;  %6574 = vmatmul.msk.bf16.gmra.mxu2 %vm548_vm0, %v7606_v32 }
 0x25c   : > { %6580 = vmatmul.msk.bf16.gmra.mxu3 %vm548_vm0, %v7606_v32 }
 0x25e   : > { %v9691_v62 = vpop.f32.mrf.mxu2 }
 0x25f   : > { %11746 = vst [vmem:[#allocation64_spill] sm:$0xff] %v9691_v62  ;;  %v9693_v9 = vpop.f32.mrf.mxu3  ;;  %v9695_v44 = vpop.f32.mrf.mxu0 }
 0x266   : > { %v9697_v41 = vpop.f32.mrf.mxu2 }
 0x267   : > { %11747 = vst [vmem:[#allocation65_spill] sm:$0xff] %v9697_v41  ;;  %v9699_v34 = vpop.f32.mrf.mxu3  ;;  %v9701_v46 = vpop.f32.mrf.mxu0 }
 0x26a   : > { %3712 = vmatmul.bf16.vlgmr.msra.gmra.mxu2 %v9447_v63 }
 0x26c   : > { %6777 = vmatmul.msk.bf16.vlgmr.msra.gmra.mxu3 %vm993_vm1, %v9445_v13 }
 0x26e   : > { %v9706_v7 = vpop.f32.mrf.mxu2 }
 0x26f   : > { %11748 = vst [vmem:[#allocation67_spill] sm:$0xff] %v9706_v7  ;;  %v9708_v20 = vpop.f32.mrf.mxu3  ;;  %v9710_v28 = vpop.f32.mrf.mxu0 }
 0x276   : > { %v9712_v47 = vpop.f32.mrf.mxu2 }
 0x277   : > { %11749 = vst [vmem:[#allocation74_spill] sm:$0xff] %v9712_v47  ;;  %v9714_v55 = vpop.f32.mrf.mxu3  ;;  %v9716_v32 = vpop.f32.mrf.mxu0 }
 0x27a   : > { %3717 = vmatmul.bf16.gmra.mxu2 %v9503_v23 }
 0x27c   : > { %6778 = vmatmul.msk.bf16.gmra.mxu3 %vm993_vm1, %v9506_v11 }
 0x27e   : > { %v9721_v63 = vpop.f32.mrf.mxu2 }
 0x27f   : > { %11750 = vst [vmem:[#allocation75_spill] sm:$0xff] %v9721_v63  ;;  %v9723_v13 = vpop.f32.mrf.mxu3  ;;  %v9725_v30 = vpop.f32.mrf.mxu0 }
 0x286   : > { %v9727_v29 = vpop.f32.mrf.mxu2 }
 0x287   : > { %11751 = vst [vmem:[#allocation76_spill] sm:$0xff] %v9727_v29  ;;  %v9729_v25 = vpop.f32.mrf.mxu3  ;;  %v2747_v47 = vpop.f32.mrf.mxu0 }
 0x28a   : > { %3722 = vmatmul.bf16.gmra.mxu2 %v9550_v52 }
 0x28c   : > { %6779 = vmatmul.msk.bf16.gmra.mxu3 %vm993_vm1, %v9552_v53  ;;  %v11752_v53 = vld [vmem:[#allocation21_spill] sm:$0xff] }
 0x28e   : > { %v2937_v23 = vpop.f32.mrf.mxu2 }
 0x28f   : > { %v9735_v37 = vadd.f32 %v2937_v23, %v9585_v51  ;;  %v2976_v11 = vpop.f32.mrf.mxu3  ;;  %v2749_v63 = vpop.f32.mrf.mxu0 }
 0x290   : > { %v2977_v7 = vadd.f32 %v2976_v11, %v2747_v47 }
 0x291   : > { %3030 = vrot.lane.b32.xlu0 %v9735_v37, %s7636_s11 }
 0x292   : > { %3032 = vrot.lane.b32.xlu1 %v2977_v7, %s7636_s11  ;;  %v11753_v7 = vld [vmem:[#allocation42_spill] sm:$0xff] }
 0x293   : > { %v9751_v62 = vadd.f32 %v11753_v7, %v11752_v53 }
 0x296   : > { %v2939_v29 = vpop.f32.mrf.mxu2 }
 0x297   : > { %v9741_v50 = vadd.f32 %v2939_v29, %v9602_v0  ;;  %v2978_v52 = vpop.f32.mrf.mxu3  ;;  %v2752_v60 = vpop.f32.mrf.mxu0  ;;  %v9761_v0 = vld [vmem:[%s11586_s3 + $0xb8] sm:$0xff] }
 0x298   : > { %v2979_v41 = vadd.f32 %v2978_v52, %v2749_v63  ;;  %v9756_v52 = vld [vmem:[%s11586_s3 + $0x98] sm:$0xff]  ;;  %3559 = vmatpush.bf16.msra.mxu1 %v9761_v0  ;;  %v9774_v63 = vadd.f32 %v2304_v21, %v9419_v14 }
 0x299   : > { %3034 = vrot.lane.b32.xlu2 %v9741_v50, %s7636_s11  ;;  %3526 = vmatpush.bf16.msra.mxu0 %v9756_v52 }
 0x29a   : > { %3036 = vrot.lane.b32.xlu0 %v2979_v41, %s7636_s11  ;;  %11754 = vst [vmem:[#allocation21_spill] sm:$0xff] %v9774_v63 }
 0x29e   : > { %v2942_v23 = vpop.f32.mrf.mxu2 }
 0x29f   : > { %v9747_v11 = vadd.f32 %v2942_v23, %v9627_v27  ;;  %v2981_v51 = vpop.f32.mrf.mxu3  ;;  %v2754_v47 = vpop.f32.mrf.mxu0 }
 0x2a0   : > { %v2982_v29 = vadd.f32 %v2981_v51, %v2752_v60  ;;  %v9784_v51 = vld [vmem:[%s11586_s3 + $0x90] sm:$0xff] }
 0x2a1   : > { %3038 = vrot.lane.b32.xlu1 %v9747_v11, %s7636_s11  ;;  %11755 = vst [vmem:[#allocation42_spill] sm:$0xff] %v9784_v51  ;;  %3527 = vmatpush.bf16.msra.mxu0 %v9784_v51  ;;  %v7495_v51 = vld [vmem:[%s11586_s3 + $0x178] sm:$0xff] }
 0x2a2   : > { %1622 = vrot.lane.b32.xlu0 %v9751_v62, %s7636_s11  ;;  %3040 = vrot.lane.b32.xlu2 %v2982_v29, %s7636_s11  ;;  %v11757_v29 = vld [vmem:[#allocation43_spill] sm:$0xff] }
 0x2a3   : > { %4029 = vmatpush.bf16.msrb.mxu3 %v7495_v51  ;;  %v11806_v51 = vld [vmem:[#allocation37_spill] sm:$0xff] }
 0x2a6   : > { %v2944_v60 = vpop.f32.mrf.mxu2 }
 0x2a7   : > { %v9771_v53 = vadd.f32 %v2944_v60, %v9650_v10  ;;  %v2983_v27 = vpop.f32.mrf.mxu3  ;;  %v2757_v23 = vpop.f32.mrf.mxu0 }
 0x2a8   : > { %v2984_v41 = vadd.f32 %v2983_v27, %v2754_v47  ;;  %v2343_v10 = vpop.f32.mrf.mxu1 }
 0x2a9   : > { %v2344_v7 = vadd.f32 %v2343_v10, %v9453_v56  ;;  %v9807_v56 = vld [vmem:[%s11586_s3 + $0xb0] sm:$0xff] }
 0x2aa   : > { %3042 = vrot.lane.b32.xlu0 %v9771_v53, %s7636_s11  ;;  %3044 = vrot.lane.b32.xlu1 %v2984_v41, %s7636_s11  ;;  %11759 = vst [vmem:[#allocation78_spill] sm:$0xff] %v9807_v56 }
 0x2ab   : > { %2406 = vrot.lane.b32.xlu2 %v9774_v63, %s7636_s11  ;;  %3560 = vmatpush.bf16.msra.mxu1 %v9807_v56 }
 0x2ae   : > { %v2947_v47 = vpop.f32.mrf.mxu2 }
 0x2af   : > { %v9788_v14 = vadd.f32 %v2947_v47, %v9672_v6  ;;  %v2986_v21 = vpop.f32.mrf.mxu3  ;;  %v2759_v60 = vpop.f32.mrf.mxu0  ;;  %v9802_v6 = vld [vmem:[%s11586_s3 + $0x88] sm:$0xff] }
 0x2b0   : > { %11758 = vst [vmem:[#allocation43_spill] sm:$0xff] %v9802_v6  ;;  %v2987_v10 = vadd.f32 %v2986_v21, %v2757_v23  ;;  %3528 = vmatpush.bf16.msra.mxu0 %v9802_v6 }
 0x2b1   : > { %11756 = vst [vmem:[#allocation77_spill] sm:$0xff] %v9788_v14 }
 0x2b2   : > { %2408 = vrot.lane.b32.xlu0 %v2344_v7, %s7636_s11  ;;  %1624 = vrot.lane.b32.xlu1 %v11757_v29, %s7636_s11  ;;  %v2345_v7 = vpop.f32.mrf.mxu1 }
 0x2b3   : > { %3046 = vrot.lane.b32.xlu2 %v9788_v14, %s7636_s11  ;;  %v2346_v23 = vadd.f32 %v2345_v7, %v9470_v12  ;;  %v9841_v7 = vpop.permute.xlu2 %2382  ;;  %v11803_v14 = vld [vmem:[#allocation14_spill] sm:$0xff] }
 0x2b4   : > { %v919_v15 = vadd.f32 %v11804_v31, %v11803_v14 }
 0x2b6   : > { %v2949_v27 = vpop.f32.mrf.mxu2 }
 0x2b7   : > { %v9797_v41 = vadd.f32 %v2949_v27, %v9683_v5  ;;  %v2988_v63 = vpop.f32.mrf.mxu3  ;;  %v2762_v5 = vpop.f32.mrf.mxu0 }
 0x2b8   : > { %v2989_v47 = vadd.f32 %v2988_v63, %v2759_v60  ;;  %v9820_v63 = vadd.f32 %v9695_v44, %v9458_v39 }
 0x2ba   : > { %3048 = vrot.lane.b32.xlu0 %v2987_v10, %s7636_s11  ;;  %3050 = vrot.lane.b32.xlu1 %v9797_v41, %s7636_s11  ;;  %11761 = vst [vmem:[#allocation80_spill] sm:$0xff] %v9820_v63 }
 0x2bb   : > { %3052 = vrot.lane.b32.xlu2 %v2989_v47, %s7636_s11  ;;  %v2348_v47 = vpop.f32.mrf.mxu1 }
 0x2be   : > { %v2952_v29 = vpop.f32.mrf.mxu2 }
 0x2bf   : > { %v9816_v27 = vadd.f32 %v2952_v29, %v9693_v9  ;;  %v2991_v16 = vpop.f32.mrf.mxu3  ;;  %v9831_v9 = vld [vmem:[%s11586_s3 + $0x80] sm:$0xff]  ;;  %v2764_v39 = vpop.f32.mrf.mxu0  ;;  %v9846_v29 = vld [vmem:[%s11586_s3 + $0x78] sm:$0xff] }
 0x2c0   : > { %11762 = vst [vmem:[#allocation81_spill] sm:$0xff] %v9831_v9  ;;  %3529 = vmatpush.bf16.msra.mxu0 %v9831_v9  ;;  %v2992_v60 = vadd.f32 %v2991_v16, %v2762_v5  ;;  %v9851_v16 = vld [vmem:[%s11586_s3 + $0xa8] sm:$0xff]  ;;  %v9859_v5 = vadd.f32 %v9710_v28, %v9515_v18  ;;  %v11772_v28 = vld [vmem:[#allocation26_spill] sm:$0xff] }
 0x2c1   : > { %11760 = vst [vmem:[#allocation79_spill] sm:$0xff] %v9816_v27  ;;  %3561 = vmatpush.bf16.msra.mxu1 %v9851_v16 }
 0x2c2   : > { %3054 = vrot.lane.b32.xlu0 %v9816_v27, %s7636_s11  ;;  %2410 = vrot.lane.b32.xlu1 %v9820_v63, %s7636_s11  ;;  %11764 = vst [vmem:[#allocation83_spill] sm:$0xff] %v9846_v29  ;;  %v11781_v63 = vld [vmem:[#allocation45_spill] sm:$0xff] }
 0x2c3   : > { %2412 = vrot.lane.b32.xlu2 %v2346_v23, %s7636_s11  ;;  %11765 = vst [vmem:[#allocation84_spill] sm:$0xff] %v9851_v16  ;;  %v2349_v23 = vadd.f32 %v2348_v47, %v9510_v33  ;;  %v11771_v33 = vld [vmem:[#allocation7_spill] sm:$0xff]  ;;  %v9888_v47 = vld [vmem:[%s11586_s3 + $0x70] sm:$0xff] }
 0x2c4   : > { %11767 = vst [vmem:[#allocation86_spill] sm:$0xff] %v9859_v5  ;;  %3530 = vmatpush.bf16.msra.mxu0 %v9846_v29 }
 0x2c5   : > { %11774 = vst [vmem:[#allocation7_spill] sm:$0xff] %v9888_v47 }
 0x2c6   : > { %v2954_v21 = vpop.f32.mrf.mxu2 }
 0x2c7   : > { %v9835_v44 = vadd.f32 %v2954_v21, %v9699_v34  ;;  %v2993_v12 = vpop.f32.mrf.mxu3  ;;  %v9855_v34 = vadd.f32 %v9701_v46, %v9480_v57  ;;  %v2350_v21 = vpop.f32.mrf.mxu1  ;;  %v11768_v57 = vld [vmem:[#allocation4_spill] sm:$0xff]  ;;  %v11769_v46 = vld [vmem:[#allocation22_spill] sm:$0xff] }
 0x2c8   : > { %v2994_v10 = vadd.f32 %v2993_v12, %v2764_v39  ;;  %v9871_v39 = vadd.f32 %v11769_v46, %v11768_v57  ;;  %v2351_v18 = vadd.f32 %v2350_v21, %v9529_v40  ;;  %v9876_v12 = vadd.f32 %v11772_v28, %v11771_v33  ;;  %3531 = vmatpush.bf16.msra.mxu0 %v9888_v47  ;;  %v11775_v57 = vld [vmem:[#allocation5_spill] sm:$0xff]  ;;  %v11776_v46 = vld [vmem:[#allocation23_spill] sm:$0xff]  ;;  %v11777_v28 = vld [vmem:[#allocation8_spill] sm:$0xff] }
 0x2c9   : > { %11763 = vst [vmem:[#allocation82_spill] sm:$0xff] %v9835_v44  ;;  %v912_v33 = vadd.f32 %v11776_v46, %v11775_v57 }
 0x2ca   : > { %3060 = vrot.lane.b32.xlu0 %v2994_v10, %s7636_s11  ;;  %3056 = vrot.lane.b32.xlu1 %v2992_v60, %s7636_s11  ;;  %11766 = vst [vmem:[#allocation85_spill] sm:$0xff] %v9855_v34  ;;  %v9878_v60 = vpop.permute.xlu2 %2388  ;;  %v2767_v10 = vpop.f32.mrf.mxu0 }
 0x2cb   : > { %3058 = vrot.lane.b32.xlu2 %v9835_v44, %s7636_s11  ;;  %11770 = vst [vmem:[#allocation4_spill] sm:$0xff] %v9871_v39  ;;  %v11780_v44 = vld [vmem:[#allocation25_spill] sm:$0xff] }
 0x2cc   : > { %11773 = vst [vmem:[#allocation22_spill] sm:$0xff] %v9876_v12  ;;  %v9914_v29 = vadd.f32 %v11781_v63, %v11780_v44 }
 0x2ce   : > { %v2957_v21 = vpop.f32.mrf.mxu2  ;;  %11782 = vst [vmem:[#allocation5_spill] sm:$0xff] %v9914_v29 }
 0x2cf   : > { %v2996_v40 = vpop.f32.mrf.mxu3  ;;  %v9904_v27 = vadd.f32 %v2957_v21, %v9708_v20  ;;  %v11784_v21 = vld [vmem:[#allocation50_spill] sm:$0xff] }
 0x2d0   : > { %v2997_v47 = vadd.f32 %v2996_v40, %v2767_v10  ;;  %v11783_v40 = vld [vmem:[#allocation29_spill] sm:$0xff] }
 0x2d1   : > { %11779 = vst [vmem:[#allocation26_spill] sm:$0xff] %v9904_v27 }
 0x2d2   : > { %2418 = vrot.lane.b32.xlu0 %v9859_v5, %s7636_s11  ;;  %2414 = vrot.lane.b32.xlu1 %v9855_v34, %s7636_s11  ;;  %v9897_v5 = vpop.permute.xlu1 %2386  ;;  %v9901_v34 = vpop.permute.xlu2 %2394 }
 0x2d3   : > { %2416 = vrot.lane.b32.xlu2 %v2349_v23, %s7636_s11  ;;  %v9890_v23 = vpop.f32.mrf.mxu1  ;;  %v2769_v57 = vpop.f32.mrf.mxu0 }
 0x2d6   : > { %v2959_v10 = vpop.f32.mrf.mxu2 }
 0x2d7   : > { %v2998_v46 = vpop.f32.mrf.mxu3  ;;  %v9931_v63 = vadd.f32 %v2959_v10, %v9714_v55  ;;  %v9946_v55 = vld [vmem:[%s11586_s3 + $0x68] sm:$0xff]  ;;  %v9951_v10 = vld [vmem:[%s11586_s3 + $0xa0] sm:$0xff] }
 0x2d8   : > { %11789 = vst [vmem:[#allocation25_spill] sm:$0xff] %v9951_v10  ;;  %3532 = vmatpush.bf16.msra.mxu0 %v9946_v55  ;;  %3562 = vmatpush.bf16.msra.mxu1 %v9951_v10 }
 0x2d9   : > { %11786 = vst [vmem:[#allocation8_spill] sm:$0xff] %v9931_v63 }
 0x2da   : > { %977 = vrot.lane.b32.xlu0 %v9871_v39, %s7636_s11  ;;  %2420 = vrot.lane.b32.xlu1 %v2351_v18, %s7636_s11  ;;  %v11778_v18 = vld [vmem:[#allocation27_spill] sm:$0xff]  ;;  %v9918_v20 = vpop.permute.xlu1 %2392 }
 0x2db   : > { %981 = vrot.lane.b32.xlu2 %v9876_v12, %s7636_s11  ;;  %v914_v39 = vadd.f32 %v11778_v18, %v11777_v28  ;;  %v9899_v12 = vpop.permute.xlu0 %2384  ;;  %v9910_v28 = vpop.f32.mrf.mxu1  ;;  %v2999_v18 = vadd.f32 %v2998_v46, %v2769_v57  ;;  %v11787_v46 = vld [vmem:[#allocation46_spill] sm:$0xff]  ;;  %11788 = vst [vmem:[#allocation27_spill] sm:$0xff] %v9946_v55 }
 0x2dc   : > { %v2467_v31 = vmax.f32 %v9569_v1, %v9899_v12  ;;  %v10018_v1 = vld [vmem:[%s11586_s3 + $0x118] sm:$0xff] }
 0x2dd   : > { %3879 = vmatpush.bf16.msrb.mxu1 %v10018_v1 }
 0x2e2   : > { %983 = vrot.lane.b32.xlu0 %v914_v39, %s7636_s11  ;;  %979 = vrot.lane.b32.xlu1 %v912_v33, %s7636_s11  ;;  %v9923_v39 = vpop.permute.xlu2 %2400  ;;  %v9928_v33 = vadd.f32 %v11784_v21, %v11783_v40  ;;  %v9933_v57 = vpop.permute.xlu1 %2398  ;;  %v11790_v40 = vld [vmem:[#allocation11_spill] sm:$0xff] }
 0x2e3   : > { %3062 = vrot.lane.b32.xlu2 %v9904_v27, %s7636_s11  ;;  %v9916_v9 = vpop.permute.xlu0 %2390  ;;  %v2898_v44 = vpop.f32.mrf.mxu1  ;;  %v11791_v21 = vld [vmem:[#allocation31_spill] sm:$0xff] }
 0x2e4   : > { %11785 = vst [vmem:[#allocation23_spill] sm:$0xff] %v9928_v33  ;;  %v11795_v27 = vld [vmem:[#allocation51_spill] sm:$0xff] }
 0x2ea   : > { %3064 = vrot.lane.b32.xlu0 %v2997_v47, %s7636_s11  ;;  %1626 = vrot.lane.b32.xlu1 %v9914_v29, %s7636_s11  ;;  %v11792_v29 = vld [vmem:[#allocation10_spill] sm:$0xff]  ;;  %v9968_v55 = vpop.permute.xlu1 %2404 }
 0x2eb   : > { %3068 = vrot.lane.b32.xlu2 %v2999_v18, %s7636_s11  ;;  %v9939_v47 = vpop.permute.xlu0 %2396  ;;  %v2900_v16 = vpop.f32.mrf.mxu1 }
 0x2f2   : > { %1630 = vrot.lane.b32.xlu0 %v9928_v33, %s7636_s11  ;;  %3066 = vrot.lane.b32.xlu1 %v9931_v63, %s7636_s11  ;;  %v917_v33 = vadd.f32 %v11791_v21, %v11790_v40  ;;  %v11798_v40 = vld [vmem:[#allocation34_spill] sm:$0xff]  ;;  %v11800_v21 = vld [vmem:[#allocation33_spill] sm:$0xff] }
 0x2f3   : > { %1628 = vrot.lane.b32.xlu2 %v11787_v46, %s7636_s11  ;;  %v3035_v18 = vpop.permute.xlu2 %3034  ;;  %v11793_v46 = vld [vmem:[#allocation30_spill] sm:$0xff]  ;;  %v9964_v6 = vpop.permute.xlu0 %2402 }
 0x2f4   : > { %v9959_v63 = vadd.f32 %v11793_v46, %v11792_v29  ;;  %v9975_v29 = vld [vmem:[%s11586_s3 + $0x60] sm:$0xff]  ;;  %v11801_v46 = vld [vmem:[#allocation53_spill] sm:$0xff] }
 0x2f5   : > { %11796 = vst [vmem:[#allocation29_spill] sm:$0xff] %v9975_v29  ;;  %3533 = vmatpush.bf16.msra.mxu0 %v9975_v29  ;;  %v9984_v56 = vadd.f32 %v11801_v46, %v11800_v21  ;;  %v2899_v21 = vadd.f32 %v2898_v44, %v9583_v4  ;;  %v2903_v29 = vpop.f32.mrf.mxu1  ;;  %v10013_v4 = vld [vmem:[%s11586_s3 + $0xf8] sm:$0xff]  ;;  %v11809_v44 = vld [vmem:[#allocation54_spill] sm:$0xff] }
 0x2f6   : > { %11794 = vst [vmem:[#allocation45_spill] sm:$0xff] %v9959_v63 }
 0x2f7   : > { %11802 = vst [vmem:[#allocation46_spill] sm:$0xff] %v9984_v56 }
 0x2f9   : > { %3846 = vmatpush.bf16.msrb.mxu0 %v10013_v4 }
 0x2fa   : > { %987 = vrot.lane.b32.xlu0 %v917_v33, %s7636_s11  ;;  %1632 = vrot.lane.b32.xlu1 %v11795_v27, %s7636_s11  ;;  %v11797_v33 = vld [vmem:[#allocation13_spill] sm:$0xff] }
 0x2fb   : > { %985 = vrot.lane.b32.xlu2 %v9959_v63, %s7636_s11  ;;  %v9980_v27 = vadd.f32 %v11798_v40, %v11797_v33  ;;  %v7491_v63 = vld [vmem:[%s11586_s3 + $0x158] sm:$0xff]  ;;  %v2430_v33 = vsel %vm993_vm1, %v9841_v7, %v9899_v12  ;;  %v11807_v12 = vld [vmem:[#allocation56_spill] sm:$0xff] }
 0x2fc   : > { %v9970_v10 = vpop.permute.xlu2 %3040  ;;  %3996 = vmatpush.bf16.msrb.mxu2 %v7491_v63  ;;  %v2466_v7 = vmax.f32 %v11805_v3, %v2430_v33  ;;  %v10025_v3 = vadd.f32 %v11807_v12, %v11806_v51  ;;  %v11808_v63 = vld [vmem:[#allocation57_spill] sm:$0xff]  ;;  %v2431_v33 = vsel %vm993_vm1, %v9897_v5, %v9878_v60 }
 0x2fd   : > { %11799 = vst [vmem:[#allocation50_spill] sm:$0xff] %v9980_v27 }
 0x302   : > { %1634 = vrot.lane.b32.xlu0 %v9984_v56, %s7636_s11  ;;  %989 = vrot.lane.b32.xlu1 %v9980_v27, %s7636_s11 }
 0x303   : > { %991 = vrot.lane.b32.xlu2 %v919_v15, %s7636_s11  ;;  %v3031_v40 = vpop.permute.xlu0 %3030 }
 0x304   : > { %v3033_v46 = vpop.permute.xlu1 %3032 }
 0x305   : > { %v3078_v14 = vsel %vm993_vm1, %v3031_v40, %v3033_v46  ;;  %v3115_v56 = vmax.f32 %v9735_v37, %v3033_v46  ;;  %v10007_v27 = vpop.permute.xlu2 %2406  ;;  %v7490_v37 = vld [vmem:[%s11586_s3 + $0x150] sm:$0xff]  ;;  %v2901_v40 = vadd.f32 %v2900_v16, %v9600_v42  ;;  %v10050_v42 = vadd.f32 %v9716_v32, %v9537_v22  ;;  %v2905_v16 = vpop.f32.mrf.mxu1 }
 0x306   : > { %v3114_v45 = vmax.f32 %v2899_v21, %v3078_v14  ;;  %3997 = vmatpush.bf16.msrb.mxu2 %v7490_v37  ;;  %v10054_v37 = vadd.f32 %v9725_v30, %v9560_v61  ;;  %v2962_v22 = vpop.f32.mrf.mxu2  ;;  %v3119_v32 = vmax.f32 %v9747_v11, %v9970_v10  ;;  %v2772_v61 = vpop.f32.mrf.mxu0  ;;  %v2432_v30 = vsel %vm993_vm1, %v9916_v9, %v9918_v20  ;;  %v7494_v11 = vld [vmem:[%s11586_s3 + $0x170] sm:$0xff] }
 0x307   : > { %v3139_v15 = vmax.f32 %v2467_v31, %v3115_v56  ;;  %v2469_v31 = vmax.f32 %v9591_v24, %v9878_v60  ;;  %v2471_v9 = vmax.f32 %v9608_v19, %v9918_v20  ;;  %4030 = vmatpush.bf16.msrb.mxu3 %v7494_v11  ;;  %v11811_v19 = vld [vmem:[#allocation63_spill] sm:$0xff] }
 0x308   : > { %v3138_v43 = vmax.f32 %v2466_v7, %v3114_v45 }
 0x309   : > { %v3163_v45 = vadd.f32 %v3139_v15, %v9307_v2  ;;  %v11810_v15 = vld [vmem:[#allocation60_spill] sm:$0xff]  ;;  %v3143_v20 = vmax.f32 %v2471_v9, %v3119_v32 }
 0x30a   : > { %v3162_v56 = vadd.f32 %v3138_v43, %v9305_v58  ;;  %1640 = vrot.lane.b32.xlu0 %v11808_v63, %s7636_s11  ;;  %1636 = vrot.lane.b32.xlu1 %v11809_v44, %s7636_s11  ;;  %v2468_v51 = vmax.f32 %v11810_v15, %v2431_v33  ;;  %v3001_v33 = vpop.f32.mrf.mxu3 }
 0x30b   : > { %1638 = vrot.lane.b32.xlu2 %v10025_v3, %s7636_s11  ;;  %v3187_v46 = vmax.f32 %v3163_v45, 0.0 }
 0x30c   : > { %v3186_v21 = vmax.f32 %v3162_v56, 0.0  ;;  %v3037_v43 = vpop.permute.xlu0 %3036  ;;  %v2354_v56 = vadd.f32 %v9890_v23, %v9554_v38  ;;  %v10077_v38 = vld [vmem:[%s11586_s3 + $0xf0] sm:$0xff]  ;;  %v2904_v23 = vadd.f32 %v2903_v29, %v9625_v48  ;;  %v2470_v48 = vmax.f32 %v11811_v19, %v2432_v30 }
 0x30d   : > { %v3079_v14 = vsel %vm993_vm1, %v3035_v18, %v3037_v43  ;;  %v3117_v5 = vmax.f32 %v9741_v50, %v3037_v43  ;;  %v10045_v7 = vpop.permute.xlu2 %3046  ;;  %v3211_v60 = vmul.f32 %v3187_v46, %v9360_v54  ;;  %v7489_v18 = vld [vmem:[%s11586_s3 + $0x148] sm:$0xff]  ;;  %3847 = vmatpush.bf16.msrb.mxu0 %v10077_v38  ;;  %v10105_v32 = vpop.f32.mrf.mxu1  ;;  %v3167_v30 = vadd.f32 %v3143_v20, %v9307_v2 }
 0x30e   : > { %v3116_v12 = vmax.f32 %v2901_v40, %v3079_v14  ;;  %v3210_v24 = vmul.f32 %v3186_v21, %v9358_v36  ;;  %3998 = vmatpush.bf16.msrb.mxu2 %v7489_v18 }
 0x30f   : > { %v3141_v45 = vmax.f32 %v2469_v31, %v3117_v5  ;;  %v3235_v43 = vadd.f32 %v3211_v60, %v9379_v35  ;;  %v3191_v19 = vmax.f32 %v3167_v30, 0.0 }
 0x310   : > { %v3140_v50 = vmax.f32 %v2468_v51, %v3116_v12  ;;  %v3234_v46 = vadd.f32 %v3210_v24, %v9377_v8  ;;  %v7488_v12 = vld [vmem:[%s11586_s3 + $0x140] sm:$0xff]  ;;  %v3002_v24 = vadd.f32 %v3001_v33, %v2772_v61  ;;  %v7487_v61 = vld [vmem:[%s11586_s3 + $0x138] sm:$0xff]  ;;  %v2774_v33 = vpop.f32.mrf.mxu0 }
 0x311   : > { %v3165_v63 = vadd.f32 %v3141_v45, %v9307_v2 }
 0x312   : > { %v3164_v44 = vadd.f32 %v3140_v50, %v9305_v58  ;;  %2426 = vrot.lane.b32.xlu0 %v10054_v37, %s7636_s11  ;;  %2422 = vrot.lane.b32.xlu1 %v10050_v42, %s7636_s11  ;;  %v2356_v50 = vadd.f32 %v9910_v28, %v9564_v26  ;;  %v3270_v18 = vpack.c.bf16 %v3235_v43, %v3234_v46  ;;  %v10120_v26 = vld [vmem:[%s11586_s3 + $0xe8] sm:$0xff] }
 0x313   : > { %v3189_v40 = vmax.f32 %v3165_v63, 0.0  ;;  %2424 = vrot.lane.b32.xlu2 %v2354_v56, %s7636_s11  ;;  %v3039_v21 = vpop.permute.xlu1 %3038  ;;  %3999 = vmatpush.bf16.msrb.mxu2 %v7488_v12  ;;  %v10108_v63 = vadd.f32 %v2962_v22, %v9723_v13  ;;  %v10125_v13 = vld [vmem:[%s11586_s3 + $0x110] sm:$0xff]  ;;  %v2906_v28 = vadd.f32 %v2905_v16, %v9648_v59  ;;  %v2433_v22 = vsel %vm993_vm1, %v9901_v34, %v9939_v47  ;;  %v10143_v34 = vld [vmem:[%s11586_s3 + $0xe0] sm:$0xff] }
 0x314   : > { %v3188_v31 = vmax.f32 %v3164_v44, 0.0  ;;  %v10088_v14 = vpop.permute.xlu0 %1622  ;;  %v3080_v5 = vsel %vm993_vm1, %v3039_v21, %v9970_v10  ;;  %v2473_v21 = vmax.f32 %v9636_v49, %v9939_v47  ;;  %v3415_v46 = vunpack.c.h.b16 %v3270_v18  ;;  %3848 = vmatpush.bf16.msrb.mxu0 %v10120_v26  ;;  %3880 = vmatpush.bf16.msrb.mxu1 %v10125_v13 }
 0x315   : > { %v3213_v29 = vmul.f32 %v3189_v40, %v9360_v54  ;;  %v3118_v15 = vmax.f32 %v2904_v23, %v3080_v5  ;;  %v10095_v51 = vpop.permute.xlu2 %3052  ;;  %v2964_v23 = vpop.f32.mrf.mxu2  ;;  %v7493_v40 = vld [vmem:[%s11586_s3 + $0x168] sm:$0xff]  ;;  %v3414_v20 = vunpack.c.l.b16 %v3270_v18 }
 0x316   : > { %v3212_v45 = vmul.f32 %v3188_v31, %v9358_v36  ;;  %v3003_v5 = vpop.f32.mrf.mxu3  ;;  %4031 = vmatpush.bf16.msrb.mxu3 %v7493_v40  ;;  %v10161_v18 = vadd.f32 %v2964_v23, %v9729_v25  ;;  %v10174_v25 = vld [vmem:[%s11586_s3 + $0x128] sm:$0xff] }
 0x317   : > { %v3237_v10 = vadd.f32 %v3213_v29, %v9379_v35  ;;  %v3142_v60 = vmax.f32 %v2470_v48, %v3118_v15  ;;  %4000 = vmatpush.bf16.msrb.mxu2 %v7487_v61  ;;  %v7486_v29 = vld [vmem:[%s11586_s3 + $0x130] sm:$0xff]  ;;  %v11812_v15 = vld [vmem:[#allocation66_spill] sm:$0xff]  ;;  %v3215_v61 = vmul.f32 %v3191_v19, %v9360_v54 }
 0x318   : > { %v3236_v56 = vadd.f32 %v3212_v45, %v9377_v8  ;;  %v2472_v12 = vmax.f32 %v11812_v15, %v2433_v22  ;;  %3849 = vmatpush.bf16.msrb.mxu0 %v10143_v34  ;;  %v10205_v15 = vld [vmem:[%s11586_s3 + $0x160] sm:$0xff] }
 0x319   : > { %v3166_v44 = vadd.f32 %v3142_v60, %v9305_v58  ;;  %v3239_v19 = vadd.f32 %v3215_v61, %v9379_v35 }
 0x31a   : > { %v3271_v11 = vpack.c.bf16 %v3237_v10, %v3236_v56  ;;  %3072 = vrot.lane.b32.xlu0 %v3002_v24, %s7636_s11  ;;  %2428 = vrot.lane.b32.xlu1 %v2356_v50, %s7636_s11  ;;  %v3004_v10 = vadd.f32 %v3003_v5, %v2774_v33  ;;  %v3125_v50 = vmax.f32 %v9797_v41, %v10095_v51  ;;  %v11816_v33 = vld [vmem:[#allocation41_spill] sm:$0xff] }
 0x31b   : > { %v3190_v9 = vmax.f32 %v3166_v44, 0.0  ;;  %3070 = vrot.lane.b32.xlu2 %v10108_v63, %s7636_s11  ;;  %4001 = vmatpush.bf16.msrb.mxu2 %v7486_v29  ;;  %v2477_v44 = vmax.f32 %v9675_v17, %v9968_v55  ;;  %v2434_v5 = vsel %vm993_vm1, %v9933_v57, %v9923_v39  ;;  %v10200_v29 = vld [vmem:[%s11586_s3 + $0x120] sm:$0xff]  ;;  %v2435_v57 = vsel %vm993_vm1, %v9964_v6, %v9968_v55 }
 0x31c   : > { %v3417_v59 = vunpack.c.h.b16 %v3271_v11  ;;  %v3043_v16 = vpop.permute.xlu0 %3042  ;;  %v3045_v43 = vpop.permute.xlu1 %3044  ;;  %v3416_v31 = vunpack.c.l.b16 %v3271_v11  ;;  %4032 = vmatpush.bf16.msrb.mxu3 %v10205_v15 }
 0x31d   : > { %v3081_v48 = vsel %vm993_vm1, %v3043_v16, %v3045_v43  ;;  %v3121_v49 = vmax.f32 %v9771_v53, %v3045_v43  ;;  %v10147_v47 = vpop.permute.xlu2 %2412  ;;  %v3214_v60 = vmul.f32 %v3190_v9, %v9358_v36  ;;  %v3149_v17 = vmax.f32 %v2477_v44, %v3125_v50  ;;  %v11815_v9 = vld [vmem:[#allocation20_spill] sm:$0xff]  ;;  %v11820_v44 = vld [vmem:[#allocation49_spill] sm:$0xff] }
 0x31e   : > { %v10153_v45 = vpack.c.b16 %v3417_v59, %v3415_v46  ;;  %v3120_v24 = vmax.f32 %v2906_v28, %v3081_v48  ;;  %v10158_v56 = vpack.c.b16 %v3416_v31, %v3414_v20  ;;  %v2910_v28 = vpop.f32.mrf.mxu1  ;;  %v1480_v40 = vadd.f32 %v11816_v33, %v11815_v9  ;;  %v11818_v46 = vld [vmem:[#allocation19_spill] sm:$0xff] }
 0x31f   : > { %v3145_v53 = vmax.f32 %v2473_v21, %v3121_v49  ;;  %v3238_v22 = vadd.f32 %v3214_v60, %v9377_v8  ;;  %4002 = vmatpush.bf16.msrb.mxu2 %v10174_v25  ;;  %v11817_v21 = vld [vmem:[#allocation48_spill] sm:$0xff] }
 0x320   : > { %11813 = vst [vmem:[#allocation11_spill] sm:$0xff] %v10153_v45  ;;  %v3144_v30 = vmax.f32 %v2472_v12, %v3120_v24  ;;  %6725 = vmatmul.msk.bf16.vlgmr.msra.gmra.mxu1 %vm993_vm1, %v10153_v45  ;;  %3534 = vmatmul.bf16.vlgmr.msra.gmra.mxu0 %v10158_v56  ;;  %v1045_v59 = vmax.f32 %v11818_v46, %v11817_v21  ;;  %v10232_v21 = vld [vmem:[%s11586_s3 + $0xd8] sm:$0xff] }
 0x321   : > { %11814 = vst [vmem:[#allocation31_spill] sm:$0xff] %v10158_v56  ;;  %v3169_v41 = vadd.f32 %v3145_v53, %v9307_v2  ;;  %v3272_v50 = vpack.c.bf16 %v3239_v19, %v3238_v22  ;;  %4245 = vmatpush.bf16.msra.mxu3 %v9761_v0  ;;  %v11825_v0 = vld [vmem:[#allocation68_spill] sm:$0xff]  ;;  %3850 = vmatpush.bf16.msrb.mxu0 %v10232_v21 }
 0x322   : > { %v3168_v11 = vadd.f32 %v3144_v30, %v9305_v58  ;;  %3074 = vrot.lane.b32.xlu1 %v10161_v18, %s7636_s11  ;;  %v11819_v30 = vld [vmem:[#allocation3_spill] sm:$0xff] }
 0x323   : > { %v3193_v23 = vmax.f32 %v3169_v41, 0.0  ;;  %3076 = vrot.lane.b32.xlu2 %v3004_v10, %s7636_s11  ;;  %v3173_v10 = vadd.f32 %v3149_v17, %v9307_v2  ;;  %4003 = vmatpush.bf16.msrb.mxu2 %v10200_v29  ;;  %v11821_v61 = vmax.f32 %v11819_v30, %v11820_v44  ;;  %v11824_v17 = vld [vmem:[#allocation62_spill] sm:$0xff]  ;;  %v3419_v30 = vunpack.c.h.b16 %v3272_v50 }
 0x324   : > { %v3192_v16 = vmax.f32 %v3168_v11, 0.0  ;;  %v10186_v43 = vpop.permute.xlu0 %2408  ;;  %v1625_v31 = vpop.permute.xlu1 %1624  ;;  %v11823_v11 = vld [vmem:[#allocation61_spill] sm:$0xff]  ;;  %v11828_v44 = vld [vmem:[#allocation42_spill] sm:$0xff] }
 0x325   : > { %v3217_v48 = vmul.f32 %v3193_v23, %v9360_v54  ;;  %v1649_v49 = vsel %vm993_vm1, %v10088_v14, %v1625_v31  ;;  %v10195_v20 = vpop.permute.xlu2 %3058  ;;  %v1693_v14 = vmax.f32 %v9751_v62, %v1625_v31  ;;  %v11822_v62 = vld [vmem:[#allocation59_spill] sm:$0xff]  ;;  %v2909_v22 = vadd.f32 %v10105_v32, %v11823_v11  ;;  %v11826_v32 = vld [vmem:[#allocation69_spill] sm:$0xff] }
 0x326   : > { %v3216_v12 = vmul.f32 %v3192_v16, %v9358_v36  ;;  %v1692_v24 = vmax.f32 %v1480_v40, %v1649_v49  ;;  %v2475_v41 = vmax.f32 %v11822_v62, %v9923_v39  ;;  %v2911_v23 = vadd.f32 %v2910_v28, %v11824_v17 }
 0x327   : > { %v3241_v60 = vadd.f32 %v3217_v48, %v9379_v35  ;;  %v1717_v55 = vmax.f32 %v1045_v59, %v1693_v14  ;;  %4212 = vmatpush.bf16.msra.mxu2 %v9756_v52  ;;  %v10237_v52 = vld [vmem:[%s11586_s3 + $0x108] sm:$0xff]  ;;  %v2474_v39 = vmax.f32 %v11825_v0, %v2434_v5  ;;  %v2476_v46 = vmax.f32 %v11826_v32, %v2435_v57  ;;  %v2913_v5 = vpop.f32.mrf.mxu1  ;;  %v11827_v14 = vld [vmem:[#allocation77_spill] sm:$0xff] }
 0x328   : > { %v3240_v53 = vadd.f32 %v3216_v12, %v9377_v8  ;;  %v1716_v6 = vmax.f32 %v11821_v61, %v1692_v24  ;;  %v3197_v28 = vmax.f32 %v3173_v10, 0.0  ;;  %v3418_v59 = vunpack.c.l.b16 %v3272_v50  ;;  %3881 = vmatpush.bf16.msrb.mxu1 %v10237_v52  ;;  %v10246_v24 = vld [vmem:[%s11586_s3 + $0xd0] sm:$0xff]  ;;  %v11829_v61 = vld [vmem:[#allocation78_spill] sm:$0xff] }
 0x329   : > { %v1751_v33 = vadd.f32 %v9307_v2, %v1717_v55  ;;  %4246 = vmatpush.bf16.msra.mxu3 %v11829_v61  ;;  %3851 = vmatpush.bf16.msrb.mxu0 %v10246_v24 }
 0x32a   : > { %v1750_v9 = vadd.f32 %v9305_v58, %v1716_v6  ;;  %v3273_v40 = vpack.c.bf16 %v3241_v60, %v3240_v53  ;;  %v3221_v0 = vmul.f32 %v3197_v28, %v9360_v54 }
 0x32b   : > { %v1775_v31 = vmax.f32 %v1751_v33, 0.0  ;;  %4213 = vmatpush.bf16.msra.mxu2 %v11828_v44  ;;  %v10288_v44 = vld [vmem:[%s11586_s3 + $0x100] sm:$0xff] }
 0x32c   : > { %v1774_v16 = vmax.f32 %v1750_v9, 0.0  ;;  %v3049_v19 = vpop.permute.xlu0 %3048  ;;  %v3051_v48 = vpop.permute.xlu1 %3050  ;;  %v3420_v49 = vunpack.c.l.b16 %v3273_v40  ;;  %v3421_v12 = vunpack.c.h.b16 %v3273_v40  ;;  %v3245_v61 = vadd.f32 %v3221_v0, %v9379_v35  ;;  %3882 = vmatpush.bf16.msrb.mxu1 %v10288_v44 }
 0x32d   : > { %v3082_v57 = vsel %vm993_vm1, %v10045_v7, %v3049_v19  ;;  %v3123_v10 = vmax.f32 %v11827_v14, %v3049_v19  ;;  %v3083_v60 = vsel %vm993_vm1, %v3051_v48, %v10095_v51  ;;  %v10253_v53 = vpop.permute.xlu2 %2416  ;;  %v1804_v55 = vmul.f32 %v9360_v54, %v1775_v31 }
 0x32e   : > { %v1803_v6 = vmul.f32 %v9358_v36, %v1774_v16  ;;  %v3122_v62 = vmax.f32 %v2909_v22, %v3082_v57  ;;  %v3124_v11 = vmax.f32 %v2911_v23, %v3083_v60  ;;  %v10259_v7 = vpack.c.b16 %v3420_v49, %v3418_v59  ;;  %v11830_v59 = vld [vmem:[#allocation43_spill] sm:$0xff]  ;;  %v11832_v16 = vld [vmem:[#allocation72_spill] sm:$0xff] }
 0x32f   : > { %v3147_v17 = vmax.f32 %v2475_v41, %v3123_v10  ;;  %v10261_v9 = vpack.c.b16 %v3421_v12, %v3419_v30  ;;  %v1833_v33 = vadd.f32 %v9379_v35, %v1804_v55  ;;  %4214 = vmatpush.bf16.msra.mxu2 %v11830_v59  ;;  %v3604_v31 = vunpack.c.l.b16 %v11832_v16  ;;  %v10283_v30 = vld [vmem:[%s11586_s3 + $0xc8] sm:$0xff] }
 0x330   : > { %v1832_v51 = vadd.f32 %v9377_v8, %v1803_v6  ;;  %v3146_v50 = vmax.f32 %v2474_v39, %v3122_v62  ;;  %v3148_v40 = vmax.f32 %v2476_v46, %v3124_v11  ;;  %3539 = vmatmul.bf16.gmra.mxu0 %v10259_v7  ;;  %v11831_v39 = vld [vmem:[#allocation84_spill] sm:$0xff]  ;;  %v3605_v60 = vunpack.c.h.b16 %v11832_v16  ;;  %v11833_v11 = vld [vmem:[#allocation81_spill] sm:$0xff]  ;;  %v11837_v16 = vld [vmem:[#allocation83_spill] sm:$0xff] }
 0x331   : > { %v3171_v32 = vadd.f32 %v3147_v17, %v9307_v2  ;;  %6726 = vmatmul.msk.bf16.gmra.mxu1 %vm993_vm1, %v10261_v9  ;;  %4247 = vmatpush.bf16.msra.mxu3 %v11831_v39  ;;  %v2915_v17 = vpop.f32.mrf.mxu1 }
 0x332   : > { %v3265_v41 = vpack.c.bf16 %v1833_v33, %v1832_v51  ;;  %v3170_v22 = vadd.f32 %v3146_v50, %v9305_v58  ;;  %v3172_v23 = vadd.f32 %v3148_v40, %v9305_v58  ;;  %v2436_v51 = vsel %vm993_vm1, %v10007_v27, %v10186_v43  ;;  %3852 = vmatpush.bf16.msrb.mxu0 %v10283_v30  ;;  %v11835_v27 = vld [vmem:[#allocation64_spill] sm:$0xff] }
 0x333   : > { %v3195_v46 = vmax.f32 %v3171_v32, 0.0  ;;  %4215 = vmatpush.bf16.msra.mxu2 %v11833_v11 }
 0x334   : > { %v3194_v28 = vmax.f32 %v3170_v22, 0.0  ;;  %v3196_v19 = vmax.f32 %v3172_v23, 0.0  ;;  %v3055_v48 = vpop.permute.xlu0 %3054  ;;  %v2411_v49 = vpop.permute.xlu1 %2410  ;;  %v3606_v12 = vunpack.c.l.b16 %v3265_v41  ;;  %v3607_v57 = vunpack.c.h.b16 %v3265_v41  ;;  %v11834_v41 = vld [vmem:[#allocation25_spill] sm:$0xff] }
 0x335   : > { %v3219_v14 = vmul.f32 %v3195_v46, %v9360_v54  ;;  %v10277_v10 = vpop.permute.xlu2 %981  ;;  %v2437_v32 = vsel %vm993_vm1, %v2411_v49, %v10147_v47  ;;  %4248 = vmatpush.bf16.msra.mxu3 %v11834_v41  ;;  %v2914_v22 = vadd.f32 %v2913_v5, %v11835_v27  ;;  %v11836_v23 = vld [vmem:[#allocation65_spill] sm:$0xff] }
 0x336   : > { %v3218_v6 = vmul.f32 %v3194_v28, %v9358_v36  ;;  %v3220_v55 = vmul.f32 %v3196_v19, %v9358_v36  ;;  %v10293_v62 = vpack.c.b16 %v3606_v12, %v3604_v31  ;;  %v10300_v50 = vpack.c.b16 %v3607_v57, %v3605_v60  ;;  %v11838_v31 = vld [vmem:[#allocation80_spill] sm:$0xff]  ;;  %v11839_v19 = vld [vmem:[#allocation70_spill] sm:$0xff]  ;;  %v11840_v12 = vld [vmem:[#allocation21_spill] sm:$0xff] }
 0x337   : > { %v3243_v33 = vadd.f32 %v3219_v14, %v9379_v35  ;;  %v2916_v59 = vadd.f32 %v2915_v17, %v11836_v23  ;;  %4216 = vmatpush.bf16.msra.mxu2 %v11837_v16  ;;  %v2481_v28 = vmax.f32 %v11838_v31, %v10147_v47  ;;  %v2478_v49 = vmax.f32 %v11839_v19, %v2436_v51  ;;  %v11841_v14 = vld [vmem:[#allocation71_spill] sm:$0xff] }
 0x338   : > { %v3242_v40 = vadd.f32 %v3218_v6, %v9377_v8  ;;  %v3244_v0 = vadd.f32 %v3220_v55, %v9377_v8  ;;  %3727 = vmatmul.bf16.gmra.mxu2 %v10293_v62  ;;  %6780 = vmatmul.msk.bf16.gmra.mxu3 %vm993_vm1, %v10300_v50  ;;  %v2479_v57 = vmax.f32 %v11840_v12, %v10186_v43  ;;  %v10331_v43 = vld [vmem:[%s11586_s3 + $0xc0] sm:$0xff] }
 0x339   : > { %v2480_v60 = vmax.f32 %v11841_v14, %v2437_v32  ;;  %3853 = vmatpush.bf16.msrb.mxu0 %v10331_v43 }
 0x33a   : > { %v3274_v39 = vpack.c.bf16 %v3243_v33, %v3242_v40  ;;  %v3275_v46 = vpack.c.bf16 %v3245_v61, %v3244_v0  ;;  %v11842_v33 = vld [vmem:[#allocation82_spill] sm:$0xff]  ;;  %v11843_v0 = vld [vmem:[#allocation79_spill] sm:$0xff] }
 0x33c   : > { %v3061_v6 = vpop.permute.xlu0 %3060  ;;  %v3057_v55 = vpop.permute.xlu1 %3056  ;;  %v3422_v11 = vunpack.c.l.b16 %v3274_v39  ;;  %v3424_v5 = vunpack.c.l.b16 %v3275_v46  ;;  %v3423_v41 = vunpack.c.h.b16 %v3274_v39  ;;  %v3425_v17 = vunpack.c.h.b16 %v3275_v46 }
 0x33d   : > { %v3085_v61 = vsel %vm993_vm1, %v10195_v20, %v3061_v6  ;;  %v3129_v40 = vmax.f32 %v11842_v33, %v3061_v6  ;;  %v3084_v47 = vsel %vm993_vm1, %v3055_v48, %v3057_v55  ;;  %v3127_v51 = vmax.f32 %v11843_v0, %v3057_v55  ;;  %v10326_v27 = vpop.permute.xlu2 %3062  ;;  %v11844_v20 = vld [vmem:[#allocation7_spill] sm:$0xff] }
 0x33e   : > { %v3128_v32 = vmax.f32 %v2916_v59, %v3085_v61  ;;  %v3126_v23 = vmax.f32 %v2914_v22, %v3084_v47  ;;  %v10333_v39 = vpack.c.b16 %v3424_v5, %v3422_v11  ;;  %v10335_v46 = vpack.c.b16 %v3425_v17, %v3423_v41  ;;  %4217 = vmatpush.bf16.msra.mxu2 %v11844_v20  ;;  %v11845_v6 = vld [vmem:[#allocation27_spill] sm:$0xff]  ;;  %v10369_v20 = vld [vmem:[%s11586_s3 + $0x1d8] sm:$0xff] }
 0x33f   : > { %v3153_v16 = vmax.f32 %v2481_v28, %v3129_v40  ;;  %v3151_v31 = vmax.f32 %v2479_v57, %v3127_v51  ;;  %v11846_v40 = vld [vmem:[#allocation29_spill] sm:$0xff]  ;;  %4179 = vmatpush.bf16.msra.mxu1 %v10369_v20 }
 0x340   : > { %v3152_v48 = vmax.f32 %v2480_v60, %v3128_v32  ;;  %v3150_v19 = vmax.f32 %v2478_v49, %v3126_v23  ;;  %3544 = vmatmul.bf16.gmra.mxu0 %v10333_v39  ;;  %v10364_v23 = vld [vmem:[%s11586_s3 + $0x1b8] sm:$0xff] }
 0x341   : > { %v3177_v12 = vadd.f32 %v3153_v16, %v9307_v2  ;;  %v3175_v14 = vadd.f32 %v3151_v31, %v9307_v2  ;;  %6727 = vmatmul.msk.bf16.gmra.mxu1 %vm993_vm1, %v10335_v46  ;;  %4146 = vmatpush.bf16.msra.mxu0 %v10364_v23 }
 0x342   : > { %v3176_v22 = vadd.f32 %v3152_v48, %v9305_v58  ;;  %v3174_v59 = vadd.f32 %v3150_v19, %v9305_v58  ;;  %4218 = vmatpush.bf16.msra.mxu2 %v11845_v6 }
 0x343   : > { %v3201_v28 = vmax.f32 %v3177_v12, 0.0  ;;  %v3199_v57 = vmax.f32 %v3175_v14, 0.0 }
 0x344   : > { %v3200_v55 = vmax.f32 %v3176_v22, 0.0  ;;  %v3198_v60 = vmax.f32 %v3174_v59, 0.0  ;;  %v10347_v49 = vpop.permute.xlu0 %2418  ;;  %v2415_v11 = vpop.permute.xlu1 %2414 }
 0x345   : > { %v3225_v5 = vmul.f32 %v3201_v28, %v9360_v54  ;;  %v3223_v41 = vmul.f32 %v3199_v57, %v9360_v54  ;;  %v10351_v17 = vpop.permute.xlu2 %3068  ;;  %v10387_v57 = vld [vmem:[%s11586_s3 + $0x1b0] sm:$0xff] }
 0x346   : > { %v3224_v61 = vmul.f32 %v3200_v55, %v9358_v36  ;;  %v3222_v33 = vmul.f32 %v3198_v60, %v9358_v36  ;;  %4219 = vmatpush.bf16.msra.mxu2 %v11846_v40  ;;  %4147 = vmatpush.bf16.msra.mxu0 %v10387_v57  ;;  %v2918_v55 = vpop.f32.mrf.mxu1 }
 0x347   : > { %v3249_v47 = vadd.f32 %v3225_v5, %v9379_v35  ;;  %v3247_v0 = vadd.f32 %v3223_v41, %v9379_v35  ;;  %v11849_v5 = vld [vmem:[#allocation24_spill] sm:$0xff] }
 0x348   : > { %v3248_v51 = vadd.f32 %v3224_v61, %v9377_v8  ;;  %v3246_v32 = vadd.f32 %v3222_v33, %v9377_v8  ;;  %4004 = vmatmul.bf16.vlgmr.msrb.gmra.mxu2 %v10259_v7  ;;  %6881 = vmatmul.msk.bf16.vlgmr.msrb.gmra.mxu3 %vm993_vm1, %v10261_v9  ;;  %v11850_v41 = vld [vmem:[#allocation44_spill] sm:$0xff]  ;;  %v11851_v33 = vld [vmem:[#allocation67_spill] sm:$0xff] }
 0x349   : > { %4361 = vmatpush.bf16.msrb.mxu3 %v10018_v1  ;;  %v1483_v61 = vadd.f32 %v11850_v41, %v11849_v5  ;;  %v2919_v40 = vadd.f32 %v2918_v55, %v11851_v33  ;;  %v11857_v5 = vld [vmem:[#allocation6_spill] sm:$0xff] }
 0x34a   : > { %4328 = vmatpush.bf16.msrb.mxu2 %v10013_v4  ;;  %v3277_v16 = vpack.c.bf16 %v3249_v47, %v3248_v51  ;;  %v3276_v31 = vpack.c.bf16 %v3247_v0, %v3246_v32  ;;  %v11853_v0 = vld [vmem:[#allocation86_spill] sm:$0xff] }
 0x34c   : > { %v978_v48 = vpop.permute.xlu0 %977  ;;  %v2421_v19 = vpop.permute.xlu1 %2420  ;;  %v3426_v12 = vunpack.c.l.b16 %v3276_v31  ;;  %v3428_v14 = vunpack.c.l.b16 %v3277_v16  ;;  %v3427_v22 = vunpack.c.h.b16 %v3276_v31  ;;  %v3429_v59 = vunpack.c.h.b16 %v3277_v16  ;;  %v11854_v31 = vld [vmem:[#allocation16_spill] sm:$0xff] }
 0x34d   : > { %v10377_v6 = vpop.permute.xlu2 %1628  ;;  %4362 = vmatpush.bf16.msrb.mxu3 %v10125_v13  ;;  %v10406_v13 = vld [vmem:[%s11586_s3 + $0x1a8] sm:$0xff]  ;;  %v2485_v51 = vmax.f32 %v11853_v0, %v2421_v19 }
 0x34e   : > { %4329 = vmatpush.bf16.msrb.mxu2 %v10077_v38  ;;  %v10380_v28 = vpack.c.b16 %v3428_v14, %v3426_v12  ;;  %v10382_v4 = vpack.c.b16 %v3429_v59, %v3427_v22  ;;  %4148 = vmatpush.bf16.msra.mxu0 %v10406_v13  ;;  %v11856_v59 = vld [vmem:[#allocation8_spill] sm:$0xff] }
 0x34f   : > { %v3133_v55 = vmax.f32 %v11856_v59, %v10351_v17  ;;  %v11859_v59 = vld [vmem:[#allocation17_spill] sm:$0xff] }
 0x350   : > { %11847 = vst [vmem:[#allocation10_spill] sm:$0xff] %v10380_v28  ;;  %3549 = vmatmul.bf16.gmra.mxu0 %v10380_v28 }
 0x351   : > { %11848 = vst [vmem:[#allocation30_spill] sm:$0xff] %v10382_v4  ;;  %6728 = vmatmul.msk.bf16.gmra.mxu1 %vm993_vm1, %v10382_v4  ;;  %4363 = vmatpush.bf16.msrb.mxu3 %v10237_v52  ;;  %v10422_v52 = vld [vmem:[%s11586_s3 + $0x1a0] sm:$0xff] }
 0x352   : > { %4330 = vmatpush.bf16.msrb.mxu2 %v10120_v26  ;;  %v10411_v26 = vld [vmem:[%s11586_s3 + $0x1d0] sm:$0xff]  ;;  %4149 = vmatpush.bf16.msra.mxu0 %v10422_v52 }
 0x353   : > { %4180 = vmatpush.bf16.msra.mxu1 %v10411_v26 }
 0x354   : > { %v10396_v1 = vpop.permute.xlu0 %983  ;;  %v980_v38 = vpop.permute.xlu1 %979 }
 0x355   : > { %v10399_v60 = vpop.permute.xlu2 %985  ;;  %4364 = vmatpush.bf16.msrb.mxu3 %v10288_v44  ;;  %v1002_v44 = vsel %vm993_vm1, %v978_v48, %v980_v38  ;;  %v11855_v48 = vld [vmem:[#allocation26_spill] sm:$0xff] }
 0x356   : > { %4331 = vmatpush.bf16.msrb.mxu2 %v10143_v34  ;;  %v2438_v34 = vsel %vm993_vm1, %v2415_v11, %v10253_v53  ;;  %v11852_v11 = vld [vmem:[#allocation85_spill] sm:$0xff]  ;;  %v1046_v41 = vmax.f32 %v11857_v5, %v1002_v44  ;;  %v11860_v44 = vld [vmem:[#allocation38_spill] sm:$0xff] }
 0x357   : > { %v2483_v47 = vmax.f32 %v11852_v11, %v10253_v53  ;;  %v2482_v12 = vmax.f32 %v11854_v31, %v2438_v34  ;;  %v3157_v34 = vmax.f32 %v2485_v51, %v3133_v55  ;;  %v2920_v31 = vpop.f32.mrf.mxu1 }
 0x358   : > { %4009 = vmatmul.bf16.gmra.mxu2 %v10333_v39  ;;  %6882 = vmatmul.msk.bf16.gmra.mxu3 %vm993_vm1, %v10335_v46 }
 0x35a   : > { %4332 = vmatpush.bf16.msrb.mxu2 %v10232_v21 }
 0x35c   : > { %v3065_v32 = vpop.permute.xlu0 %3064  ;;  %v1627_v16 = vpop.permute.xlu1 %1626 }
 0x35d   : > { %v3086_v14 = vsel %vm993_vm1, %v10326_v27, %v3065_v32  ;;  %v3131_v22 = vmax.f32 %v11855_v48, %v3065_v32  ;;  %v1650_v21 = vsel %vm993_vm1, %v1627_v16, %v10377_v6  ;;  %v11858_v32 = vld [vmem:[#allocation4_spill] sm:$0xff]  ;;  %v10445_v45 = vpop.permute.xlu2 %991 }
 0x35e   : > { %v3130_v53 = vmax.f32 %v2919_v40, %v3086_v14  ;;  %v1694_v33 = vmax.f32 %v1483_v61, %v1650_v21  ;;  %4333 = vmatpush.bf16.msrb.mxu2 %v10246_v24  ;;  %v1047_v48 = vmax.f32 %v11858_v32, %v980_v38  ;;  %v2439_v24 = vsel %vm993_vm1, %v10347_v49, %v2421_v19  ;;  %v11861_v40 = vld [vmem:[#allocation5_spill] sm:$0xff]  ;;  %v11862_v38 = vld [vmem:[#allocation74_spill] sm:$0xff] }
 0x35f   : > { %v3155_v11 = vmax.f32 %v2483_v47, %v3131_v22  ;;  %v1695_v47 = vmax.f32 %v11861_v40, %v10377_v6  ;;  %v3181_v14 = vadd.f32 %v3157_v34, %v9307_v2  ;;  %v10464_v19 = vld [vmem:[%s11586_s3 + $0x198] sm:$0xff]  ;;  %v11864_v40 = vld [vmem:[#allocation28_spill] sm:$0xff] }
 0x360   : > { %v3154_v0 = vmax.f32 %v2482_v12, %v3130_v53  ;;  %v1718_v27 = vmax.f32 %v1046_v41, %v1694_v33  ;;  %3854 = vmatmul.bf16.vlgmr.msrb.gmra.mxu0 %v11859_v59  ;;  %v2921_v12 = vadd.f32 %v2920_v31, %v11862_v38  ;;  %v11863_v53 = vld [vmem:[#allocation39_spill] sm:$0xff]  ;;  %v10480_v31 = vld [vmem:[%s11586_s3 + $0x190] sm:$0xff] }
 0x361   : > { %v3179_v16 = vadd.f32 %v3155_v11, %v9307_v2  ;;  %6829 = vmatmul.msk.bf16.vlgmr.msrb.gmra.mxu1 %vm993_vm1, %v11860_v44  ;;  %v1719_v5 = vmax.f32 %v1047_v48, %v1695_v47  ;;  %v2484_v33 = vmax.f32 %v11863_v53, %v2439_v24  ;;  %4150 = vmatpush.bf16.msra.mxu0 %v10464_v19  ;;  %v11865_v47 = vld [vmem:[#allocation47_spill] sm:$0xff] }
 0x362   : > { %v3178_v61 = vadd.f32 %v3154_v0, %v9305_v58  ;;  %4334 = vmatpush.bf16.msrb.mxu2 %v10283_v30  ;;  %v10469_v30 = vld [vmem:[%s11586_s3 + $0x1c8] sm:$0xff]  ;;  %v1752_v34 = vadd.f32 %v9305_v58, %v1718_v27  ;;  %v1003_v27 = vsel %vm993_vm1, %v10277_v10, %v10396_v1  ;;  %v11866_v10 = vld [vmem:[#allocation22_spill] sm:$0xff] }
 0x363   : > { %v3203_v51 = vmax.f32 %v3179_v16, 0.0  ;;  %v1753_v32 = vadd.f32 %v9307_v2, %v1719_v5  ;;  %4181 = vmatpush.bf16.msra.mxu1 %v10469_v30  ;;  %v11867_v53 = vld [vmem:[#allocation23_spill] sm:$0xff] }
 0x364   : > { %v3202_v22 = vmax.f32 %v3178_v61, 0.0  ;;  %v1631_v21 = vpop.permute.xlu0 %1630  ;;  %v3067_v55 = vpop.permute.xlu1 %3066  ;;  %v1776_v48 = vmax.f32 %v1752_v34, 0.0 }
 0x365   : > { %v3087_v41 = vsel %vm993_vm1, %v3067_v55, %v10351_v17  ;;  %v3227_v11 = vmul.f32 %v3203_v51, %v9360_v54  ;;  %v3205_v17 = vmax.f32 %v3181_v14, 0.0  ;;  %v10490_v16 = vpop.permute.xlu2 %1638  ;;  %v1485_v51 = vadd.f32 %v11865_v47, %v11864_v40  ;;  %4151 = vmatpush.bf16.msra.mxu0 %v10480_v31 }
 0x366   : > { %v3132_v49 = vmax.f32 %v2921_v12, %v3087_v41  ;;  %v3226_v6 = vmul.f32 %v3202_v22, %v9358_v36  ;;  %4335 = vmatpush.bf16.msrb.mxu2 %v10331_v43  ;;  %v1049_v55 = vmax.f32 %v11866_v10, %v10396_v1  ;;  %v1777_v5 = vmax.f32 %v1753_v32, 0.0  ;;  %v11869_v32 = vld [vmem:[#allocation2_spill] sm:$0xff] }
 0x367   : > { %v3251_v24 = vadd.f32 %v3227_v11, %v9379_v35  ;;  %v3229_v38 = vmul.f32 %v3205_v17, %v9360_v54  ;;  %v1805_v17 = vmul.f32 %v9358_v36, %v1776_v48 }
 0x368   : > { %v3156_v0 = vmax.f32 %v2484_v33, %v3132_v49  ;;  %4014 = vmatmul.bf16.gmra.mxu2 %v10380_v28  ;;  %6883 = vmatmul.msk.bf16.gmra.mxu3 %vm993_vm1, %v10382_v4  ;;  %v3250_v61 = vadd.f32 %v3226_v6, %v9377_v8  ;;  %v11868_v49 = vld [vmem:[#allocation9_spill] sm:$0xff]  ;;  %v1806_v1 = vmul.f32 %v9360_v54, %v1777_v5 }
 0x369   : > { %v1048_v6 = vmax.f32 %v11868_v49, %v1003_v27  ;;  %v3253_v4 = vadd.f32 %v3229_v38, %v9379_v35  ;;  %v1834_v48 = vadd.f32 %v9377_v8, %v1805_v17  ;;  %v10533_v17 = vld [vmem:[%s11586_s3 + $0x1c0] sm:$0xff] }
 0x36a   : > { %v3180_v43 = vadd.f32 %v3156_v0, %v9305_v58  ;;  %4182 = vmatpush.bf16.msra.mxu1 %v10533_v17 }
 0x36c   : > { %v3204_v12 = vmax.f32 %v3180_v43, 0.0  ;;  %v10497_v14 = vpop.permute.xlu0 %987  ;;  %v1633_v22 = vpop.permute.xlu1 %1632  ;;  %v3278_v43 = vpack.c.bf16 %v3251_v24, %v3250_v61 }
 0x36d   : > { %v1651_v41 = vsel %vm993_vm1, %v1631_v21, %v1633_v22  ;;  %v1697_v33 = vmax.f32 %v11867_v53, %v1633_v22  ;;  %v11870_v22 = vld [vmem:[#allocation18_spill] sm:$0xff]  ;;  %v1835_v53 = vadd.f32 %v9379_v35, %v1806_v1  ;;  %v11873_v1 = vld [vmem:[#allocation32_spill] sm:$0xff] }
 0x36e   : > { %v3228_v11 = vmul.f32 %v3204_v12, %v9358_v36  ;;  %v1696_v34 = vmax.f32 %v1485_v51, %v1651_v41  ;;  %v3914_v24 = vunpack.c.l.b16 %v3278_v43  ;;  %v3915_v41 = vunpack.c.h.b16 %v3278_v43 }
 0x36f   : > { %v1721_v0 = vmax.f32 %v1049_v55, %v1697_v33  ;;  %v3266_v43 = vpack.c.bf16 %v1835_v53, %v1834_v48  ;;  %v11876_v48 = vld [vmem:[#allocation55_spill] sm:$0xff] }
 0x370   : > { %v1720_v40 = vmax.f32 %v1048_v6, %v1696_v34  ;;  %v3252_v47 = vadd.f32 %v3228_v11, %v9377_v8  ;;  %3859 = vmatmul.bf16.gmra.mxu0 %v11869_v32  ;;  %v10519_v6 = vpop.permute.xlu2 %2424  ;;  %v10528_v34 = vld [vmem:[%s11586_s3 + $0x188] sm:$0xff] }
 0x371   : > { %v1755_v21 = vadd.f32 %v9307_v2, %v1721_v0  ;;  %6830 = vmatmul.msk.bf16.gmra.mxu1 %vm993_vm1, %v11870_v22  ;;  %4152 = vmatpush.bf16.msra.mxu0 %v10528_v34 }
 0x372   : > { %v1754_v27 = vadd.f32 %v9305_v58, %v1720_v40  ;;  %v3279_v51 = vpack.c.bf16 %v3253_v4, %v3252_v47  ;;  %v1004_v47 = vsel %vm993_vm1, %v10399_v60, %v10497_v14 }
 0x373   : > { %v1779_v61 = vmax.f32 %v1755_v21, 0.0  ;;  %v11874_v21 = vld [vmem:[#allocation52_spill] sm:$0xff] }
 0x374   : > { %v1778_v12 = vmax.f32 %v1754_v27, 0.0  ;;  %v1635_v10 = vpop.permute.xlu0 %1634  ;;  %v990_v55 = vpop.permute.xlu1 %989  ;;  %v3916_v38 = vunpack.c.l.b16 %v3279_v51  ;;  %v3917_v5 = vunpack.c.h.b16 %v3279_v51  ;;  %v1488_v27 = vadd.f32 %v11874_v21, %v11873_v1  ;;  %v11875_v51 = vld [vmem:[#allocation36_spill] sm:$0xff] }
 0x375   : > { %v1808_v33 = vmul.f32 %v9360_v54, %v1779_v61  ;;  %v1490_v61 = vadd.f32 %v11876_v48, %v11875_v51  ;;  %v1005_v53 = vsel %vm993_vm1, %v990_v55, %v10445_v45 }
 0x376   : > { %v1807_v49 = vmul.f32 %v9358_v36, %v1778_v12  ;;  %v10521_v11 = vpack.c.b16 %v3916_v38, %v3914_v24  ;;  %v10523_v4 = vpack.c.b16 %v3917_v5, %v3915_v41  ;;  %v7607_v12 = vld [vmem:[%s11586_s3 + $0x58] sm:$0xff]  ;;  %v11877_v38 = vld [vmem:[#allocation50_spill] sm:$0xff] }
 0x377   : > { %v1837_v0 = vadd.f32 %v9379_v35, %v1808_v33  ;;  %4303 = vmatpush.bf16.msrb.mxu1 %v7607_v12  ;;  %v1053_v60 = vmax.f32 %v11877_v38, %v10445_v45  ;;  %v11878_v41 = vld [vmem:[#allocation45_spill] sm:$0xff]  ;;  %v3764_v33 = vunpack.c.l.b16 %v3266_v43 }
 0x378   : > { %11871 = vst [vmem:[#allocation51_spill] sm:$0xff] %v10521_v11  ;;  %v1836_v40 = vadd.f32 %v9377_v8, %v1807_v49  ;;  %4019 = vmatmul.bf16.gmra.mxu2 %v10521_v11  ;;  %6884 = vmatmul.msk.bf16.gmra.mxu3 %vm993_vm1, %v10523_v4  ;;  %v1051_v5 = vmax.f32 %v11878_v41, %v10497_v14  ;;  %v11879_v49 = vld [vmem:[#allocation12_spill] sm:$0xff]  ;;  %v11880_v11 = vld [vmem:[#allocation46_spill] sm:$0xff]  ;;  %v11881_v41 = vld [vmem:[#allocation15_spill] sm:$0xff] }
 0x379   : > { %11872 = vst [vmem:[#allocation13_spill] sm:$0xff] %v10523_v4  ;;  %v1050_v1 = vmax.f32 %v11879_v49, %v1004_v47  ;;  %v1052_v28 = vmax.f32 %v11881_v41, %v1005_v53  ;;  %v10580_v53 = vpop.f32.mrf.mxu3 }
 0x37a   : > { %v3267_v24 = vpack.c.bf16 %v1837_v0, %v1836_v40  ;;  %v3765_v40 = vunpack.c.h.b16 %v3266_v43  ;;  %v10570_v43 = vld [vmem:[%s11586_s3 + $0x180] sm:$0xff] }
 0x37b   : > { %4153 = vmatpush.bf16.msra.mxu0 %v10570_v43 }
 0x37c   : > { %v1641_v21 = vpop.permute.xlu0 %1640  ;;  %v1637_v51 = vpop.permute.xlu1 %1636  ;;  %v3766_v0 = vunpack.c.l.b16 %v3267_v24  ;;  %v3767_v48 = vunpack.c.h.b16 %v3267_v24 }
 0x37d   : > { %v1653_v12 = vsel %vm993_vm1, %v10490_v16, %v1641_v21  ;;  %v1701_v4 = vmax.f32 %v10025_v3, %v1641_v21  ;;  %v1652_v38 = vsel %vm993_vm1, %v1635_v10, %v1637_v51  ;;  %v1699_v14 = vmax.f32 %v11880_v11, %v1637_v51  ;;  %v7608_v16 = vld [vmem:[%s11586_s3 + $0x50] sm:$0xff]  ;;  %v3071_v11 = vpop.permute.xlu2 %3070 }
 0x37e   : > { %v1700_v45 = vmax.f32 %v1490_v61, %v1653_v12  ;;  %v1698_v55 = vmax.f32 %v1488_v27, %v1652_v38  ;;  %v10565_v56 = vpack.c.b16 %v3766_v0, %v3764_v33  ;;  %4304 = vmatpush.bf16.msrb.mxu1 %v7608_v16  ;;  %v10575_v47 = vpack.c.b16 %v3767_v48, %v3765_v40  ;;  %v10578_v27 = vpop.f32.mrf.mxu2  ;;  %v2923_v16 = vpop.f32.mrf.mxu1 }
 0x37f   : > { %v1725_v3 = vmax.f32 %v1053_v60, %v1701_v4  ;;  %v1723_v10 = vmax.f32 %v1051_v5, %v1699_v14  ;;  %v7609_v60 = vld [vmem:[%s11586_s3 + $0x38] sm:$0xff]  ;;  %v7610_v5 = vld [vmem:[%s11586_s3 + $0x48] sm:$0xff] }
 0x380   : > { %v1724_v24 = vmax.f32 %v1052_v28, %v1700_v45  ;;  %v1722_v61 = vmax.f32 %v1050_v1, %v1698_v55  ;;  %3864 = vmatmul.bf16.gmra.mxu0 %v10293_v62  ;;  %v7611_v45 = vld [vmem:[%s11586_s3 + $0x30] sm:$0xff]  ;;  %v7612_v55 = vld [vmem:[%s11586_s3 + $0x40] sm:$0xff] }
 0x381   : > { %v1759_v33 = vadd.f32 %v9307_v2, %v1725_v3  ;;  %v1757_v49 = vadd.f32 %v9307_v2, %v1723_v10  ;;  %6831 = vmatmul.msk.bf16.gmra.mxu1 %vm993_vm1, %v10300_v50  ;;  %4270 = vmatpush.bf16.msrb.mxu0 %v7609_v60 }
 0x382   : > { %v1758_v4 = vadd.f32 %v9305_v58, %v1724_v24  ;;  %v1756_v28 = vadd.f32 %v9305_v58, %v1722_v61  ;;  %4305 = vmatpush.bf16.msrb.mxu1 %v7610_v5 }
 0x383   : > { %v1783_v1 = vmax.f32 %v1759_v33, 0.0  ;;  %v1781_v21 = vmax.f32 %v1757_v49, 0.0  ;;  %v7613_v49 = vld [vmem:[%s11586_s3 + $0x28] sm:$0xff] }
 0x384   : > { %v1782_v51 = vmax.f32 %v1758_v4, 0.0  ;;  %v1780_v0 = vmax.f32 %v1756_v28, 0.0  ;;  %v2427_v40 = vpop.permute.xlu0 %2426  ;;  %v2423_v48 = vpop.permute.xlu1 %2422 }
 0x385   : > { %v1812_v12 = vmul.f32 %v9360_v54, %v1783_v1  ;;  %v1810_v38 = vmul.f32 %v9360_v54, %v1781_v21  ;;  %4271 = vmatpush.bf16.msrb.mxu0 %v7611_v45  ;;  %v3077_v33 = vpop.permute.xlu2 %3076  ;;  %v10620_v1 = vpop.f32.mrf.mxu3 }
 0x386   : > { %v1811_v14 = vmul.f32 %v9358_v36, %v1782_v51  ;;  %v1809_v41 = vmul.f32 %v9358_v36, %v1780_v0  ;;  %4306 = vmatpush.bf16.msrb.mxu1 %v7612_v55  ;;  %v10618_v5 = vpop.f32.mrf.mxu2 }
 0x387   : > { %v1839_v3 = vadd.f32 %v9379_v35, %v1810_v38  ;;  %v1841_v10 = vadd.f32 %v9379_v35, %v1812_v12 }
 0x388   : > { %4220 = vmatmul.bf16.vlgmr.msra.gmra.mxu2 %v11859_v59  ;;  %v1838_v24 = vadd.f32 %v9377_v8, %v1809_v41  ;;  %v1840_v61 = vadd.f32 %v9377_v8, %v1811_v14  ;;  %6937 = vmatmul.msk.bf16.vlgmr.msra.gmra.mxu3 %vm993_vm1, %v11860_v44  ;;  %v11882_v59 = vld [vmem:[#allocation75_spill] sm:$0xff]  ;;  %v2487_v44 = vmax.f32 %v10050_v42, %v10519_v6  ;;  %v11883_v42 = vld [vmem:[#allocation40_spill] sm:$0xff] }
 0x389   : > { %4472 = vmatpush.bf16.msra.mxu2 %v10364_v23  ;;  %4272 = vmatpush.bf16.msrb.mxu0 %v7613_v49  ;;  %v2924_v60 = vadd.f32 %v2923_v16, %v11882_v59  ;;  %v2440_v23 = vsel %vm993_vm1, %v2423_v48, %v10519_v6  ;;  %v7614_v6 = vld [vmem:[%s11586_s3 + $0x20] sm:$0xff]  ;;  %v11884_v49 = vld [vmem:[#allocation76_spill] sm:$0xff] }
 0x38a   : > { %v3268_v4 = vpack.c.bf16 %v1839_v3, %v1838_v24  ;;  %v3269_v28 = vpack.c.bf16 %v1841_v10, %v1840_v61  ;;  %4505 = vmatpush.bf16.msra.mxu3 %v10369_v20  ;;  %v3137_v20 = vmax.f32 %v10161_v18, %v3077_v33  ;;  %v2486_v16 = vmax.f32 %v11883_v42, %v2440_v23  ;;  %v7615_v61 = vld [vmem:[%s11586_s3 + $0x18] sm:$0xff] }
 0x38c   : > { %v3073_v21 = vpop.permute.xlu0 %3072  ;;  %v2429_v51 = vpop.permute.xlu1 %2428  ;;  %v4064_v0 = vunpack.c.l.b16 %v3268_v4  ;;  %v4066_v12 = vunpack.c.l.b16 %v3269_v28  ;;  %v4065_v38 = vunpack.c.h.b16 %v3268_v4  ;;  %v4067_v14 = vunpack.c.h.b16 %v3269_v28 }
 0x38d   : > { %v3088_v41 = vsel %vm993_vm1, %v3071_v11, %v3073_v21  ;;  %v3135_v45 = vmax.f32 %v10108_v63, %v3073_v21  ;;  %v2489_v55 = vmax.f32 %v10054_v37, %v2429_v51  ;;  %4473 = vmatpush.bf16.msra.mxu2 %v10387_v57  ;;  %4273 = vmatpush.bf16.msrb.mxu0 %v7614_v6  ;;  %v2925_v37 = vpop.f32.mrf.mxu1 }
 0x38e   : > { %v3134_v3 = vmax.f32 %v2924_v60, %v3088_v41  ;;  %v10635_v48 = vpack.c.b16 %v4066_v12, %v4064_v0  ;;  %v10637_v10 = vpack.c.b16 %v4067_v14, %v4065_v38  ;;  %4506 = vmatpush.bf16.msra.mxu3 %v10411_v26  ;;  %v2441_v26 = vsel %vm993_vm1, %v2427_v40, %v2429_v51  ;;  %v10653_v23 = vpop.f32.mrf.mxu2  ;;  %v10656_v0 = vpop.f32.mrf.mxu3  ;;  %v11885_v12 = vld [vmem:[#allocation73_spill] sm:$0xff] }
 0x38f   : > { %v3159_v18 = vmax.f32 %v2487_v44, %v3135_v45  ;;  %v3161_v11 = vmax.f32 %v2489_v55, %v3137_v20  ;;  %v2926_v4 = vadd.f32 %v2925_v37, %v11884_v49  ;;  %v2488_v38 = vmax.f32 %v11885_v12, %v2441_v26  ;;  %v7617_v20 = vld [vmem:[%s11586_s3 + $0x8] sm:$0xff]  ;;  %v7621_v26 = vld [vmem:[%s11586_s3 + $0x150] sm:$0xff] }
 0x390   : > { %v3158_v63 = vmax.f32 %v2486_v16, %v3134_v3  ;;  %3869 = vmatmul.bf16.gmra.mxu0 %v10565_v56  ;;  %v7622_v49 = vld [vmem:[%s11586_s3 + $0x170] sm:$0xff] }
 0x391   : > { %v3183_v57 = vadd.f32 %v3159_v18, %v9307_v2  ;;  %6832 = vmatmul.msk.bf16.gmra.mxu1 %vm993_vm1, %v10575_v47  ;;  %4274 = vmatpush.bf16.msrb.mxu0 %v7615_v61  ;;  %v3185_v60 = vadd.f32 %v3161_v11, %v9307_v2 }
 0x392   : > { %v3182_v24 = vadd.f32 %v3158_v63, %v9305_v58  ;;  %4474 = vmatpush.bf16.msra.mxu2 %v10406_v13  ;;  %4507 = vmatpush.bf16.msra.mxu3 %v10469_v30  ;;  %v7616_v30 = vld [vmem:[%s11586_s3 + $0x10] sm:$0xff] }
 0x393   : > { %v3207_v59 = vmax.f32 %v3183_v57, 0.0  ;;  %v3209_v51 = vmax.f32 %v3185_v60, 0.0 }
 0x394   : > { %v3206_v28 = vmax.f32 %v3182_v24, 0.0  ;;  %v3075_v44 = vpop.permute.xlu1 %3074 }
 0x395   : > { %v3089_v21 = vsel %vm993_vm1, %v3075_v44, %v3077_v33  ;;  %4275 = vmatpush.bf16.msrb.mxu0 %v7616_v30  ;;  %v3231_v40 = vmul.f32 %v3207_v59, %v9360_v54  ;;  %v7623_v44 = vld [vmem:[%s11586_s3 + $0x148] sm:$0xff]  ;;  %v7626_v30 = vld [vmem:[%s11586_s3 + $0x138] sm:$0xff] }
 0x396   : > { %v3136_v13 = vmax.f32 %v2926_v4, %v3089_v21  ;;  %4475 = vmatpush.bf16.msra.mxu2 %v10422_v52  ;;  %4508 = vmatpush.bf16.msra.mxu3 %v10533_v17  ;;  %v3230_v2 = vmul.f32 %v3206_v28, %v9358_v36  ;;  %v3233_v52 = vmul.f32 %v3209_v51, %v9360_v54  ;;  %v10682_v3 = vpop.f32.mrf.mxu2  ;;  %v10686_v54 = vpop.f32.mrf.mxu3  ;;  %v7624_v21 = vld [vmem:[%s11586_s3 + $0x168] sm:$0xff] }
 0x397   : > { %v3255_v45 = vadd.f32 %v3231_v40, %v9379_v35 }
 0x398   : > { %v3160_v33 = vmax.f32 %v2488_v38, %v3136_v13  ;;  %4225 = vmatmul.bf16.gmra.mxu2 %v11869_v32  ;;  %6938 = vmatmul.msk.bf16.gmra.mxu3 %vm993_vm1, %v11870_v22  ;;  %v3254_v41 = vadd.f32 %v3230_v2, %v9377_v8  ;;  %v3257_v18 = vadd.f32 %v3233_v52, %v9379_v35  ;;  %v7625_v38 = vld [vmem:[%s11586_s3 + $0x140] sm:$0xff] }
 0x399   : > { %4276 = vmatpush.bf16.msrb.mxu0 %v7617_v20 }
 0x39a   : > { %v3184_v14 = vadd.f32 %v3160_v33, %v9305_v58  ;;  %4476 = vmatpush.bf16.msra.mxu2 %v10464_v19  ;;  %v7618_v58 = vld [vmem:[%s11586_s3] sm:$0xff]  ;;  %v3280_v63 = vpack.c.bf16 %v3255_v45, %v3254_v41 }
 0x39c   : > { %v3208_v17 = vmax.f32 %v3184_v14, 0.0  ;;  %v4463_v37 = vunpack.c.h.b16 %v3280_v63 }
 0x39d   : > { %v3564_v55 = vpop.f32.mrf.mxu1  ;;  %v3535_v16 = vpop.f32.mrf.mxu0  ;;  %4277 = vmatpush.bf16.msrb.mxu0 %v7618_v58 }
 0x39e   : > { %v3232_v42 = vmul.f32 %v3208_v17, %v9358_v36  ;;  %4477 = vmatpush.bf16.msra.mxu2 %v10480_v31  ;;  %v10684_v19 = vadd.f32 %v3564_v55, %v3535_v16  ;;  %v7619_v36 = vld [vmem:[%s11586_s3 + $0x158] sm:$0xff]  ;;  %v10714_v59 = vpop.f32.mrf.mxu2  ;;  %v10718_v60 = vpop.f32.mrf.mxu3 }
 0x39f   : > { %v7620_v31 = vld [vmem:[%s11586_s3 + $0x178] sm:$0xff] }
 0x3a0   : > { %v3256_v6 = vadd.f32 %v3232_v42, %v9377_v8  ;;  %4154 = vmatmul.bf16.vlgmr.msra.gmra.mxu0 %v11869_v32  ;;  %v4462_v8 = vunpack.c.l.b16 %v3280_v63 }
 0x3a1   : > { %6933 = vmatmul.msk.bf16.vlgmr.msra.gmra.mxu1 %vm993_vm1, %v11870_v22  ;;  %4394 = vmatpush.bf16.msra.mxu0 %v7619_v36 }
 0x3a2   : > { %4427 = vmatpush.bf16.msra.mxu1 %v7620_v31  ;;  %v3281_v11 = vpack.c.bf16 %v3257_v18, %v3256_v6  ;;  %4478 = vmatpush.bf16.msra.mxu2 %v10528_v34 }
 0x3a4   : > { %v4464_v35 = vunpack.c.l.b16 %v3281_v11  ;;  %v4465_v57 = vunpack.c.h.b16 %v3281_v11 }
 0x3a5   : > { %v3566_v24 = vpop.f32.mrf.mxu1  ;;  %v3537_v61 = vpop.f32.mrf.mxu0  ;;  %4395 = vmatpush.bf16.msra.mxu0 %v7621_v26 }
 0x3a6   : > { %4428 = vmatpush.bf16.msra.mxu1 %v7622_v49  ;;  %v10706_v4 = vpack.c.b16 %v4464_v35, %v4462_v8  ;;  %v10708_v28 = vpack.c.b16 %v4465_v57, %v4463_v37  ;;  %v10710_v34 = vadd.f32 %v3566_v24, %v3537_v61  ;;  %4479 = vmatpush.bf16.msra.mxu2 %v10570_v43  ;;  %v3725_v2 = vpop.f32.mrf.mxu2  ;;  %v3754_v40 = vpop.f32.mrf.mxu3 }
 0x3a8   : > { %4230 = vmatmul.bf16.gmra.mxu2 %v10293_v62  ;;  %6939 = vmatmul.msk.bf16.gmra.mxu3 %vm993_vm1, %v10300_v50 }
 0x3a9   : > { %4396 = vmatpush.bf16.msra.mxu0 %v7623_v44 }
 0x3aa   : > { %4429 = vmatpush.bf16.msra.mxu1 %v7624_v21 }
 0x3ad   : > { %v3540_v43 = vpop.f32.mrf.mxu0  ;;  %4397 = vmatpush.bf16.msra.mxu0 %v7625_v38 }
 0x3ae   : > { %v3569_v12 = vpop.f32.mrf.mxu1  ;;  %4430 = vmatpush.bf16.msra.mxu1 %v10205_v15  ;;  %v7627_v15 = vld [vmem:[%s11586_s3 + $0x130] sm:$0xff] }
 0x3af   : > { %v10730_v13 = vadd.f32 %v3569_v12, %v3540_v43  ;;  %v3714_v43 = vadd.f32 %v10578_v27, %v10684_v19  ;;  %v3716_v27 = vadd.f32 %v10618_v5, %v10710_v34 }
 0x3b0   : > { %4159 = vmatmul.bf16.gmra.mxu0 %v10293_v62 }
 0x3b1   : > { %6934 = vmatmul.msk.bf16.gmra.mxu1 %vm993_vm1, %v10300_v50  ;;  %4398 = vmatpush.bf16.msra.mxu0 %v7626_v30 }
 0x3b5   : > { %v3542_v51 = vpop.f32.mrf.mxu0  ;;  %4399 = vmatpush.bf16.msra.mxu0 %v7627_v15 }
 0x3b6   : > { %v3571_v33 = vpop.f32.mrf.mxu1 }
 0x3b7   : > { %v10741_v14 = vadd.f32 %v3571_v33, %v3542_v51  ;;  %v3743_v51 = vadd.f32 %v10580_v53, %v3714_v43  ;;  %v3745_v53 = vadd.f32 %v10620_v1, %v3716_v27 }
 0x3b8   : > { %4235 = vmatmul.bf16.gmra.mxu2 %v10565_v56  ;;  %6940 = vmatmul.msk.bf16.gmra.mxu3 %vm993_vm1, %v10575_v47 }
 0x3b9   : > { %4400 = vmatpush.bf16.msra.mxu0 %v10174_v25 }
 0x3bb   : > { %v3728_v20 = vpop.f32.mrf.mxu2  ;;  %v3757_v52 = vpop.f32.mrf.mxu3 }
 0x3bd   : > { %v3545_v17 = vpop.f32.mrf.mxu0  ;;  %4401 = vmatpush.bf16.msra.mxu0 %v10200_v29 }
 0x3be   : > { %v3574_v41 = vpop.f32.mrf.mxu1 }
 0x3bf   : > { %v10748_v45 = vadd.f32 %v3574_v41, %v3545_v17 }
 0x3c0   : > { %4164 = vmatmul.bf16.gmra.mxu0 %v10565_v56 }
 0x3c1   : > { %6935 = vmatmul.msk.bf16.gmra.mxu1 %vm993_vm1, %v10575_v47 }
 0x3c3   : > { %v3730_v55 = vpop.f32.mrf.mxu2  ;;  %v3759_v42 = vpop.f32.mrf.mxu3 }
 0x3c5   : > { %v3547_v16 = vpop.f32.mrf.mxu0 }
 0x3c6   : > { %v3576_v58 = vpop.f32.mrf.mxu1 }
 0x3c7   : > { %v3577_v6 = vadd.f32 %v3576_v58, %v3547_v16  ;;  %v11888_v58 = vld [vmem:[#allocation10_spill] sm:$0xff] }
 0x3c8   : > { %4336 = vmatmul.bf16.vlgmr.msrb.gmra.mxu2 %v10259_v7  ;;  %6945 = vmatmul.msk.bf16.vlgmr.msrb.gmra.mxu3 %vm993_vm1, %v10261_v9 }
 0x3c9   : > { %v3726_v25 = vadd.f32 %v3725_v2, %v3577_v6 }
 0x3cb   : > { %v4005_v18 = vpop.f32.mrf.mxu2  ;;  %v10756_v29 = vadd.f32 %v3754_v40, %v3726_v25  ;;  %v4034_v63 = vpop.f32.mrf.mxu3  ;;  %v11889_v25 = vld [vmem:[#allocation30_spill] sm:$0xff] }
 0x3cc   : > { %v4035_v36 = vadd.f32 %v4034_v63, %v4005_v18 }
 0x3cd   : > { %v3550_v31 = vpop.f32.mrf.mxu0 }
 0x3ce   : > { %v3579_v11 = vpop.f32.mrf.mxu1 }
 0x3cf   : > { %v3580_v8 = vadd.f32 %v3579_v11, %v3550_v31 }
 0x3d0   : > { %4169 = vmatmul.bf16.gmra.mxu0 %v10635_v48 }
 0x3d1   : > { %v3729_v35 = vadd.f32 %v3728_v20, %v3580_v8  ;;  %6936 = vmatmul.msk.bf16.gmra.mxu1 %vm993_vm1, %v10637_v10  ;;  %v11886_v20 = vld [vmem:[#allocation31_spill] sm:$0xff] }
 0x3d3   : > { %v4007_v37 = vpop.f32.mrf.mxu2  ;;  %v10761_v57 = vadd.f32 %v3757_v52, %v3729_v35  ;;  %v4036_v24 = vpop.f32.mrf.mxu3  ;;  %v11887_v52 = vld [vmem:[#allocation11_spill] sm:$0xff] }
 0x3d4   : > { %v4037_v61 = vadd.f32 %v4036_v24, %v4007_v37  ;;  %v11890_v37 = vld [vmem:[#allocation51_spill] sm:$0xff]  ;;  %v11891_v24 = vld [vmem:[#allocation13_spill] sm:$0xff] }
 0x3d5   : > { %v3552_v26 = vpop.f32.mrf.mxu0 }
 0x3d6   : > { %v3581_v49 = vpop.f32.mrf.mxu1 }
 0x3d7   : > { %v3582_v44 = vadd.f32 %v3581_v49, %v3552_v26 }
 0x3d8   : > { %4341 = vmatmul.bf16.gmra.mxu2 %v10333_v39  ;;  %6946 = vmatmul.msk.bf16.gmra.mxu3 %vm993_vm1, %v10335_v46 }
 0x3d9   : > { %v3731_v21 = vadd.f32 %v3730_v55, %v3582_v44 }
 0x3db   : > { %v10768_v12 = vpop.f32.mrf.mxu2  ;;  %v10770_v38 = vadd.f32 %v3759_v42, %v3731_v21  ;;  %v10772_v30 = vpop.f32.mrf.mxu3 }
 0x3dd   : > { %v3855_v2 = vpop.f32.mrf.mxu0 }
 0x3de   : > { %v3884_v40 = vpop.f32.mrf.mxu1 }
 0x3df   : > { %v3885_v33 = vadd.f32 %v3884_v40, %v3855_v2 }
 0x3e0   : > { %4278 = vmatmul.bf16.vlgmr.msrb.gmra.mxu0 %v11886_v20 }
 0x3e1   : > { %v3904_v15 = vadd.f32 %v3885_v33, %v3743_v51  ;;  %6941 = vmatmul.msk.bf16.vlgmr.msrb.gmra.mxu1 %vm993_vm1, %v11887_v52 }
 0x3e3   : > { %v10780_v19 = vpop.f32.mrf.mxu2  ;;  %v10782_v17 = vadd.f32 %v4035_v36, %v3904_v15  ;;  %v10784_v41 = vpop.f32.mrf.mxu3 }
 0x3e5   : > { %v3857_v55 = vpop.f32.mrf.mxu0 }
 0x3e6   : > { %v3886_v42 = vpop.f32.mrf.mxu1 }
 0x3e7   : > { %v3887_v16 = vadd.f32 %v3886_v42, %v3857_v55 }
 0x3e8   : > { %4346 = vmatmul.bf16.gmra.mxu2 %v11888_v58  ;;  %6947 = vmatmul.msk.bf16.gmra.mxu3 %vm993_vm1, %v11889_v25 }
 0x3e9   : > { %v3905_v6 = vadd.f32 %v3887_v16, %v3745_v53 }
 0x3eb   : > { %v10790_v18 = vpop.f32.mrf.mxu2  ;;  %v10792_v5 = vadd.f32 %v4037_v61, %v3905_v6  ;;  %v10794_v34 = vpop.f32.mrf.mxu3 }
 0x3ed   : > { %v3860_v63 = vpop.f32.mrf.mxu0 }
 0x3ee   : > { %v3889_v36 = vpop.f32.mrf.mxu1 }
 0x3f0   : > { %4283 = vmatmul.bf16.gmra.mxu0 %v10259_v7 }
 0x3f1   : > { %6942 = vmatmul.msk.bf16.gmra.mxu1 %vm993_vm1, %v10261_v9 }
 0x3f3   : > { %v4017_v1 = vpop.f32.mrf.mxu2  ;;  %v4046_v31 = vpop.f32.mrf.mxu3 }
 0x3f4   : > { %v4047_v11 = vadd.f32 %v4046_v31, %v4017_v1 }
 0x3f5   : > { %v10799_v8 = vpop.f32.mrf.mxu0 }
 0x3f6   : > { %v10801_v35 = vpop.f32.mrf.mxu1 }
 0x3f8   : > { %4351 = vmatmul.bf16.gmra.mxu2 %v11890_v37  ;;  %6948 = vmatmul.msk.bf16.gmra.mxu3 %vm993_vm1, %v11891_v24 }
 0x3fb   : > { %v4020_v61 = vpop.f32.mrf.mxu2  ;;  %v4049_v26 = vpop.f32.mrf.mxu3 }
 0x3fc   : > { %v4050_v49 = vadd.f32 %v4049_v26, %v4020_v61 }
 0x3fd   : > { %v10806_v44 = vpop.f32.mrf.mxu0 }
 0x3fe   : > { %v10808_v7 = vpop.f32.mrf.mxu1 }
 0x400   : > { %4288 = vmatmul.bf16.gmra.mxu0 %v10333_v39 }
 0x401   : > { %6943 = vmatmul.msk.bf16.gmra.mxu1 %vm993_vm1, %v10335_v46 }
 0x403   : > { %v4022_v9 = vpop.f32.mrf.mxu2  ;;  %v4051_v21 = vpop.f32.mrf.mxu3 }
 0x404   : > { %v4052_v43 = vadd.f32 %v4051_v21, %v4022_v9 }
 0x405   : > { %v3867_v2 = vpop.f32.mrf.mxu0 }
 0x406   : > { %v3896_v40 = vpop.f32.mrf.mxu1 }
 0x407   : > { %v3897_v51 = vadd.f32 %v3896_v40, %v3867_v2 }
 0x408   : > { %4480 = vmatmul.bf16.vlgmr.msra.gmra.mxu2 %v10333_v39  ;;  %6953 = vmatmul.msk.bf16.vlgmr.msra.gmra.mxu3 %vm993_vm1, %v10335_v46 }
 0x409   : > { %v3909_v33 = vadd.f32 %v3897_v51, %v10756_v29 }
 0x40b   : > { %v4221_v15 = vpop.f32.mrf.mxu2  ;;  %v10817_v20 = vadd.f32 %v4047_v11, %v3909_v33  ;;  %v4250_v52 = vpop.f32.mrf.mxu3  ;;  %v3890_v33 = vadd.f32 %v3889_v36, %v3860_v63  ;;  %v3892_v36 = vadd.f32 %v10801_v35, %v10799_v8 }
 0x40c   : > { %v10819_v27 = vadd.f32 %v4250_v52, %v4221_v15  ;;  %v3721_v52 = vadd.f32 %v10682_v3, %v10741_v14 }
 0x40d   : > { %v3870_v55 = vpop.f32.mrf.mxu0 }
 0x40e   : > { %v3899_v42 = vpop.f32.mrf.mxu1 }
 0x40f   : > { %v3900_v53 = vadd.f32 %v3899_v42, %v3870_v55 }
 0x410   : > { %4293 = vmatmul.bf16.gmra.mxu0 %v11888_v58 }
 0x411   : > { %v3910_v16 = vadd.f32 %v3900_v53, %v10761_v57  ;;  %6944 = vmatmul.msk.bf16.gmra.mxu1 %vm993_vm1, %v11889_v25 }
 0x413   : > { %v10825_v39 = vpop.f32.mrf.mxu2  ;;  %v10827_v29 = vadd.f32 %v4050_v49, %v3910_v16  ;;  %v10829_v46 = vpop.f32.mrf.mxu3 }
 0x415   : > { %v3872_v6 = vpop.f32.mrf.mxu0 }
 0x416   : > { %v3901_v1 = vpop.f32.mrf.mxu1 }
 0x417   : > { %v3902_v31 = vadd.f32 %v3901_v1, %v3872_v6 }
 0x418   : > { %4485 = vmatmul.bf16.gmra.mxu2 %v11888_v58  ;;  %6954 = vmatmul.msk.bf16.gmra.mxu3 %vm993_vm1, %v11889_v25  ;;  %v3719_v25 = vadd.f32 %v10653_v23, %v10730_v13  ;;  %v4040_v23 = vadd.f32 %v10772_v30, %v10768_v12  ;;  %v3724_v30 = vadd.f32 %v10714_v59, %v10748_v45 }
 0x419   : > { %v3911_v11 = vadd.f32 %v3902_v31, %v10770_v38 }
 0x41a   : > { %v3753_v16 = vadd.f32 %v10718_v60, %v3724_v30 }
 0x41b   : > { %v4226_v57 = vpop.f32.mrf.mxu2  ;;  %v10835_v61 = vadd.f32 %v4052_v43, %v3911_v11  ;;  %v4255_v26 = vpop.f32.mrf.mxu3 }
 0x41c   : > { %v10837_v9 = vadd.f32 %v4255_v26, %v4226_v57 }
 0x41d   : > { %11892 = vst [vmem:[#allocation34_spill] sm:$0xff] %v10835_v61  ;;  %v4155_v49 = vpop.f32.mrf.mxu0 }
 0x41e   : > { %v4184_v21 = vpop.f32.mrf.mxu1 }
 0x41f   : > { %v4185_v2 = vadd.f32 %v4184_v21, %v4155_v49 }
 0x420   : > { %4402 = vmatmul.bf16.vlgmr.msra.gmra.mxu0 %v11869_v32 }
 0x421   : > { %v10840_v40 = vadd.f32 %v4185_v2, %v10782_v17  ;;  %6949 = vmatmul.msk.bf16.vlgmr.msra.gmra.mxu1 %vm993_vm1, %v11870_v22  ;;  %v3748_v17 = vadd.f32 %v10656_v0, %v3719_v25 }
 0x423   : > { %v10845_v38 = vpop.f32.mrf.mxu2  ;;  %v10847_v58 = vpop.f32.mrf.mxu3  ;;  %v3906_v32 = vadd.f32 %v3890_v33, %v3748_v17 }
 0x425   : > { %v10851_v43 = vpop.f32.mrf.mxu0  ;;  %v4056_v0 = vadd.f32 %v4040_v23, %v3906_v32 }
 0x426   : > { %v10853_v51 = vpop.f32.mrf.mxu1 }
 0x428   : > { %4490 = vmatmul.bf16.gmra.mxu2 %v11890_v37  ;;  %6955 = vmatmul.msk.bf16.gmra.mxu3 %vm993_vm1, %v11891_v24  ;;  %v3750_v24 = vadd.f32 %v10686_v54, %v3721_v52  ;;  %v4042_v54 = vadd.f32 %v10784_v41, %v10780_v19  ;;  %v4045_v41 = vadd.f32 %v10794_v34, %v10790_v18 }
 0x42a   : > { %v3907_v3 = vadd.f32 %v3892_v36, %v3750_v24 }
 0x42b   : > { %v4231_v22 = vpop.f32.mrf.mxu2  ;;  %v4260_v15 = vpop.f32.mrf.mxu3 }
 0x42c   : > { %v10863_v13 = vadd.f32 %v4260_v15, %v4231_v22 }
 0x42d   : > { %v4160_v55 = vpop.f32.mrf.mxu0 }
 0x42e   : > { %v4189_v63 = vpop.f32.mrf.mxu1 }
 0x42f   : > { %v4190_v37 = vadd.f32 %v4189_v63, %v4160_v55 }
 0x430   : > { %4407 = vmatmul.bf16.gmra.mxu0 %v10293_v62  ;;  %v3895_v62 = vadd.f32 %v10808_v7, %v10806_v44 }
 0x431   : > { %v10868_v42 = vadd.f32 %v4190_v37, %v4056_v0  ;;  %6950 = vmatmul.msk.bf16.gmra.mxu1 %vm993_vm1, %v10300_v50  ;;  %v4057_v50 = vadd.f32 %v4042_v54, %v3907_v3 }
 0x432   : > { %v3908_v59 = vadd.f32 %v3895_v62, %v3753_v16 }
 0x433   : > { %11893 = vst [vmem:[#allocation33_spill] sm:$0xff] %v10868_v42  ;;  %4550 = vrot.lane.b32.xlu0 %v10868_v42, %s7636_s11  ;;  %v10875_v14 = vpop.f32.mrf.mxu2  ;;  %v10877_v12 = vpop.f32.mrf.mxu3  ;;  %v4258_v42 = vadd.f32 %v10847_v58, %v10845_v38 }
 0x434   : > { %v4058_v1 = vadd.f32 %v4045_v41, %v3908_v59 }
 0x435   : > { %v4162_v8 = vpop.f32.mrf.mxu0 }
 0x436   : > { %v4191_v35 = vpop.f32.mrf.mxu1 }
 0x437   : > { %v4192_v53 = vadd.f32 %v4191_v35, %v4162_v8 }
 0x438   : > { %4495 = vmatmul.bf16.gmra.mxu2 %v10706_v4  ;;  %6956 = vmatmul.msk.bf16.gmra.mxu3 %vm993_vm1, %v10708_v28 }
 0x439   : > { %v10887_v6 = vadd.f32 %v4192_v53, %v4057_v50 }
 0x43b   : > { %11894 = vst [vmem:[#allocation53_spill] sm:$0xff] %v10887_v6  ;;  %4552 = vrot.lane.b32.xlu1 %v10887_v6, %s7636_s11  ;;  %v4236_v45 = vpop.f32.mrf.mxu2  ;;  %v4265_v19 = vpop.f32.mrf.mxu3 }
 0x43c   : > { %v10895_v44 = vadd.f32 %v4265_v19, %v4236_v45 }
 0x43d   : > { %v4165_v7 = vpop.f32.mrf.mxu0 }
 0x43e   : > { %v4194_v4 = vpop.f32.mrf.mxu1 }
 0x43f   : > { %v4195_v60 = vadd.f32 %v4194_v4, %v4165_v7 }
 0x440   : > { %4412 = vmatmul.bf16.gmra.mxu0 %v10565_v56 }
 0x441   : > { %v10897_v31 = vadd.f32 %v4195_v60, %v4058_v1  ;;  %6951 = vmatmul.msk.bf16.gmra.mxu1 %vm993_vm1, %v10575_v47 }
 0x443   : > { %11895 = vst [vmem:[#allocation14_spill] sm:$0xff] %v10897_v31  ;;  %4554 = vrot.lane.b32.xlu1 %v10897_v31, %s7636_s11  ;;  %v10904_v28 = vpop.f32.mrf.mxu2  ;;  %v10906_v11 = vpop.f32.mrf.mxu3 }
 0x445   : > { %v10908_v18 = vpop.f32.mrf.mxu0 }
 0x446   : > { %v10910_v34 = vpop.f32.mrf.mxu1 }
 0x447   : > { %v4197_v38 = vadd.f32 %v10910_v34, %v10908_v18  ;;  %v4263_v18 = vadd.f32 %v10877_v12, %v10875_v14  ;;  %v7537_v12 = vld [vmem:[%s11588_s5 + $0xec] sm:$0xf] }
 0x44b   : > { %v4337_v57 = vpop.f32.mrf.mxu2  ;;  %v4366_v26 = vpop.f32.mrf.mxu3 }
 0x44c   : > { %v4367_v49 = vadd.f32 %v4366_v26, %v4337_v57 }
 0x44d   : > { %v4170_v21 = vpop.f32.mrf.mxu0 }
 0x44e   : > { %v4199_v2 = vpop.f32.mrf.mxu1 }
 0x44f   : > { %v4200_v56 = vadd.f32 %v4199_v2, %v4170_v21 }
 0x450   : > { %4417 = vmatmul.bf16.gmra.mxu0 %v10635_v48 }
 0x451   : > { %v10913_v25 = vadd.f32 %v4200_v56, %v10827_v29  ;;  %6952 = vmatmul.msk.bf16.gmra.mxu1 %vm993_vm1, %v10637_v10 }
 0x453   : > { %11896 = vst [vmem:[#allocation35_spill] sm:$0xff] %v10913_v25  ;;  %v10918_v47 = vpop.f32.mrf.mxu2  ;;  %v10920_v33 = vpop.f32.mrf.mxu3 }
 0x455   : > { %v10922_v17 = vpop.f32.mrf.mxu0 }
 0x456   : > { %11897 = vst [vmem:[#allocation58_spill] sm:$0xff] %v10922_v17  ;;  %v10924_v32 = vpop.f32.mrf.mxu1 }
 0x457   : > { %11898 = vst [vmem:[#allocation37_spill] sm:$0xff] %v10924_v32 }
 0x45b   : > { %v4342_v22 = vpop.f32.mrf.mxu2  ;;  %v4371_v15 = vpop.f32.mrf.mxu3 }
 0x45c   : > { %v4372_v61 = vadd.f32 %v4371_v15, %v4342_v22 }
 0x45d   : > { %v4279_v52 = vpop.f32.mrf.mxu0 }
 0x45e   : > { %v4308_v23 = vpop.f32.mrf.mxu1  ;;  %v4280_v29 = vadd.f32 %v4279_v52, %v10819_v27 }
 0x460   : > { %v4309_v55 = vadd.f32 %v4308_v23, %v4280_v29 }
 0x462   : > { %v10927_v63 = vadd.f32 %v4367_v49, %v4309_v55 }
 0x463   : > { %v4344_v48 = vpop.f32.mrf.mxu2  ;;  %v4373_v36 = vpop.f32.mrf.mxu3 }
 0x464   : > { %11899 = vst [vmem:[#allocation56_spill] sm:$0xff] %v10927_v63 }
 0x465   : > { %v10929_v10 = vpop.f32.mrf.mxu0 }
 0x466   : > { %v10931_v0 = vpop.f32.mrf.mxu1 }
 0x46b   : > { %v4347_v37 = vpop.f32.mrf.mxu2  ;;  %v4376_v24 = vpop.f32.mrf.mxu3 }
 0x46c   : > { %v4377_v34 = vadd.f32 %v4376_v24, %v4347_v37  ;;  %v7039_v37 = vld [vmem:[%s11588_s5 + $0xe0] sm:$0xf] }
 0x46d   : > { %v4284_v3 = vpop.f32.mrf.mxu0 }
 0x46e   : > { %v4313_v30 = vpop.f32.mrf.mxu1  ;;  %v4285_v31 = vadd.f32 %v4284_v3, %v10837_v9  ;;  %v4253_v3 = vadd.f32 %v10829_v46, %v10825_v39 }
 0x470   : > { %v4314_v6 = vadd.f32 %v4313_v30, %v4285_v31  ;;  %v4282_v39 = vadd.f32 %v10929_v10, %v4253_v3  ;;  %v7538_v10 = vld [vmem:[%s11588_s5 + $0xec] sm:$0xf0] }
 0x471   : > { %v11911_v3 = vld [vmem:[#allocation56_spill] sm:$0xff] }
 0x473   : > { %v10933_v54 = vpop.f32.mrf.mxu2  ;;  %v10935_v8 = vpop.f32.mrf.mxu3 }
 0x475   : > { %v4286_v35 = vpop.f32.mrf.mxu0 }
 0x476   : > { %v4315_v62 = vpop.f32.mrf.mxu1 }
 0x47b   : > { %v10937_v27 = vpop.f32.mrf.mxu2  ;;  %v10939_v50 = vpop.f32.mrf.mxu3 }
 0x47c   : > { %11900 = vst [vmem:[#allocation57_spill] sm:$0xff] %v10937_v27  ;;  %v4374_v27 = vadd.f32 %v4373_v36, %v4344_v48 }
 0x47d   : > { %11901 = vst [vmem:[#allocation54_spill] sm:$0xff] %v10939_v50  ;;  %v4289_v53 = vpop.f32.mrf.mxu0 }
 0x47e   : > { %v4318_v16 = vpop.f32.mrf.mxu1  ;;  %v4290_v22 = vadd.f32 %v4289_v53, %v10863_v13  ;;  %v7539_v13 = vld [vmem:[%s11588_s5 + $0xf4] sm:$0xf0]  ;;  %v7041_v53 = vld [vmem:[%s11588_s5 + $0xf0] sm:$0xf0] }
 0x480   : > { %v4319_v48 = vadd.f32 %v4318_v16, %v4290_v22  ;;  %v7040_v16 = vor.u32 %v7538_v10, %v7039_v37 }
 0x482   : > { %v4390_v24 = vadd.f32 %v4377_v34, %v4319_v48  ;;  %4822 = vmatpush.bf16.msrb.mxu0 %v7040_v16  ;;  %v11919_v16 = vld [vmem:[#allocation37_spill] sm:$0xff] }
 0x483   : > { %v10941_v59 = vpop.f32.mrf.mxu2  ;;  %v10943_v45 = vpop.f32.mrf.mxu3 }
 0x484   : > { %11902 = vst [vmem:[#allocation60_spill] sm:$0xff] %v10941_v59  ;;  %v4388_v59 = vadd.f32 %v4372_v61, %v4314_v6  ;;  %v11909_v48 = vld [vmem:[#allocation54_spill] sm:$0xff] }
 0x485   : > { %11903 = vst [vmem:[#allocation63_spill] sm:$0xff] %v10943_v45  ;;  %v4291_v19 = vpop.f32.mrf.mxu0 }
 0x486   : > { %v10945_v41 = vpop.f32.mrf.mxu1  ;;  %v4292_v30 = vadd.f32 %v4291_v19, %v4263_v18 }
 0x48b   : > { %v10951_v1 = vpop.f32.mrf.mxu2  ;;  %v10953_v60 = vpop.f32.mrf.mxu3 }
 0x48c   : > { %11904 = vst [vmem:[#allocation66_spill] sm:$0xff] %v10951_v1  ;;  %v11916_v37 = vld [vmem:[#allocation63_spill] sm:$0xff] }
 0x48d   : > { %v10947_v7 = vpop.f32.mrf.mxu0  ;;  %11905 = vst [vmem:[#allocation20_spill] sm:$0xff] %v10953_v60 }
 0x48e   : > { %v10949_v4 = vpop.f32.mrf.mxu1 }
 0x493   : > { %v10959_v49 = vpop.f32.mrf.mxu2  ;;  %v10961_v21 = vpop.f32.mrf.mxu3 }
 0x494   : > { %v11913_v34 = vld [vmem:[#allocation20_spill] sm:$0xff] }
 0x495   : > { %v10955_v57 = vpop.f32.mrf.mxu0 }
 0x496   : > { %11906 = vst [vmem:[#allocation41_spill] sm:$0xff] %v10955_v57  ;;  %v10957_v26 = vpop.f32.mrf.mxu1 }
 0x497   : > { %11907 = vst [vmem:[#allocation48_spill] sm:$0xff] %v10957_v26  ;;  %v4287_v26 = vadd.f32 %v4286_v35, %v4258_v42 }
 0x499   : > { %v4316_v57 = vadd.f32 %v4315_v62, %v4287_v26  ;;  %v4321_v26 = vadd.f32 %v10945_v41, %v4292_v30 }
 0x49b   : > { %v4486_v52 = vpop.f32.mrf.mxu2  ;;  %v4515_v23 = vpop.f32.mrf.mxu3  ;;  %v4389_v58 = vadd.f32 %v4374_v27, %v4316_v57  ;;  %v7536_v27 = vld [vmem:[%s11588_s5 + $0xe4] sm:$0xf]  ;;  %v4311_v57 = vadd.f32 %v10931_v0, %v4282_v39 }
 0x49c   : > { %v4516_v1 = vadd.f32 %v4515_v23, %v4486_v52  ;;  %v4369_v23 = vadd.f32 %v10920_v33, %v10918_v47  ;;  %v4295_v47 = vadd.f32 %v10947_v7, %v10895_v44  ;;  %v4268_v7 = vadd.f32 %v10906_v11, %v10904_v28  ;;  %v11912_v11 = vld [vmem:[#allocation66_spill] sm:$0xff] }
 0x49d   : > { %v10963_v2 = vpop.f32.mrf.mxu0 }
 0x49e   : > { %v10965_v56 = vpop.f32.mrf.mxu1  ;;  %v4387_v0 = vadd.f32 %v4369_v23, %v4311_v57  ;;  %v11920_v57 = vld [vmem:[#allocation34_spill] sm:$0xff] }
 0x4a3   : > { %v4488_v32 = vpop.f32.mrf.mxu2  ;;  %v4517_v17 = vpop.f32.mrf.mxu3 }
 0x4a5   : > { %v10967_v29 = vpop.f32.mrf.mxu0 }
 0x4a6   : > { %v10969_v55 = vpop.f32.mrf.mxu1 }
 0x4ab   : > { %v4491_v61 = vpop.f32.mrf.mxu2  ;;  %v4520_v42 = vpop.f32.mrf.mxu3 }
 0x4ad   : > { %v4408_v25 = vpop.f32.mrf.mxu0 }
 0x4ae   : > { %v4437_v45 = vpop.f32.mrf.mxu1 }
 0x4af   : > { %v4438_v60 = vadd.f32 %v4437_v45, %v4408_v25  ;;  %v4518_v25 = vadd.f32 %v4517_v17, %v4488_v32  ;;  %v7049_v32 = vld [vmem:[%s11588_s5 + $0xf8] sm:$0xf0]  ;;  %v4521_v45 = vadd.f32 %v4520_v42, %v4491_v61  ;;  %v4324_v42 = vadd.f32 %v10949_v4, %v4295_v47 }
 0x4b0   : > { %v7052_v62 = vor.u32 %v7537_v12, %v7049_v32  ;;  %v11915_v32 = vld [vmem:[#allocation60_spill] sm:$0xff] }
 0x4b1   : > { %v4454_v63 = vadd.f32 %v4438_v60, %v4388_v59  ;;  %v7044_v59 = vor.u32 %v7536_v27, %v7041_v53  ;;  %v11918_v53 = vld [vmem:[#allocation58_spill] sm:$0xff] }
 0x4b2   : > { %4879 = vmatpush.bf16.msrb.mxu3 %v7052_v62  ;;  %v11917_v62 = vld [vmem:[#allocation35_spill] sm:$0xff] }
 0x4b3   : > { %v10974_v50 = vadd.f32 %v4516_v1, %v4454_v63  ;;  %v10982_v63 = vadd.f32 %v4197_v38, %v10817_v20  ;;  %v7047_v20 = vld [vmem:[%s11588_s5 + $0xe8] sm:$0xf]  ;;  %v4493_v1 = vpop.f32.mrf.mxu2  ;;  %v4522_v19 = vpop.f32.mrf.mxu3  ;;  %4841 = vmatpush.bf16.msrb.mxu1 %v7044_v59  ;;  %v4202_v59 = vadd.f32 %v11919_v16, %v11918_v53 }
 0x4b4   : > { %v7048_v14 = vor.u32 %v7539_v13, %v7047_v20  ;;  %v4511_v20 = vadd.f32 %v11913_v34, %v11912_v11  ;;  %v7001_v11 = vld [vmem:[%s11588_s5 + $0x98] sm:$0xf0]  ;;  %v6991_v34 = vld [vmem:[%s11588_s5 + $0x80] sm:$0xf]  ;;  %v4553_v16 = vpop.permute.xlu1 %4552 }
 0x4b5   : > { %4590 = vrot.lane.b32.xlu2 %v10974_v50, %s7636_s11  ;;  %v4410_v9 = vpop.f32.mrf.mxu0 }
 0x4b6   : > { %v4439_v31 = vpop.f32.mrf.mxu1  ;;  %4860 = vmatpush.bf16.msrb.mxu2 %v7048_v14 }
 0x4b7   : > { %v4440_v6 = vadd.f32 %v4439_v31, %v4410_v9  ;;  %v4435_v9 = vadd.f32 %v10969_v55, %v10967_v29  ;;  %v4379_v31 = vadd.f32 %v10935_v8, %v10933_v54  ;;  %v4523_v55 = vadd.f32 %v4522_v19, %v4493_v1 }
 0x4b8   : > { %v4513_v8 = vadd.f32 %v10961_v21, %v10959_v49 }
 0x4b9   : > { %v4455_v15 = vadd.f32 %v4440_v6, %v4389_v58  ;;  %v4187_v58 = vadd.f32 %v10853_v51, %v10851_v43  ;;  %v4391_v22 = vadd.f32 %v4379_v31, %v4321_v26  ;;  %v4453_v29 = vadd.f32 %v4435_v9, %v4387_v0  ;;  %v7031_v9 = vld [vmem:[%s11588_s5 + $0xc8] sm:$0xf]  ;;  %v7535_v31 = vld [vmem:[%s11588_s5 + $0xd4] sm:$0xf0]  ;;  %v7533_v0 = vld [vmem:[%s11588_s5 + $0xcc] sm:$0xf] }
 0x4ba   : > { %v4433_v6 = vadd.f32 %v10965_v56, %v10963_v2  ;;  %v11910_v2 = vld [vmem:[#allocation41_spill] sm:$0xff]  ;;  %v11079_v26 = vadd.f32 %v4202_v59, %v11920_v57 }
 0x4bb   : > { %v10984_v36 = vadd.f32 %v4518_v25, %v4455_v15  ;;  %v11040_v61 = vadd.f32 %v4187_v58, %v10792_v5  ;;  %v4496_v43 = vpop.f32.mrf.mxu2  ;;  %v4525_v51 = vpop.f32.mrf.mxu3  ;;  %v11047_v44 = vadd.f32 %v4513_v8, %v4453_v29  ;;  %v11908_v15 = vld [vmem:[#allocation57_spill] sm:$0xff]  ;;  %v4297_v56 = vadd.f32 %v11910_v2, %v4268_v7  ;;  %v7023_v58 = vld [vmem:[%s11588_s5 + $0xc0] sm:$0xf]  ;;  %v7532_v29 = vld [vmem:[%s11588_s5 + $0xc4] sm:$0xf] }
 0x4bc   : > { %v4382_v49 = vadd.f32 %v11909_v48, %v11908_v15  ;;  %v4452_v18 = vadd.f32 %v4433_v6, %v11911_v3  ;;  %v4526_v13 = vadd.f32 %v4525_v51, %v4496_v43  ;;  %v7529_v6 = vld [vmem:[%s11588_s5 + $0xac] sm:$0xf]  ;;  %v7017_v43 = vld [vmem:[%s11588_s5 + $0xb8] sm:$0xf0]  ;;  %v7007_v15 = vld [vmem:[%s11588_s5 + $0xa0] sm:$0xf] }
 0x4bd   : > { %4556 = vrot.lane.b32.xlu2 %v10982_v63, %s7636_s11  ;;  %4592 = vrot.lane.b32.xlu0 %v10984_v36, %s7636_s11  ;;  %v4413_v46 = vpop.f32.mrf.mxu0  ;;  %v7020_v7 = vor.u32 %v7529_v6, %v7017_v43  ;;  %v7530_v48 = vld [vmem:[%s11588_s5 + $0xac] sm:$0xf0]  ;;  %v6999_v2 = vld [vmem:[%s11588_s5 + $0x88] sm:$0xf]  ;;  %v4555_v43 = vpop.permute.xlu1 %4554 }
 0x4be   : > { %v4442_v17 = vpop.f32.mrf.mxu1  ;;  %v4392_v21 = vadd.f32 %v4382_v49, %v4324_v42  ;;  %v11064_v14 = vadd.f32 %v4511_v20, %v4452_v18  ;;  %v7531_v42 = vld [vmem:[%s11588_s5 + $0xb4] sm:$0xf0]  ;;  %v7528_v49 = vld [vmem:[%s11588_s5 + $0xa4] sm:$0xf]  ;;  %v7525_v3 = vld [vmem:[%s11588_s5 + $0x8c] sm:$0xf] }
 0x4bf   : > { %v4443_v35 = vadd.f32 %v4442_v17, %v4413_v46  ;;  %v11914_v46 = vld [vmem:[#allocation48_spill] sm:$0xff] }
 0x4c0   : > { %v4326_v17 = vadd.f32 %v11914_v46, %v4297_v56  ;;  %v7527_v56 = vld [vmem:[%s11588_s5 + $0x94] sm:$0xf0]  ;;  %v7526_v20 = vld [vmem:[%s11588_s5 + $0x8c] sm:$0xf0]  ;;  %v7524_v46 = vld [vmem:[%s11588_s5 + $0x84] sm:$0xf] }
 0x4c1   : > { %v4456_v60 = vadd.f32 %v4443_v35, %v4390_v24  ;;  %v4384_v24 = vadd.f32 %v11916_v37, %v11915_v32  ;;  %v4551_v32 = vpop.permute.xlu0 %4550 }
 0x4c3   : > { %v11021_v52 = vadd.f32 %v4521_v45, %v4456_v60  ;;  %v4498_v30 = vpop.f32.mrf.mxu2  ;;  %v4527_v35 = vpop.f32.mrf.mxu3  ;;  %v4393_v45 = vadd.f32 %v4384_v24, %v4326_v17  ;;  %v6993_v17 = vld [vmem:[%s11588_s5 + $0x90] sm:$0xf0] }
 0x4c4   : > { %v4528_v19 = vadd.f32 %v4527_v35, %v4498_v30  ;;  %v6996_v37 = vor.u32 %v7524_v46, %v6993_v17  ;;  %v11921_v30 = vld [vmem:[#allocation33_spill] sm:$0xff] }
 0x4c5   : > { %4594 = vrot.lane.b32.xlu0 %v11021_v52, %s7636_s11  ;;  %4546 = vrot.lane.b32.xlu2 %v10840_v40, %s7636_s11  ;;  %v4415_v38 = vpop.f32.mrf.mxu0  ;;  %v4572_v35 = vmax.f32 %v11921_v30, %v4551_v32  ;;  %v7515_v30 = vld [vmem:[%s11588_s5 + $0x34] sm:$0xf0] }
 0x4c6   : > { %v4444_v41 = vpop.f32.mrf.mxu1 }
 0x4c7   : > { %v4445_v33 = vadd.f32 %v4444_v41, %v4415_v38  ;;  %v7032_v38 = vor.u32 %v7535_v31, %v7031_v9  ;;  %v7033_v41 = vld [vmem:[%s11588_s5 + $0xd8] sm:$0xf0]  ;;  %v7119_v9 = vld [vmem:[%s11588_s5 + $0x68] sm:$0xf]  ;;  %v7523_v31 = vld [vmem:[%s11588_s5 + $0x74] sm:$0xf0] }
 0x4c8   : > { %v7036_v47 = vor.u32 %v7533_v0, %v7033_v41  ;;  %v7521_v0 = vld [vmem:[%s11588_s5 + $0x6c] sm:$0xf]  ;;  %v7120_v41 = vor.u32 %v7523_v31, %v7119_v9  ;;  %v7512_v9 = vld [vmem:[%s11588_s5 + $0x24] sm:$0xf]  ;;  %v7081_v31 = vld [vmem:[%s11588_s5 + $0x30] sm:$0xf0] }
 0x4c9   : > { %v4457_v54 = vadd.f32 %v4445_v33, %v4391_v22  ;;  %v7534_v22 = vld [vmem:[%s11588_s5 + $0xcc] sm:$0xf0]  ;;  %4861 = vmatpush.bf16.msrb.mxu2 %v7032_v38  ;;  %v11188_v38 = vld [vmem:[%s11587_s4 + $0x2] ss:$0 sm:$0xff] }
 0x4ca   : > { %v7024_v33 = vor.u32 %v7534_v22, %v7023_v58  ;;  %4880 = vmatpush.bf16.msrb.mxu3 %v7036_v47 }
 0x4cb   : > { %v11045_v25 = vadd.f32 %v4523_v55, %v4457_v54  ;;  %v7025_v55 = vld [vmem:[%s11588_s5 + $0xd0] sm:$0xf0]  ;;  %v7015_v54 = vld [vmem:[%s11588_s5 + $0xa8] sm:$0xf] }
 0x4cc   : > { %v7028_v8 = vor.u32 %v7532_v29, %v7025_v55  ;;  %4823 = vmatpush.bf16.msrb.mxu0 %v7024_v33  ;;  %v7016_v51 = vor.u32 %v7531_v42, %v7015_v54  ;;  %v7111_v33 = vld [vmem:[%s11588_s5 + $0x60] sm:$0xf]  ;;  %v7522_v29 = vld [vmem:[%s11588_s5 + $0x6c] sm:$0xf0]  ;;  %v7520_v55 = vld [vmem:[%s11588_s5 + $0x64] sm:$0xf] }
 0x4cd   : > { %4596 = vrot.lane.b32.xlu1 %v11045_v25, %s7636_s11  ;;  %4548 = vrot.lane.b32.xlu0 %v11040_v61, %s7636_s11  ;;  %v4418_v5 = vpop.f32.mrf.mxu0  ;;  %v7112_v54 = vor.u32 %v7522_v29, %v7111_v33 }
 0x4ce   : > { %4588 = vrot.lane.b32.xlu2 %v11047_v44, %s7636_s11  ;;  %v4447_v4 = vpop.f32.mrf.mxu1  ;;  %4842 = vmatpush.bf16.msrb.mxu1 %v7028_v8  ;;  %v7113_v8 = vld [vmem:[%s11588_s5 + $0x70] sm:$0xf0] }
 0x4cf   : > { %v4448_v28 = vadd.f32 %v4447_v4, %v4418_v5  ;;  %4862 = vmatpush.bf16.msrb.mxu2 %v7016_v51  ;;  %4881 = vmatpush.bf16.msrb.mxu3 %v7020_v7  ;;  %v7008_v5 = vor.u32 %v7530_v48, %v7007_v15  ;;  %v7009_v4 = vld [vmem:[%s11588_s5 + $0xb0] sm:$0xf0]  ;;  %v7116_v6 = vor.u32 %v7520_v55, %v7113_v8  ;;  %v7103_v15 = vld [vmem:[%s11588_s5 + $0x48] sm:$0xf]  ;;  %v7519_v48 = vld [vmem:[%s11588_s5 + $0x54] sm:$0xf0] }
 0x4d0   : > { %v7073_v55 = vld [vmem:[%s11588_s5 + $0x18] sm:$0xf0] }
 0x4d1   : > { %v4458_v39 = vadd.f32 %v4448_v28, %v4392_v21  ;;  %v7012_v21 = vor.u32 %v7528_v49, %v7009_v4  ;;  %4824 = vmatpush.bf16.msrb.mxu0 %v7008_v5  ;;  %v7000_v28 = vor.u32 %v7527_v56, %v6999_v2  ;;  %v7104_v4 = vor.u32 %v7519_v48, %v7103_v15  ;;  %v7105_v2 = vld [vmem:[%s11588_s5 + $0x58] sm:$0xf0]  ;;  %v7095_v56 = vld [vmem:[%s11588_s5 + $0x40] sm:$0xf] }
 0x4d3   : > { %v11066_v12 = vadd.f32 %v4526_v13, %v4458_v39  ;;  %4843 = vmatpush.bf16.msrb.mxu1 %v7012_v21  ;;  %v7004_v13 = vor.u32 %v7525_v3, %v7001_v11  ;;  %v6992_v39 = vor.u32 %v7526_v20, %v6991_v34  ;;  %4863 = vmatpush.bf16.msrb.mxu2 %v7000_v28  ;;  %v7517_v21 = vld [vmem:[%s11588_s5 + $0x4c] sm:$0xf]  ;;  %v11923_v3 = vld [vmem:[#allocation14_spill] sm:$0xff]  ;;  %v7518_v20 = vld [vmem:[%s11588_s5 + $0x4c] sm:$0xf0] }
 0x4d4   : > { %v7108_v34 = vor.u32 %v7517_v21, %v7105_v2  ;;  %v7096_v46 = vor.u32 %v7518_v20, %v7095_v56  ;;  %v7554_v20 = vld [vmem:[%s11588_s5 + $0x16c] sm:$0xf0] }
 0x4d5   : > { %4586 = vrot.lane.b32.xlu1 %v11064_v14, %s7636_s11  ;;  %4558 = vrot.lane.b32.xlu0 %v11917_v62, %s7636_s11  ;;  %v4420_v10 = vpop.f32.mrf.mxu0 }
 0x4d6   : > { %4598 = vrot.lane.b32.xlu2 %v11066_v12, %s7636_s11  ;;  %v4449_v27 = vpop.f32.mrf.mxu1  ;;  %4882 = vmatpush.bf16.msrb.mxu3 %v7004_v13  ;;  %v7516_v13 = vld [vmem:[%s11588_s5 + $0x44] sm:$0xf] }
 0x4d7   : > { %v4450_v1 = vadd.f32 %v4449_v27, %v4420_v10  ;;  %4825 = vmatpush.bf16.msrb.mxu0 %v6992_v39  ;;  %4844 = vmatpush.bf16.msrb.mxu1 %v6996_v37  ;;  %v11164_v10 = vld [vmem:[%s11587_s4] ss:$0 sm:$0xff]  ;;  %v7097_v39 = vld [vmem:[%s11588_s5 + $0x50] sm:$0xf0] }
 0x4d8   : > { %5024 = vmatpush.bf16.msra.mxu2 %v7120_v41  ;;  %v7100_v17 = vor.u32 %v7516_v13, %v7097_v39  ;;  %v7071_v41 = vld [vmem:[%s11588_s5 + $0x8] sm:$0xf] }
 0x4d9   : > { %v4459_v60 = vadd.f32 %v4450_v1, %v4393_v45 }
 0x4db   : > { %v11081_v23 = vadd.f32 %v4528_v19, %v4459_v60  ;;  %v11922_v19 = vld [vmem:[#allocation53_spill] sm:$0xff]  ;;  %4986 = vmatpush.bf16.msra.mxu0 %v7112_v54  ;;  %5005 = vmatpush.bf16.msra.mxu1 %v7116_v6  ;;  %v7063_v54 = vld [vmem:[%s11588_s5] sm:$0xf]  ;;  %v7510_v6 = vld [vmem:[%s11588_s5 + $0xc] sm:$0xf0] }
 0x4dc   : > { %v4573_v60 = vmax.f32 %v11922_v19, %v4553_v16  ;;  %5025 = vmatpush.bf16.msra.mxu2 %v7104_v4  ;;  %v7079_v16 = vld [vmem:[%s11588_s5 + $0x20] sm:$0xf]  ;;  %v7064_v21 = vor.u32 %v7510_v6, %v7063_v54  ;;  %v7169_v6 = vld [vmem:[%s11588_s5 + $0x150] sm:$0xf0] }
 0x4dd   : > { %4560 = vrot.lane.b32.xlu1 %v11079_v26, %s7636_s11  ;;  %4600 = vrot.lane.b32.xlu0 %v11081_v23, %s7636_s11 }
 0x4df   : > { %4987 = vmatpush.bf16.msra.mxu0 %v7096_v46  ;;  %5006 = vmatpush.bf16.msra.mxu1 %v7100_v17  ;;  %v7552_v46 = vld [vmem:[%s11588_s5 + $0x164] sm:$0xf]  ;;  %v7185_v17 = vld [vmem:[%s11588_s5 + $0x170] sm:$0xf0] }
 0x50f   : > { %v4591_v18 = vpop.permute.xlu2 %4590 }
 0x510   : > { %v4612_v24 = vmax.f32 %v10974_v50, %v4591_v18  ;;  %v11172_v50 = vld [vmem:[%s11587_s4 + $0x1] ss:$0 sm:$0xff]  ;;  %v4574_v18 = vmax.f32 %v11923_v3, %v4555_v43  ;;  %v7508_v43 = vld [vmem:[%s11588_s5 + $0x4] sm:$0xf] }
 0x512   : > { %v4620_v27 = vmax.f32 %v4572_v35, %v4612_v24  ;;  %v7087_v24 = vld [vmem:[%s11588_s5 + $0x28] sm:$0xf]  ;;  %v7513_v35 = vld [vmem:[%s11588_s5 + $0x2c] sm:$0xf] }
 0x514   : > { %v4632_v53 = vadd.f32 %v11164_v10, %v4620_v27  ;;  %v7088_v27 = vor.u32 %v7515_v30, %v7087_v24  ;;  %v7188_v30 = vor.u32 %v7552_v46, %v7185_v17  ;;  %v7135_v46 = vld [vmem:[%s11588_s5 + $0x100] sm:$0xf]  ;;  %v7542_v17 = vld [vmem:[%s11588_s5 + $0x10c] sm:$0xf0] }
 0x516   : > { %v4640_v45 = vmax.f32 %v4632_v53, 0.0  ;;  %v7089_v53 = vld [vmem:[%s11588_s5 + $0x38] sm:$0xf0]  ;;  %5026 = vmatpush.bf16.msra.mxu2 %v7088_v27  ;;  %v7549_v27 = vld [vmem:[%s11588_s5 + $0x14c] sm:$0xf] }
 0x517   : > { %v11167_v59 = vpop.permute.xlu2 %4556 }
 0x518   : > { %v4649_v58 = vmul.f32 %v11172_v50, %v4640_v45  ;;  %v7514_v45 = vld [vmem:[%s11588_s5 + $0x2c] sm:$0xf0] }
 0x51a   : > { %v4658_v51 = vadd.f32 %v11188_v38, %v4649_v58  ;;  %v7509_v58 = vld [vmem:[%s11588_s5 + $0xc] sm:$0xf] }
 0x51c   : > { %v4666_v32 = vpack.c.bf16 %v4658_v51, %v4658_v51  ;;  %v7065_v51 = vld [vmem:[%s11588_s5 + $0x10] sm:$0xf0] }
 0x51d   : > { %v7068_v2 = vor.u32 %v7508_v43, %v7065_v51  ;;  %v7159_v43 = vld [vmem:[%s11588_s5 + $0x128] sm:$0xf] }
 0x51f   : > { %v11214_v49 = vpop.permute.xlu2 %4546 }
 0x528   : > { %v4589_v4 = vpop.permute.xlu2 %4588 }
 0x52f   : > { %v4593_v1 = vpop.permute.xlu0 %4592 }
 0x530   : > { %v4613_v57 = vmax.f32 %v10984_v36, %v4593_v1  ;;  %v7121_v36 = vld [vmem:[%s11588_s5 + $0x78] sm:$0xf0] }
 0x531   : > { %v7124_v47 = vor.u32 %v7521_v0, %v7121_v36  ;;  %v7084_v0 = vor.u32 %v7512_v9, %v7081_v31  ;;  %v7511_v36 = vld [vmem:[%s11588_s5 + $0x14] sm:$0xf0] }
 0x532   : > { %v4621_v22 = vmax.f32 %v4573_v60, %v4613_v57  ;;  %v7092_v60 = vor.u32 %v7513_v35, %v7089_v53  ;;  %v7080_v57 = vor.u32 %v7514_v45, %v7079_v16  ;;  %v7072_v29 = vor.u32 %v7511_v36, %v7071_v41  ;;  %v7551_v35 = vld [vmem:[%s11588_s5 + $0x154] sm:$0xf0]  ;;  %v7177_v45 = vld [vmem:[%s11588_s5 + $0x158] sm:$0xf0] }
 0x533   : > { %5043 = vmatpush.bf16.msra.mxu3 %v7124_v47  ;;  %5007 = vmatpush.bf16.msra.mxu1 %v7084_v0  ;;  %v7180_v31 = vor.u32 %v7549_v27, %v7177_v45 }
 0x534   : > { %v4633_v42 = vadd.f32 %v11164_v10, %v4621_v22  ;;  %v4726_v22 = vunpack.c.l.b16 %v4666_v32  ;;  %4988 = vmatpush.bf16.msra.mxu0 %v7080_v57  ;;  %5027 = vmatpush.bf16.msra.mxu2 %v7072_v29  ;;  %v7175_v32 = vld [vmem:[%s11588_s5 + $0x148] sm:$0xf] }
 0x535   : > { %v7176_v16 = vor.u32 %v7551_v35, %v7175_v32  ;;  %v7540_v32 = vld [vmem:[%s11588_s5 + $0x104] sm:$0xf] }
 0x536   : > { %v4641_v7 = vmax.f32 %v4633_v42, 0.0 }
 0x537   : > { %v4595_v5 = vpop.permute.xlu0 %4594  ;;  %5044 = vmatpush.bf16.msra.mxu3 %v7108_v34  ;;  %v7183_v34 = vld [vmem:[%s11588_s5 + $0x160] sm:$0xf]  ;;  %5008 = vmatpush.bf16.msra.mxu1 %v7068_v2 }
 0x538   : > { %v4650_v28 = vmul.f32 %v11172_v50, %v4641_v7  ;;  %v4614_v11 = vmax.f32 %v11021_v52, %v4595_v5  ;;  %v4575_v7 = vmax.f32 %v10982_v63, %v11167_v59  ;;  %v7076_v5 = vor.u32 %v7509_v58, %v7073_v55  ;;  %v7191_v63 = vld [vmem:[%s11588_s5 + $0x168] sm:$0xf]  ;;  %4989 = vmatpush.bf16.msra.mxu0 %v7064_v21 }
 0x539   : > { %v4611_v59 = vmax.f32 %v11047_v44, %v4589_v4  ;;  %v7184_v44 = vor.u32 %v7554_v20, %v7183_v34  ;;  %v7161_v4 = vld [vmem:[%s11588_s5 + $0x138] sm:$0xf0]  ;;  %v7541_v20 = vld [vmem:[%s11588_s5 + $0x10c] sm:$0xf] }
 0x53a   : > { %v4659_v37 = vadd.f32 %v11188_v38, %v4650_v28  ;;  %v4622_v52 = vmax.f32 %v4574_v18, %v4614_v11  ;;  %v7193_v11 = vld [vmem:[%s11588_s5 + $0x178] sm:$0xf0] }
 0x53b   : > { %5045 = vmatpush.bf16.msra.mxu3 %v7092_v60  ;;  %v4570_v60 = vmax.f32 %v10840_v40, %v11214_v49 }
 0x53c   : > { %v4667_v1 = vpack.c.bf16 %v4659_v37, %v4659_v37  ;;  %v4634_v19 = vadd.f32 %v11164_v10, %v4622_v52 }
 0x53e   : > { %v4727_v47 = vunpack.c.l.b16 %v4667_v1  ;;  %v4642_v33 = vmax.f32 %v4634_v19, 0.0  ;;  %v7167_v1 = vld [vmem:[%s11588_s5 + $0x140] sm:$0xf]  ;;  %v7550_v19 = vld [vmem:[%s11588_s5 + $0x14c] sm:$0xf0] }
 0x53f   : > { %v4597_v8 = vpop.permute.xlu1 %4596  ;;  %v4549_v42 = vpop.permute.xlu0 %4548  ;;  %5046 = vmatpush.bf16.msra.mxu3 %v7076_v5  ;;  %v7168_v0 = vor.u32 %v7550_v19, %v7167_v1  ;;  %v7545_v5 = vld [vmem:[%s11588_s5 + $0x12c] sm:$0xf] }
 0x540   : > { %v11289_v15 = vpack.c.b16 %v4727_v47, %v4726_v22  ;;  %v4615_v48 = vmax.f32 %v11045_v25, %v4597_v8  ;;  %v4651_v56 = vmul.f32 %v11172_v50, %v4642_v33  ;;  %v4571_v18 = vmax.f32 %v11040_v61, %v4549_v42  ;;  %v7555_v61 = vld [vmem:[%s11588_s5 + $0x174] sm:$0xf0]  ;;  %v7553_v25 = vld [vmem:[%s11588_s5 + $0x16c] sm:$0xf]  ;;  %v7548_v42 = vld [vmem:[%s11588_s5 + $0x144] sm:$0xf] }
 0x541   : > { %v7192_v13 = vor.u32 %v7555_v61, %v7191_v63  ;;  %v7196_v39 = vor.u32 %v7553_v25, %v7193_v11  ;;  %v7164_v2 = vor.u32 %v7545_v5, %v7161_v4  ;;  %v7153_v25 = vld [vmem:[%s11588_s5 + $0x130] sm:$0xf0] }
 0x542   : > { %v4623_v3 = vmax.f32 %v4575_v7, %v4615_v48  ;;  %7053 = vmatmul.msk.bf16.vlgmr.msrb.gmra.mxu0 %vm993_vm1, %v11289_v15  ;;  %7055 = vmatmul.msk.bf16.vlgmr.msrb.gmra.mxu1 %vm993_vm1, %v11289_v15  ;;  %v4660_v37 = vadd.f32 %v11188_v38, %v4651_v56  ;;  %v4619_v24 = vmax.f32 %v4571_v18, %v4611_v59  ;;  %v7547_v48 = vld [vmem:[%s11588_s5 + $0x134] sm:$0xf0]  ;;  %v7151_v56 = vld [vmem:[%s11588_s5 + $0x120] sm:$0xf]  ;;  %v7544_v18 = vld [vmem:[%s11588_s5 + $0x124] sm:$0xf] }
 0x543   : > { %7057 = vmatmul.msk.bf16.vlgmr.msrb.gmra.mxu2 %vm993_vm1, %v11289_v15  ;;  %7059 = vmatmul.msk.bf16.vlgmr.msrb.gmra.mxu3 %vm993_vm1, %v11289_v15  ;;  %v7172_v7 = vor.u32 %v7548_v42, %v7169_v6  ;;  %v7160_v21 = vor.u32 %v7547_v48, %v7159_v43  ;;  %v7143_v59 = vld [vmem:[%s11588_s5 + $0x108] sm:$0xf]  ;;  %v7156_v11 = vor.u32 %v7544_v18, %v7153_v25 }
 0x544   : > { %v4635_v28 = vadd.f32 %v11164_v10, %v4623_v3  ;;  %5188 = vmatpush.bf16.msrb.mxu2 %v7192_v13  ;;  %5207 = vmatpush.bf16.msrb.mxu3 %v7196_v39  ;;  %v4668_v41 = vpack.c.bf16 %v4660_v37, %v4660_v37  ;;  %v4631_v58 = vadd.f32 %v11164_v10, %v4619_v24  ;;  %v7546_v3 = vld [vmem:[%s11588_s5 + $0x12c] sm:$0xf0]  ;;  %v7145_v13 = vld [vmem:[%s11588_s5 + $0x118] sm:$0xf0] }
 0x545   : > { %5150 = vmatpush.bf16.msrb.mxu0 %v7184_v44  ;;  %5169 = vmatpush.bf16.msrb.mxu1 %v7188_v30  ;;  %v7152_v61 = vor.u32 %v7546_v3, %v7151_v56  ;;  %v7148_v44 = vor.u32 %v7541_v20, %v7145_v13  ;;  %v7136_v37 = vor.u32 %v7542_v17, %v7135_v46  ;;  %v7571_v20 = vld [vmem:[%s11590_s7 + $0x78] sm:$0xff]  ;;  %v7562_v13 = vld [vmem:[%s11590_s7 + $0x30] sm:$0xff] }
 0x546   : > { %v4643_v52 = vmax.f32 %v4635_v28, 0.0  ;;  %v4728_v40 = vunpack.c.l.b16 %v4668_v41  ;;  %v4639_v29 = vmax.f32 %v4631_v58, 0.0  ;;  %v7543_v28 = vld [vmem:[%s11588_s5 + $0x114] sm:$0xf0] }
 0x547   : > { %v4587_v53 = vpop.permute.xlu1 %4586  ;;  %v7144_v34 = vor.u32 %v7543_v28, %v7143_v59 }
 0x548   : > { %v4652_v57 = vmul.f32 %v11172_v50, %v4643_v52  ;;  %v4610_v9 = vmax.f32 %v11064_v14, %v4587_v53  ;;  %5189 = vmatpush.bf16.msrb.mxu2 %v7176_v16  ;;  %5208 = vmatpush.bf16.msrb.mxu3 %v7180_v31  ;;  %v4648_v8 = vmul.f32 %v11172_v50, %v4639_v29  ;;  %v7137_v52 = vld [vmem:[%s11588_s5 + $0x110] sm:$0xf0]  ;;  %v4559_v16 = vpop.permute.xlu0 %4558 }
 0x549   : > { %5151 = vmatpush.bf16.msrb.mxu0 %v7168_v0  ;;  %5170 = vmatpush.bf16.msrb.mxu1 %v7172_v7  ;;  %v7140_v30 = vor.u32 %v7540_v32, %v7137_v52  ;;  %v7569_v52 = vld [vmem:[%s11590_s7 + $0x68] sm:$0xff] }
 0x54a   : > { %v4661_v36 = vadd.f32 %v11188_v38, %v4652_v57  ;;  %v4618_v22 = vmax.f32 %v4570_v60, %v4610_v9  ;;  %v4657_v63 = vadd.f32 %v11188_v38, %v4648_v8  ;;  %v4599_v57 = vpop.permute.xlu2 %4598  ;;  %v4576_v9 = vmax.f32 %v11917_v62, %v4559_v16 }
 0x54b   : > { %v4616_v31 = vmax.f32 %v11066_v12, %v4599_v57 }
 0x54c   : > { %v4669_v47 = vpack.c.bf16 %v4661_v36, %v4661_v36  ;;  %v4630_v33 = vadd.f32 %v11164_v10, %v4618_v22  ;;  %5190 = vmatpush.bf16.msrb.mxu2 %v7160_v21  ;;  %5209 = vmatpush.bf16.msrb.mxu3 %v7164_v2  ;;  %v4665_v24 = vpack.c.bf16 %v4657_v63, %v4657_v63 }
 0x54d   : > { %5152 = vmatpush.bf16.msrb.mxu0 %v7152_v61  ;;  %5171 = vmatpush.bf16.msrb.mxu1 %v7156_v11  ;;  %v4624_v0 = vmax.f32 %v4576_v9, %v4616_v31 }
 0x54e   : > { %v4729_v49 = vunpack.c.l.b16 %v4669_v47  ;;  %v4638_v14 = vmax.f32 %v4630_v33, 0.0  ;;  %v4897_v27 = vunpack.c.l.b16 %v4665_v24  ;;  %v7560_v24 = vld [vmem:[%s11590_s7 + $0x20] sm:$0xff] }
 0x54f   : > { %v4561_v45 = vpop.permute.xlu1 %4560  ;;  %v4636_v62 = vadd.f32 %v11164_v10, %v4624_v0 }
 0x550   : > { %v11354_v55 = vpack.c.b16 %v4729_v49, %v4728_v40  ;;  %v4647_v54 = vmul.f32 %v11172_v50, %v4638_v14  ;;  %5191 = vmatpush.bf16.msrb.mxu2 %v7144_v34  ;;  %5210 = vmatpush.bf16.msrb.mxu3 %v7148_v44  ;;  %v4601_v1 = vpop.permute.xlu0 %4600  ;;  %v4577_v19 = vmax.f32 %v11079_v26, %v4561_v45  ;;  %v7563_v34 = vld [vmem:[%s11590_s7 + $0x38] sm:$0xff] }
 0x551   : > { %5153 = vmatpush.bf16.msrb.mxu0 %v7136_v37  ;;  %5172 = vmatpush.bf16.msrb.mxu1 %v7140_v30  ;;  %v4617_v60 = vmax.f32 %v11081_v23, %v4601_v1  ;;  %v4644_v36 = vmax.f32 %v4636_v62, 0.0  ;;  %v7561_v37 = vld [vmem:[%s11590_s7 + $0x28] sm:$0xff]  ;;  %v7568_v30 = vld [vmem:[%s11590_s7 + $0x60] sm:$0xff]  ;;  %v7559_v45 = vld [vmem:[%s11590_s7 + $0x18] sm:$0xff] }
 0x552   : > { %7054 = vmatmul.msk.bf16.gmra.mxu0 %vm993_vm1, %v11354_v55  ;;  %7056 = vmatmul.msk.bf16.gmra.mxu1 %vm993_vm1, %v11354_v55  ;;  %v4656_v51 = vadd.f32 %v11188_v38, %v4647_v54  ;;  %v7567_v1 = vld [vmem:[%s11590_s7 + $0x58] sm:$0xff] }
 0x553   : > { %7058 = vmatmul.msk.bf16.gmra.mxu2 %vm993_vm1, %v11354_v55  ;;  %7060 = vmatmul.msk.bf16.gmra.mxu3 %vm993_vm1, %v11354_v55  ;;  %v4625_v26 = vmax.f32 %v4577_v19, %v4617_v60  ;;  %v4653_v22 = vmul.f32 %v11172_v50, %v4644_v36  ;;  %v7558_v19 = vld [vmem:[%s11590_s7 + $0x10] sm:$0xff] }
 0x554   : > { %v4664_v39 = vpack.c.bf16 %v4656_v51, %v4656_v51  ;;  %v7566_v60 = vld [vmem:[%s11590_s7 + $0x50] sm:$0xff] }
 0x555   : > { %v4637_v23 = vadd.f32 %v11164_v10, %v4625_v26  ;;  %v4662_v10 = vadd.f32 %v11188_v38, %v4653_v22 }
 0x556   : > { %v4896_v35 = vunpack.c.l.b16 %v4664_v39  ;;  %v7570_v39 = vld [vmem:[%s11590_s7 + $0x70] sm:$0xff] }
 0x557   : > { %v4645_v41 = vmax.f32 %v4637_v23, 0.0  ;;  %v4670_v47 = vpack.c.bf16 %v4662_v10, %v4662_v10  ;;  %v7557_v10 = vld [vmem:[%s11590_s7 + $0x8] sm:$0xff] }
 0x558   : > { %v4898_v53 = vpack.c.b16 %v4897_v27, %v4896_v35 }
 0x559   : > { %v4654_v58 = vmul.f32 %v11172_v50, %v4645_v41  ;;  %v5060_v50 = vunpack.c.l.b16 %v4670_v47 }
 0x55b   : > { %v4663_v12 = vadd.f32 %v11188_v38, %v4654_v58 }
 0x562   : > { %7125 = vmatmul.msk.bf16.vlgmr.msra.gmra.mxu0 %vm993_vm1, %v4898_v53  ;;  %7127 = vmatmul.msk.bf16.vlgmr.msra.gmra.mxu1 %vm993_vm1, %v4898_v53 }
 0x563   : > { %7129 = vmatmul.msk.bf16.vlgmr.msra.gmra.mxu2 %vm993_vm1, %v4898_v53  ;;  %7131 = vmatmul.msk.bf16.vlgmr.msra.gmra.mxu3 %vm993_vm1, %v4898_v53 }
 0x564   : > { %5420 = vmatpush.bf16.msra.mxu0 %v7563_v34  ;;  %5434 = vmatpush.bf16.msra.mxu1 %v7571_v20 }
 0x568   : > { %5421 = vmatpush.bf16.msra.mxu0 %v7562_v13  ;;  %5435 = vmatpush.bf16.msra.mxu1 %v7570_v39 }
 0x56c   : > { %5422 = vmatpush.bf16.msra.mxu0 %v7561_v37  ;;  %5436 = vmatpush.bf16.msra.mxu1 %v7569_v52 }
 0x570   : > { %5423 = vmatpush.bf16.msra.mxu0 %v7560_v24  ;;  %5437 = vmatpush.bf16.msra.mxu1 %v7568_v30 }
 0x572   : > { %7126 = vmatmul.msk.bf16.gmra.mxu0 %vm993_vm1, %v11289_v15  ;;  %7128 = vmatmul.msk.bf16.gmra.mxu1 %vm993_vm1, %v11289_v15 }
 0x573   : > { %7130 = vmatmul.msk.bf16.gmra.mxu2 %vm993_vm1, %v11289_v15  ;;  %7132 = vmatmul.msk.bf16.gmra.mxu3 %vm993_vm1, %v11289_v15  ;;  %v4671_v15 = vpack.c.bf16 %v4663_v12, %v4663_v12 }
 0x574   : > { %5424 = vmatpush.bf16.msra.mxu0 %v7559_v45  ;;  %5438 = vmatpush.bf16.msra.mxu1 %v7567_v1 }
 0x575   : > { %v5061_v33 = vunpack.c.l.b16 %v4671_v15  ;;  %v7565_v15 = vld [vmem:[%s11590_s7 + $0x48] sm:$0xff] }
 0x577   : > { %v5062_v40 = vpack.c.b16 %v5061_v33, %v5060_v50  ;;  %v7556_v50 = vld [vmem:[%s11590_s7] sm:$0xff] }
 0x578   : > { %5425 = vmatpush.bf16.msra.mxu0 %v7558_v19  ;;  %5439 = vmatpush.bf16.msra.mxu1 %v7566_v60 }
 0x57c   : > { %5426 = vmatpush.bf16.msra.mxu0 %v7557_v10  ;;  %5440 = vmatpush.bf16.msra.mxu1 %v7565_v15 }
 0x580   : > { %5427 = vmatpush.bf16.msra.mxu0 %v7556_v50 }
 0x582   : > { %7197 = vmatmul.msk.bf16.vlgmr.msrb.gmra.mxu0 %vm993_vm1, %v11354_v55  ;;  %7199 = vmatmul.msk.bf16.vlgmr.msrb.gmra.mxu1 %vm993_vm1, %v11354_v55 }
 0x583   : > { %7201 = vmatmul.msk.bf16.vlgmr.msrb.gmra.mxu2 %vm993_vm1, %v11354_v55  ;;  %7203 = vmatmul.msk.bf16.vlgmr.msrb.gmra.mxu3 %vm993_vm1, %v11354_v55 }
 0x592   : > { %7198 = vmatmul.msk.bf16.gmra.mxu0 %vm993_vm1, %v5062_v40  ;;  %7200 = vmatmul.msk.bf16.gmra.mxu1 %vm993_vm1, %v5062_v40 }
 0x593   : > { %7202 = vmatmul.msk.bf16.gmra.mxu2 %vm993_vm1, %v5062_v40  ;;  %7204 = vmatmul.msk.bf16.gmra.mxu3 %vm993_vm1, %v5062_v40  ;;  %v7564_v40 = vld [vmem:[%s11590_s7 + $0x40] sm:$0xff] }
 0x594   : > { %5441 = vmatpush.bf16.msra.mxu1 %v7564_v40 }
 0x5bf   : > { %v4827_v49 = vpop.f32.mrf.mxu0  ;;  %v4846_v29 = vpop.f32.mrf.mxu1 }
 0x5c6   : > { %v4865_v14 = vpop.f32.mrf.mxu2  ;;  %v4884_v55 = vpop.f32.mrf.mxu3 }
 0x5c7   : > { %v11456_v54 = vpop.f32.mrf.mxu0  ;;  %v11458_v38 = vpop.f32.mrf.mxu1 }
 0x5ce   : > { %v11460_v8 = vpop.f32.mrf.mxu2  ;;  %v11462_v42 = vpop.f32.mrf.mxu3 }
 0x5cf   : > { %v11464_v6 = vpop.f32.mrf.mxu0  ;;  %v11466_v43 = vpop.f32.mrf.mxu1 }
 0x5d6   : > { %v11468_v51 = vpop.f32.mrf.mxu2  ;;  %v11470_v7 = vpop.f32.mrf.mxu3 }
 0x5d7   : > { %v11472_v48 = vpop.f32.mrf.mxu0  ;;  %v11474_v5 = vpop.f32.mrf.mxu1 }
 0x5de   : > { %v11476_v4 = vpop.f32.mrf.mxu2  ;;  %v11478_v21 = vpop.f32.mrf.mxu3 }
 0x5df   : > { %v4991_v2 = vpop.f32.mrf.mxu0  ;;  %v5010_v56 = vpop.f32.mrf.mxu1 }
 0x5e0   : > { %v4992_v57 = vadd.f32 %v4991_v2, %v4827_v49  ;;  %v5011_v9 = vadd.f32 %v5010_v56, %v4846_v29 }
 0x5e6   : > { %v5029_v3 = vpop.f32.mrf.mxu2  ;;  %v5048_v18 = vpop.f32.mrf.mxu3 }
 0x5e7   : > { %v4993_v63 = vpop.f32.mrf.mxu0  ;;  %v5012_v61 = vpop.f32.mrf.mxu1  ;;  %v5030_v31 = vadd.f32 %v5029_v3, %v4865_v14  ;;  %v5049_v26 = vadd.f32 %v5048_v18, %v4884_v55 }
 0x5e8   : > { %v4994_v49 = vadd.f32 %v4993_v63, %v11456_v54  ;;  %v5013_v29 = vadd.f32 %v5012_v61, %v11458_v38 }
 0x5ee   : > { %v5031_v25 = vpop.f32.mrf.mxu2  ;;  %v5050_v59 = vpop.f32.mrf.mxu3 }
 0x5ef   : > { %v11480_v28 = vpop.f32.mrf.mxu0  ;;  %v11482_v11 = vpop.f32.mrf.mxu1  ;;  %v5032_v14 = vadd.f32 %v5031_v25, %v11460_v8  ;;  %v5051_v55 = vadd.f32 %v5050_v59, %v11462_v42 }
 0x5f0   : > { %v4997_v54 = vadd.f32 %v11480_v28, %v11464_v6  ;;  %v5016_v38 = vadd.f32 %v11482_v11, %v11466_v43 }
 0x5f6   : > { %v5034_v44 = vpop.f32.mrf.mxu2  ;;  %v5053_v46 = vpop.f32.mrf.mxu3 }
 0x5f7   : > { %v11496_v17 = vpop.f32.mrf.mxu0  ;;  %v11498_v32 = vpop.f32.mrf.mxu1  ;;  %v5035_v8 = vadd.f32 %v5034_v44, %v11468_v51  ;;  %v5054_v42 = vadd.f32 %v5053_v46, %v11470_v7 }
 0x5f8   : > { %v4999_v7 = vadd.f32 %v11496_v17, %v11472_v48  ;;  %v5018_v44 = vadd.f32 %v11498_v32, %v11474_v5 }
 0x5fe   : > { %v11512_v35 = vpop.f32.mrf.mxu2  ;;  %v11514_v27 = vpop.f32.mrf.mxu3 }
 0x5ff   : > { %v5155_v53 = vpop.f32.mrf.mxu0  ;;  %v5174_v16 = vpop.f32.mrf.mxu1  ;;  %v5037_v46 = vadd.f32 %v11512_v35, %v11476_v4  ;;  %v5056_v19 = vadd.f32 %v11514_v27, %v11478_v21  ;;  %v7206_v4 = vld [vmem:[%s11589_s6 + $0x2] ss:$4 sm:$0x3] }
 0x600   : > { %v5222_v62 = vadd.f32 %v5155_v53, %v4992_v57  ;;  %v5223_v41 = vadd.f32 %v5174_v16, %v5011_v9  ;;  %v5250_v53 = vld [vmem:[%s11589_s6] ss:$4 sm:$0x3]  ;;  %v5279_v10 = vperm.slane %v7206_v4, 1 }
 0x601   : > { %v5256_v28 = vperm.slane %v5250_v53, 0  ;;  %v5257_v43 = vperm.slane %v5250_v53, 1 }
 0x606   : > { %v5193_v0 = vpop.f32.mrf.mxu2  ;;  %v5212_v23 = vpop.f32.mrf.mxu3 }
 0x607   : > { %v5224_v36 = vadd.f32 %v5193_v0, %v5030_v31  ;;  %v5225_v58 = vadd.f32 %v5212_v23, %v5049_v26  ;;  %v5157_v22 = vpop.f32.mrf.mxu0  ;;  %v5176_v12 = vpop.f32.mrf.mxu1  ;;  %v7205_v26 = vld [vmem:[%s11589_s6 + $0x1] ss:$4 sm:$0x3] }
 0x608   : > { %v5226_v3 = vadd.f32 %v5157_v22, %v4994_v49  ;;  %v5227_v18 = vadd.f32 %v5176_v12, %v5013_v29  ;;  %v5269_v32 = vperm.slane %v7205_v26, 0  ;;  %v5278_v12 = vperm.slane %v7206_v4, 0 }
 0x609   : > { %v5238_v47 = vmax.f32 %v5222_v62, %v5224_v36  ;;  %v5239_v33 = vmax.f32 %v5223_v41, %v5225_v58  ;;  %v5270_v41 = vperm.slane %v7205_v26, 1 }
 0x60e   : > { %v5195_v2 = vpop.f32.mrf.mxu2  ;;  %v5214_v56 = vpop.f32.mrf.mxu3 }
 0x60f   : > { %v5228_v34 = vadd.f32 %v5195_v2, %v5032_v14  ;;  %v5229_v20 = vadd.f32 %v5214_v56, %v5051_v55  ;;  %v5160_v37 = vpop.f32.mrf.mxu0  ;;  %v5179_v52 = vpop.f32.mrf.mxu1 }
 0x610   : > { %v5230_v25 = vadd.f32 %v5160_v37, %v4997_v54  ;;  %v5231_v59 = vadd.f32 %v5179_v52, %v5016_v38 }
 0x611   : > { %v5240_v13 = vmax.f32 %v5226_v3, %v5228_v34  ;;  %v5241_v39 = vmax.f32 %v5227_v18, %v5229_v20  ;;  %v7585_v18 = vld [vmem:[%s11591_s8] ss:$0 sm:$0xff] }
 0x616   : > { %v5198_v63 = vpop.f32.mrf.mxu2  ;;  %v5217_v61 = vpop.f32.mrf.mxu3 }
 0x617   : > { %v5232_v24 = vadd.f32 %v5198_v63, %v5035_v8  ;;  %v5233_v30 = vadd.f32 %v5217_v61, %v5054_v42  ;;  %v5162_v11 = vpop.f32.mrf.mxu0  ;;  %v5181_v51 = vpop.f32.mrf.mxu1 }
 0x618   : > { %v5234_v60 = vadd.f32 %v5162_v11, %v4999_v7  ;;  %v5235_v57 = vadd.f32 %v5181_v51, %v5018_v44 }
 0x619   : > { %v5242_v16 = vmax.f32 %v5230_v25, %v5232_v24  ;;  %v5243_v45 = vmax.f32 %v5231_v59, %v5233_v30 }
 0x61b   : > { %v5246_v6 = vmax.f32 %v5238_v47, %v5242_v16  ;;  %v5247_v1 = vmax.f32 %v5239_v33, %v5243_v45 }
 0x61d   : > { %v5260_v0 = vadd.f32 %v5256_v28, %v5246_v6  ;;  %v5261_v23 = vadd.f32 %v5257_v43, %v5247_v1 }
 0x61e   : > { %v5200_v9 = vpop.f32.mrf.mxu2  ;;  %v5219_v31 = vpop.f32.mrf.mxu3 }
 0x61f   : > { %v5236_v48 = vadd.f32 %v5200_v9, %v5037_v46  ;;  %v5237_v17 = vadd.f32 %v5219_v31, %v5056_v19  ;;  %v5264_v21 = vmax.f32 %v5260_v0, 0.0  ;;  %v5265_v35 = vmax.f32 %v5261_v23, 0.0 }
 0x621   : > { %v5244_v62 = vmax.f32 %v5234_v60, %v5236_v48  ;;  %v5245_v5 = vmax.f32 %v5235_v57, %v5237_v17  ;;  %v5273_v15 = vmul.f32 %v5269_v32, %v5264_v21  ;;  %v5274_v47 = vmul.f32 %v5270_v41, %v5265_v35 }
 0x623   : > { %v5248_v27 = vmax.f32 %v5240_v13, %v5244_v62  ;;  %v5249_v36 = vmax.f32 %v5241_v39, %v5245_v5  ;;  %v5282_v29 = vadd.f32 %v5278_v12, %v5273_v15  ;;  %v5283_v14 = vadd.f32 %v5279_v10, %v5274_v47 }
 0x625   : > { %v5262_v58 = vadd.f32 %v5256_v28, %v5248_v27  ;;  %v5263_v22 = vadd.f32 %v5257_v43, %v5249_v36 }
 0x627   : > { %v5266_v33 = vmax.f32 %v5262_v58, 0.0  ;;  %v5267_v50 = vmax.f32 %v5263_v22, 0.0 }
 0x629   : > { %v5275_v40 = vmul.f32 %v5269_v32, %v5266_v33  ;;  %v5276_v49 = vmul.f32 %v5270_v41, %v5267_v50 }
 0x62b   : > { %v5284_v55 = vadd.f32 %v5278_v12, %v5275_v40  ;;  %v5285_v2 = vadd.f32 %v5279_v10, %v5276_v49 }
 0x62d   : > { %v5286_v56 = vpack.c.bf16 %v5284_v55, %v5282_v29  ;;  %v5287_v3 = vpack.c.bf16 %v5285_v2, %v5283_v14 }
 0x62f   : > { %5428 = vmatmul.bf16.vlgmr.msra.gmra.mxu0 %v5286_v56  ;;  %5442 = vmatmul.bf16.vlgmr.msra.gmra.mxu1 %v5287_v3 }
 0x6ac   : > { %v5429_v34 = vpop.f32.mrf.mxu0  ;;  %v5443_v20 = vpop.f32.mrf.mxu1 }
 0x6ad   : > { %v5430_v13 = vadd.f32 %v7585_v18, %v5429_v34 }
 0x6af   : > { %v5444_v39 = vadd.f32 %v5443_v20, %v5430_v13 }
 0x6b1   : > { %v5449_v37 = vsel %vm5448_vm2, %v5444_v39, -inf }
 0x6b2   : > { %5450 = vmax.xlane.f32.xlu1 %v5449_v37 }
 0x6b4   : > { %v5431_v52 = vpop.f32.mrf.mxu0  ;;  %v5445_v38 = vpop.f32.mrf.mxu1 }
 0x6b5   : > { %v5432_v54 = vadd.f32 %v7585_v18, %v5431_v52 }
 0x6b7   : > { %v5446_v8 = vadd.f32 %v5445_v38, %v5432_v54 }
 0x6b9   : > { %v5452_v42 = vsel %vm5448_vm2, %v5446_v8, -inf }
 0x6ba   : > { %5453 = vmax.xlane.f32.xlu2 %v5452_v42 }
 0x725   : > { %v5451_v63 = vpop.xlane.xlu1 %5450 }
 0x726   : > { %v5455_v61 = vsub.f32 %v5444_v39, %v5451_v63 }
 0x728   : > { %v5457_v25 = vmul.f32 1.442695, %v5455_v61 }
 0x72a   : > { %7586 = vpow2.f32 %v5457_v25 }
 0x72d   : > { %v5454_v59 = vpop.xlane.xlu2 %5453 }
 0x72e   : > { %v5456_v24 = vsub.f32 %v5446_v8, %v5454_v59 }
 0x730   : > { %v7587_v30 = vpop.eup %7586  ;;  %v5459_v53 = vmul.f32 1.442695, %v5456_v24 }
 0x731   : > { %v5461_v16 = vsel %vm5448_vm2, %v7587_v30, 0.0 }
 0x732   : > { %7588 = vpow2.f32 %v5459_v53  ;;  %5462 = vadd.xlane.f32.xlu0 %v5461_v16 }
 0x738   : > { %v7589_v45 = vpop.eup %7588 }
 0x739   : > { %v5464_v6 = vsel %vm5448_vm2, %v7589_v45, 0.0 }
 0x73a   : > { %5465 = vadd.xlane.f32.xlu2 %v5464_v6 }
 0x7a5   : > { %v5463_v28 = vpop.xlane.xlu0 %5462 }
 0x7a6   : > { %7590 = vlog2.f32 %v5463_v28 }
 0x7ac   : > { %v7591_v1 = vpop.eup %7590 }
 0x7ad   : > { %v5468_v43 = vmul.f32 0.6931472, %v7591_v1  ;;  %v5466_v11 = vpop.xlane.xlu2 %5465 }
 0x7ae   : > { %7592 = vlog2.f32 %v5466_v11 }
 0x7af   : > { %v5471_v51 = vsub.f32 %v5455_v61, %v5468_v43 }
 0x7b1   : > { %5473 = vst.msk [vmem:[%s332_s17] sm:$0xff] %vm5448_vm2, %v5471_v51 }
 0x7b4   : > { %v7593_v7 = vpop.eup %7592 }
 0x7b5   : > { %v5470_v44 = vmul.f32 0.6931472, %v7593_v7 }
 0x7b7   : > { %v5472_v46 = vsub.f32 %v5456_v24, %v5470_v44 }
 0x7b9   : > { %5474 = vst.msk [vmem:[%s332_s17 + $0x8] sm:$0xff] %vm5448_vm2, %v5472_v46 }
 0x7ba PF: > { %s19_s30 = sadd.s32 1, %s7634_s30  }
 0x7bb   : > { %p16_p5 = scmp.ge.s32.totalorder %s19_s30, 4  }
 0x7bd   :  { %18 = sbr.rel (!%p16_p5) target bundleno = 1 (0x1), region = 103 }

</bundles_post_ra>
